<compile_context>
chip_gen: v7x
topology: tpu7x:2x2x1
jax: 0.10.0
libtpu: 0.0.40
codegen_flags: <defaults>
</compile_context>

<pallas_src>
import numpy as np
import jax
import jax.numpy as jnp
from jax.experimental import pallas as pl
from jax.experimental.pallas import tpu as pltpu

IN_FEATURES = 16
OUT_FEATURES = 32
TREE_DEPTH = 3            # complete binary tree: 15 nodes, 8 leaves
NUM_TREES = 64            # 512 leaves total -> 256 leaf rows per forest half (MXU M)
NUM_PARTS = 2             # forest halves -> leading "parallel" grid axis (both v7x TCs)

FPAD = 32                 # xin lanes [0:FPAD) = [x(16) | 1 | zeros]
K_DEPTH = 128             # padded contraction depth of the fused matmul
N_COLS = 8 * OUT_FEATURES  # 256 fused output columns (last 32 are dead padding)
STATE_W = 128             # lane-dense state row: [h(32) | c(32) | zeros(64)]

assert FPAD >= IN_FEATURES + 1
assert K_DEPTH >= FPAD + 2 * OUT_FEATURES
assert STATE_W >= 2 * OUT_FEATURES
assert N_COLS % 128 == 0


# ----------------------------------------------------------------------------
# Host-side static preprocessing: structured level/slot layout + fused weights
# ----------------------------------------------------------------------------
def build_level_tables(node_order, adjacency_list, edge_order, num_parts):
    """Assign every node a (part, level, slot) so that the left child of the parent at
    slot j sits at slot j of the level below and the right child at slot roff + j
    (roff 8-aligned).  This turns the in-kernel gather into two contiguous block reads."""
    node_order = np.asarray(node_order)
    adjacency_list = np.asarray(adjacency_list)
    edge_order = np.asarray(edge_order)
    N = int(node_order.shape[0])
    num_levels = int(node_order.max()) + 1
    top = num_levels - 1

    def ceil8(v):
        return int(-(-int(v) // 8) * 8)

    # --- connected components (trees) via parent pointers
    parent = np.full(N, -1, dtype=np.int64)
    parent[adjacency_list[:, 1]] = adjacency_list[:, 0]
    root = np.arange(N)
    for _ in range(num_levels + 1):
        pr = parent[root]
        root = np.where(pr >= 0, pr, root)
    roots = np.nonzero(parent < 0)[0]
    assert np.all(node_order[roots] == top), "structured layout needs every root at the max level"

    # --- split trees into num_parts groups (one resident state slab / TensorCore each)
    groups = np.array_split(roots, num_parts)
    part_of_root = np.zeros(N, dtype=np.int64)
    for p, grp in enumerate(groups):
        part_of_root[grp] = p
    part = part_of_root[root]                       # per-node part id

    # --- slot assignment, top-down
    slot = np.full(N, -1, dtype=np.int64)
    roff = np.zeros((num_parts, num_levels), dtype=np.int32)
    for p, grp in enumerate(groups):
        slot[grp] = np.arange(len(grp))
    for lvl in range(top, 0, -1):
        edges = adjacency_list[edge_order == lvl]
        assert edges.shape[0] % 2 == 0, "binary tree: two consecutive edges per parent"
        parents = edges[0::2, 0]
        lefts = edges[0::2, 1]
        rights = edges[1::2, 1]
        assert np.array_equal(parents, edges[1::2, 0]), \
            "expected consecutive (parent,left),(parent,right) edge pairs"
        # TODO(synk): the block-structured gather requires children exactly one level
        # below their parent (true for complete trees); fully general trees would need
        # the scalar-indexed gather path instead.
        assert np.all(node_order[lefts] == lvl - 1) and np.all(node_order[rights] == lvl - 1)
        for p in range(num_parts):
            m = part[parents] == p
            if not np.any(m):
                continue
            off = max(8, ceil8(int(slot[parents[m]].max()) + 1))   # 8-aligned right offset
            roff[p, lvl] = off
            slot[lefts[m]] = slot[parents[m]]
            slot[rights[m]] = off + slot[parents[m]]
    assert np.all(slot >= 0)

    pad = max(8, ceil8(int(slot.max()) + 1))        # rows per level block (8-aligned)
    rows_half = num_levels * pad
    row_of = (part * rows_half + node_order.astype(np.int64) * pad + slot).astype(np.int32)
    feat_src = np.full(num_parts * rows_half, N, dtype=np.int32)   # N -> zero feature row
    feat_src[row_of] = np.arange(N, dtype=np.int32)

    return dict(num_levels=num_levels, pad=pad, num_parts=num_parts,
                roff=roff, row_of=row_of, feat_src=feat_src)


def fuse_params(p):
    """Pack the 6 weight matrices + 2 biases into one (K_DEPTH, N_COLS) matrix.

    xin lanes : [x(0:16) | 1(16) | 0(17:32) | h_left(32:64) | h_right(64:96) | 0(96:128)]
    z columns : [i(0:H) | o(H:2H) | u(2H:3H) |
                 f_l(h_l)(3H:4H) | f_r(h_l)(4H:5H) | f_l(h_r)(5H:6H) | f_r(h_r)(6H:7H) |
                 dead(7H:8H)]
    Bias enters via the constant-1 lane; W_f(x)+b_f is replicated into all four forget
    column groups so the forget gates are one contiguous sigmoid.
    """
    F, H = IN_FEATURES, OUT_FEATURES
    W = np.zeros((K_DEPTH, N_COLS), np.float32)
    W_iou = np.asarray(p["W_iou_w"], np.float32)
    W_f = np.asarray(p["W_f_w"], np.float32)
    UiL = np.asarray(p["U_iou_left_w"], np.float32)
    UiR = np.asarray(p["U_iou_right_w"], np.float32)
    UfL = np.asarray(p["U_f_left_w"], np.float32)
    UfR = np.asarray(p["U_f_right_w"], np.float32)

    # x lanes
    W[0:F, 0:3 * H] = W_iou.T
    for g in range(4):
        W[0:F, (3 + g) * H:(4 + g) * H] = W_f.T
    # constant-1 lane -> biases
    W[F, 0:3 * H] = np.asarray(p["W_iou_b"], np.float32)
    for g in range(4):
        W[F, (3 + g) * H:(4 + g) * H] = np.asarray(p["W_f_b"], np.float32)
    # h_left lanes
    hL = FPAD
    W[hL:hL + H, 0:3 * H] = UiL.T
    W[hL:hL + H, 3 * H:4 * H] = UfL.T
    W[hL:hL + H, 4 * H:5 * H] = UfR.T
    # h_right lanes
    hR = FPAD + H
    W[hR:hR + H, 0:3 * H] = UiR.T
    W[hR:hR + H, 5 * H:6 * H] = UfL.T
    W[hR:hR + H, 6 * H:7 * H] = UfR.T
    return jnp.asarray(W)


# ----------------------------------------------------------------------------
# Fused Pallas kernel factory: single pallas_call over (forest half, level)
# ----------------------------------------------------------------------------
def make_tree_lstm_fn(tables, w_all):
    F, H = IN_FEATURES, OUT_FEATURES
    num_levels = tables["num_levels"]
    pad = tables["pad"]
    num_parts = tables["num_parts"]
    rows_half = num_levels * pad
    roff_tbl = jnp.asarray(tables["roff"])        # (num_parts, num_levels) int32 -> SMEM
    feat_src = jnp.asarray(tables["feat_src"])    # (num_parts*rows_half,) int32
    row_of = jnp.asarray(tables["row_of"])        # (N,) int32

    def kernel(roff_ref, feat_ref, w_ref, state_ref):
        lvl = pl.program_id(1)

        @pl.when(lvl == 0)
        def _init():
            # Zero the resident slab once per forest half: the lvl==0 child reads below
            # then return exact zeros (leaf branch) and padded rows stay finite.
            state_ref[...] = jnp.zeros_like(state_ref)

        # --- structured child gather: two contiguous block reads of the previous level
        prev0 = (jnp.maximum(lvl, 1) - 1) * pad            # clamped -> lvl==0 reads zeros
        roff = roff_ref[pl.program_id(0), lvl]             # right-children offset (8-aligned)
        childL = state_ref[pl.ds(pl.multiple_of(prev0, 8), pad), :]
        childR = state_ref[pl.ds(pl.multiple_of(prev0 + roff, 8), pad), :]
        hl, cl = childL[:, 0:H], childL[:, H:2 * H]
        hr, cr = childR[:, 0:H], childR[:, H:2 * H]

        # --- single lane-dense fused matmul: [x|1|0|h_l|h_r|0](pad,128) @ W(128,256)
        x = feat_ref[pl.ds(pl.multiple_of(lvl * pad, 8), pad), :]
        xin = jnp.concatenate(
            [x, hl, hr, jnp.zeros((pad, K_DEPTH - FPAD - 2 * H), jnp.float32)], axis=1)
        z = jnp.dot(xin, w_ref[...], preferred_element_type=jnp.float32,
                    precision=jax.lax.Precision.HIGHEST)

        i_g = jax.nn.sigmoid(z[:, 0:H])
        o_g = jax.nn.sigmoid(z[:, H:2 * H])
        u_g = jnp.tanh(z[:, 2 * H:3 * H])
        f = jax.nn.sigmoid(z[:, 3 * H:7 * H])              # [f_l(h_l) f_r(h_l) f_l(h_r) f_r(h_r)]
        c_new = (i_g * u_g
                 + (f[:, 0:H] + f[:, H:2 * H]) * cl
                 + (f[:, 2 * H:3 * H] + f[:, 3 * H:4 * H]) * cr)
        h_new = o_g * jnp.tanh(c_new)

        # --- full-lane store of this level's [h | c | 0pad] block into the resident slab
        row0 = pl.multiple_of(lvl * pad, 8)
        state_ref[pl.ds(row0, pad), :] = jnp.concatenate(
            [h_new, c_new, jnp.zeros((pad, STATE_W - 2 * H), jnp.float32)], axis=1)

    grid_spec = pltpu.PrefetchScalarGridSpec(
        num_scalar_prefetch=1,
        grid=(num_parts, num_levels),
        in_specs=[
            # per-half feature slab, resident across levels (constant along level axis)
            pl.BlockSpec((rows_half, FPAD), lambda p, l, roff: (p, 0)),
            # fused weights, resident for the whole call
            pl.BlockSpec((K_DEPTH, N_COLS), lambda p, l, roff: (0, 0)),
        ],
        # resident per-half [h|c] slab; written back to HBM once per half
        out_specs=pl.BlockSpec((rows_half, STATE_W), lambda p, l, roff: (p, 0)),
    )

    kernel_fn = pl.pallas_call(
        kernel,
        grid_spec=grid_spec,
        out_shape=jax.ShapeDtypeStruct((num_parts * rows_half, STATE_W), jnp.float32),
        compiler_params=pltpu.CompilerParams(
            # forest halves are independent (v7x: one per TensorCore); levels are a
            # sequential dependency chain over the resident state slab.
            dimension_semantics=("parallel", "arbitrary"),
            vmem_limit_bytes=32 * 1024 * 1024,
        ),
    )

    @jax.jit
    def forward(features):
        # Static permutation into the level-major, slot-padded layout; append the
        # constant-1 bias lane (bias is folded into the fused matmul).
        feat_ext = jnp.concatenate(
            [features.astype(jnp.float32), jnp.zeros((1, F), jnp.float32)], axis=0)
        x_rows = jnp.take(feat_ext, feat_src, axis=0)
        nrows = x_rows.shape[0]
        feat_aug = jnp.concatenate(
            [x_rows,
             jnp.ones((nrows, 1), jnp.float32),
             jnp.zeros((nrows, FPAD - F - 1), jnp.float32)], axis=1)
        state = kernel_fn(roff_tbl, feat_aug, w_all)
        hc = jnp.take(state, row_of, axis=0)
        return hc[:, 0:H], hc[:, H:2 * H]

    return forward


# ----------------------------------------------------------------------------
# Pure numpy reference (mirrors the PyTorch forward exactly)
# ----------------------------------------------------------------------------
def ref_forward(pnp, features, node_order, adjacency_list, edge_order):
    N = node_order.shape[0]
    H = pnp["W_f_w"].shape[0]
    h = np.zeros((N, H), np.float32)
    c = np.zeros((N, H), np.float32)

    def sig(z):
        return 1.0 / (1.0 + np.exp(-z))

    for it in range(int(node_order.max()) + 1):
        node_mask = node_order == it
        edge_mask = edge_order == it
        x = features[node_mask]
        if it == 0:
            iou = x @ pnp["W_iou_w"].T + pnp["W_iou_b"]
        else:
            adj = adjacency_list[edge_mask]
            parent_idx = adj[:, 0]
            child_idx = adj[:, 1]
            child_h = h[child_idx]
            child_c = c[child_idx]
            h_left = child_h[0::2]
            h_right = child_h[1::2]
            iou = (x @ pnp["W_iou_w"].T + pnp["W_iou_b"]
                   + h_left @ pnp["U_iou_left_w"].T
                   + h_right @ pnp["U_iou_right_w"].T)
        i = sig(iou[:, :H])
        o = sig(iou[:, H:2 * H])
        u = np.tanh(iou[:, 2 * H:])
        if it == 0:
            c[node_mask] = i * u
        else:
            wf = features[parent_idx] @ pnp["W_f_w"].T + pnp["W_f_b"]
            f_left = sig(wf + child_h @ pnp["U_f_left_w"].T)
            f_right = sig(wf + child_h @ pnp["U_f_right_w"].T)
            fc = (f_left + f_right) * child_c
            c_sum = fc[0::2] + fc[1::2]
            c[node_mask] = i * u + c_sum
        h[node_mask] = o * np.tanh(c[node_mask])
    return h, c


# ----------------------------------------------------------------------------
# Synthetic forest + deterministic parameters
# ----------------------------------------------------------------------------
def build_complete_binary_tree(depth):
    num_nodes = 2 ** (depth + 1) - 1
    depths = np.floor(np.log2(np.arange(num_nodes) + 1)).astype(np.int32)
    node_order = (depth - depths).astype(np.int32)   # leaves -> 0, root -> depth
    adjacency, edge_order = [], []
    for p in range(2 ** depth - 1):
        adjacency.append((p, 2 * p + 1))             # left child edge
        adjacency.append((p, 2 * p + 2))             # right child edge
        edge_order.extend([node_order[p], node_order[p]])
    return (node_order,
            np.array(adjacency, dtype=np.int32),
            np.array(edge_order, dtype=np.int32))


def build_forest(num_trees, depth):
    node_order_t, adj_t, edge_order_t = build_complete_binary_tree(depth)
    n = node_order_t.shape[0]
    node_order = np.concatenate([node_order_t for _ in range(num_trees)])
    adjacency = np.concatenate([adj_t + t * n for t in range(num_trees)], axis=0)
    edge_order = np.concatenate([edge_order_t for _ in range(num_trees)])
    return node_order, adjacency, edge_order


def init_params(key):
    H, F = OUT_FEATURES, IN_FEATURES
    ks = jax.random.split(key, 8)
    scale = 0.1
    return {
        "W_iou_w": scale * jax.random.normal(ks[0], (3 * H, F), jnp.float32),
        "W_iou_b": scale * jax.random.normal(ks[1], (3 * H,), jnp.float32),
        "U_iou_left_w": scale * jax.random.normal(ks[2], (3 * H, H), jnp.float32),
        "U_iou_right_w": scale * jax.random.normal(ks[3], (3 * H, H), jnp.float32),
        "W_f_w": scale * jax.random.normal(ks[4], (H, F), jnp.float32),
        "W_f_b": scale * jax.random.normal(ks[5], (H,), jnp.float32),
        "U_f_left_w": scale * jax.random.normal(ks[6], (H, H), jnp.float32),
        "U_f_right_w": scale * jax.random.normal(ks[7], (H, H), jnp.float32),
    }


if __name__ == "__main__":
    key = jax.random.PRNGKey(0)
    pkey, fkey = jax.random.split(key)
    params = init_params(pkey)
    w_all = fuse_params(params)

    node_order, adjacency_list, edge_order = build_forest(NUM_TREES, TREE_DEPTH)
    num_nodes = node_order.shape[0]                       # 64 trees x 15 nodes = 960
    features = jax.random.normal(fkey, (num_nodes, IN_FEATURES), jnp.float32)

    tables = build_level_tables(node_order, adjacency_list, edge_order, NUM_PARTS)
    forward = make_tree_lstm_fn(tables, w_all)

    h, c = forward(features)
    h = jax.block_until_ready(h)
    c = jax.block_until_ready(c)

    # numpy reference (mirrors the PyTorch module semantics).  Tolerance tightened vs the
    # previous version (f32 matmul at HIGHEST precision): catches gather/layout bugs.
    params_np = {k: np.asarray(v) for k, v in params.items()}
    h_ref, c_ref = ref_forward(params_np, np.asarray(features),
                               node_order, adjacency_list, edge_order)
    np.testing.assert_allclose(np.asarray(h), h_ref, rtol=1e-4, atol=1e-5)
    np.testing.assert_allclose(np.asarray(c), c_ref, rtol=1e-4, atol=1e-5)

    print("KERNEL_OK")
</pallas_src>

<mosaic_0001>
module attributes {stable_mosaic.version = 11 : i64} {
  func.func @kernel(%arg0: i32, %arg1: i32, %arg2: memref<2x4xi32, #tpu.memory_space<smem>>, %arg3: memref<1024x32xf32, #tpu.memory_space<vmem>>, %arg4: memref<128x256xf32, #tpu.memory_space<vmem>>, %arg5: memref<1024x128xf32, #tpu.memory_space<vmem>>) attributes {dimension_semantics = [#tpu.dimension_semantics<parallel>, #tpu.dimension_semantics<arbitrary>], iteration_bounds = array<i64: 2, 4>, scalar_prefetch = 1 : i64, scratch_operands = 0 : i64, tpu.core_type = #tpu.core_type<tc>, window_params = [{transform_indices = @transform_0, window_bounds = array<i64: 1024, 32>}, {pipeline_mode = #tpu.pipeline_mode<synchronous>, transform_indices = @transform_1, window_bounds = array<i64: 128, 256>}, {transform_indices = @transform_2, window_bounds = array<i64: 1024, 128>}]} {
    %c0_i32 = arith.constant 0 : i32
    %0 = arith.cmpi eq, %arg1, %c0_i32 : i32
    %1 = arith.extui %0 : i1 to i32
    %c0_i32_0 = arith.constant 0 : i32
    %2 = arith.cmpi ne, %1, %c0_i32_0 : i32
    scf.if %2 {
      %cst_14 = arith.constant 0.000000e+00 : f32
      %67 = vector.broadcast %cst_14 : f32 to vector<1024x128xf32>
      %c0_15 = arith.constant 0 : index
      %c0_16 = arith.constant 0 : index
      %68 = vector.load %arg5[%c0_15, %c0_16] : memref<1024x128xf32, #tpu.memory_space<vmem>>, vector<1024x128xf32>
      tpu.vector_store %arg5[%c0_15, %c0_16], %67 {strides = array<i32>} : memref<1024x128xf32, #tpu.memory_space<vmem>>, vector<1024x128xf32>,
    } else {
    }
    %c1_i32 = arith.constant 1 : i32
    %3 = arith.maxsi %arg1, %c1_i32 : i32
    %c1_i32_1 = arith.constant 1 : i32
    %4 = arith.subi %3, %c1_i32_1 : i32
    %c256_i32 = arith.constant 256 : i32
    %5 = arith.muli %4, %c256_i32 : i32
    %6 = arith.index_cast %arg0 : i32 to index
    %7 = arith.index_cast %arg1 : i32 to index
    %8 = memref.load %arg2[%6, %7] : memref<2x4xi32, #tpu.memory_space<smem>>
    %9 = tpu.assume_multiple %5, 8 : i32
    %10 = arith.index_cast %9 : i32 to index
    %c0 = arith.constant 0 : index
    %11 = vector.load %arg5[%10, %c0] : memref<1024x128xf32, #tpu.memory_space<vmem>>, vector<256x128xf32>
    %12 = arith.addi %5, %8 : i32
    %13 = tpu.assume_multiple %12, 8 : i32
    %14 = arith.index_cast %13 : i32 to index
    %c0_2 = arith.constant 0 : index
    %15 = vector.load %arg5[%14, %c0_2] : memref<1024x128xf32, #tpu.memory_space<vmem>>, vector<256x128xf32>
    %16 = vector.extract_strided_slice %11 {offsets = [0, 0], sizes = [256, 32], strides = [1, 1]} : vector<256x128xf32> to vector<256x32xf32>
    %17 = vector.extract_strided_slice %11 {offsets = [0, 32], sizes = [256, 32], strides = [1, 1]} : vector<256x128xf32> to vector<256x32xf32>
    %18 = vector.extract_strided_slice %15 {offsets = [0, 0], sizes = [256, 32], strides = [1, 1]} : vector<256x128xf32> to vector<256x32xf32>
    %19 = vector.extract_strided_slice %15 {offsets = [0, 32], sizes = [256, 32], strides = [1, 1]} : vector<256x128xf32> to vector<256x32xf32>
    %c256_i32_3 = arith.constant 256 : i32
    %20 = arith.muli %arg1, %c256_i32_3 : i32
    %21 = tpu.assume_multiple %20, 8 : i32
    %22 = arith.index_cast %21 : i32 to index
    %c0_4 = arith.constant 0 : index
    %23 = vector.load %arg3[%22, %c0_4] : memref<1024x32xf32, #tpu.memory_space<vmem>>, vector<256x32xf32>
    %cst = arith.constant 0.000000e+00 : f32
    %24 = vector.broadcast %cst : f32 to vector<256x32xf32>
    %25 = tpu.concatenate %23, %16, %18, %24 in 1 : vector<256x32xf32>, vector<256x32xf32>, vector<256x32xf32>, vector<256x32xf32> -> vector<256x128xf32>
    %c0_5 = arith.constant 0 : index
    %c0_6 = arith.constant 0 : index
    %26 = vector.load %arg4[%c0_5, %c0_6] : memref<128x256xf32, #tpu.memory_space<vmem>>, vector<128x256xf32>
    %cst_7 = arith.constant dense<0.000000e+00> : vector<256x256xf32>
    %27 = tpu.matmul %25, %26, %cst_7 {dimension_numbers = #tpu.dot_dimension_numbers<[1], [0], [0], [1], [0, 0, 1, 1], [], []>, precision = #tpu.contract_precision<fp32>} : vector<256x128xf32>, vector<128x256xf32>, vector<256x256xf32> -> vector<256x256xf32>
    %28 = vector.extract_strided_slice %27 {offsets = [0, 0], sizes = [256, 32], strides = [1, 1]} : vector<256x256xf32> to vector<256x32xf32>
    %29 = arith.negf %28 : vector<256x32xf32>
    %30 = math.exp %29 : vector<256x32xf32>
    %cst_8 = arith.constant 1.000000e+00 : f32
    %31 = vector.broadcast %cst_8 : f32 to vector<256x32xf32>
    %32 = arith.addf %31, %30 : vector<256x32xf32>
    %33 = arith.divf %31, %32 : vector<256x32xf32>
    %34 = vector.extract_strided_slice %27 {offsets = [0, 32], sizes = [256, 32], strides = [1, 1]} : vector<256x256xf32> to vector<256x32xf32>
    %35 = arith.negf %34 : vector<256x32xf32>
    %36 = math.exp %35 : vector<256x32xf32>
    %cst_9 = arith.constant 1.000000e+00 : f32
    %37 = vector.broadcast %cst_9 : f32 to vector<256x32xf32>
    %38 = arith.addf %37, %36 : vector<256x32xf32>
    %39 = arith.divf %37, %38 : vector<256x32xf32>
    %40 = vector.extract_strided_slice %27 {offsets = [0, 64], sizes = [256, 32], strides = [1, 1]} : vector<256x256xf32> to vector<256x32xf32>
    %41 = math.tanh %40 : vector<256x32xf32>
    %42 = vector.extract_strided_slice %27 {offsets = [0, 96], sizes = [256, 128], strides = [1, 1]} : vector<256x256xf32> to vector<256x128xf32>
    %43 = arith.negf %42 : vector<256x128xf32>
    %44 = math.exp %43 : vector<256x128xf32>
    %cst_10 = arith.constant 1.000000e+00 : f32
    %45 = vector.broadcast %cst_10 : f32 to vector<256x128xf32>
    %46 = arith.addf %45, %44 : vector<256x128xf32>
    %47 = arith.divf %45, %46 : vector<256x128xf32>
    %48 = arith.mulf %33, %41 : vector<256x32xf32>
    %49 = vector.extract_strided_slice %47 {offsets = [0, 0], sizes = [256, 32], strides = [1, 1]} : vector<256x128xf32> to vector<256x32xf32>
    %50 = vector.extract_strided_slice %47 {offsets = [0, 32], sizes = [256, 32], strides = [1, 1]} : vector<256x128xf32> to vector<256x32xf32>
    %51 = arith.addf %49, %50 : vector<256x32xf32>
    %52 = arith.mulf %51, %17 : vector<256x32xf32>
    %53 = arith.addf %48, %52 : vector<256x32xf32>
    %54 = vector.extract_strided_slice %47 {offsets = [0, 64], sizes = [256, 32], strides = [1, 1]} : vector<256x128xf32> to vector<256x32xf32>
    %55 = vector.extract_strided_slice %47 {offsets = [0, 96], sizes = [256, 32], strides = [1, 1]} : vector<256x128xf32> to vector<256x32xf32>
    %56 = arith.addf %54, %55 : vector<256x32xf32>
    %57 = arith.mulf %56, %19 : vector<256x32xf32>
    %58 = arith.addf %53, %57 : vector<256x32xf32>
    %59 = math.tanh %58 : vector<256x32xf32>
    %60 = arith.mulf %39, %59 : vector<256x32xf32>
    %c256_i32_11 = arith.constant 256 : i32
    %61 = arith.muli %arg1, %c256_i32_11 : i32
    %62 = tpu.assume_multiple %61, 8 : i32
    %cst_12 = arith.constant 0.000000e+00 : f32
    %63 = vector.broadcast %cst_12 : f32 to vector<256x64xf32>
    %64 = tpu.concatenate %60, %58, %63 in 1 : vector<256x32xf32>, vector<256x32xf32>, vector<256x64xf32> -> vector<256x128xf32>
    %65 = arith.index_cast %62 : i32 to index
    %c0_13 = arith.constant 0 : index
    %66 = vector.load %arg5[%65, %c0_13] : memref<1024x128xf32, #tpu.memory_space<vmem>>, vector<256x128xf32>
    tpu.vector_store %arg5[%65, %c0_13], %64 {strides = array<i32>} : memref<1024x128xf32, #tpu.memory_space<vmem>>, vector<256x128xf32>,
    return
  }
  func.func @transform_0(%arg0: i32, %arg1: i32, %arg2: memref<2x4xi32, #tpu.memory_space<smem>>) -> (i32, i32) {
    %c0_i32 = arith.constant 0 : i32
    %c0_i32_0 = arith.constant 0 : i32
    return %arg0, %c0_i32 : i32, i32
  }
  func.func @transform_1(%arg0: i32, %arg1: i32, %arg2: memref<2x4xi32, #tpu.memory_space<smem>>) -> (i32, i32) {
    %c0_i32 = arith.constant 0 : i32
    %c0_i32_0 = arith.constant 0 : i32
    %c0_i32_1 = arith.constant 0 : i32
    return %c0_i32, %c0_i32_0 : i32, i32
  }
  func.func @transform_2(%arg0: i32, %arg1: i32, %arg2: memref<2x4xi32, #tpu.memory_space<smem>>) -> (i32, i32) {
    %c0_i32 = arith.constant 0 : i32
    %c0_i32_0 = arith.constant 0 : i32
    return %arg0, %c0_i32 : i32, i32
  }
}

</mosaic_0001>

<bundles_post_ra>
// kernel: forward.1
= control target key start
LH: loop header
LB: loop body
LE: loop exit
PB: predicated region body
PF: predicated region fallthrough
CT: control target
= control target key end

     0   :  { %s9098_s0 = inlined_call_operand.vmem [shape: s32[2,4], index: 0, kind: input, shape index: {}]   ;;  %s9099_s1 = inlined_call_operand.vmem [shape: f32[2048,32], index: 1, kind: input, shape index: {}]   ;;  %s9100_s2 = inlined_call_operand.vmem [shape: f32[128,256], index: 2, kind: input, shape index: {}]   ;;  %s9101_s3 = inlined_call_operand.vmem [shape: f32[2048,128], index: 3, kind: output, shape index: {}]  }
   0x1   :  { %s8_s14 = sshll.u32 %s9098_s0, 4  ;;  %s9_s14 = int_to_ptr.vmem [resolvable:$true] %s8_s14 }
   0x2   :  { %s6110_s15 = scalar_lea.vmem %s9_s14, 32  ;;  %p6115_p1 = scmp.lt.s32.totalorder %s9_s14, %s9_s14 }
   0x3   :  { %p6111_p0 = scmp.ne.s32.totalorder %s9_s14, %s6110_s15  ;;  %p6116_p2 = scmp.lt.s32.totalorder %s6110_s15, %s6110_s15 }
   0x5   :  { %p6117_p3 = por %p6116_p2, %p6115_p1 }
   0x7   :  { %p6118_p4 = pnand %p6117_p3, %p6111_p0 }
   0x9   :  { %6121 = shalt.err (!%p6118_p4)  }
   0xa   :  { %s6164_s16 = smov [#allocation3]  }
   0xb   :  { %11 = dma.vmem_to_smem %s9_s14, 32, %s6164_s16, [#allocation2] }
   0xc   :  { %6142 = dma.done.wait [#allocation2], 32 }
   0xd   :  { %6143 = vsyncadd [#allocation2], 4294967264 }
   0xe   :  { %13 = sfence }
   0xf   :  { %s6193_s17 = smov 0   ;;  %s6195_s18 = smov 0  }
  0x10   :  { %s6197_s19 = smov 0   ;;  %s6199_s0 = smov 0  }
  0x11   :  { %s6201_s20 = smov 0  }
  0x12 LB: > { %s28_s21 = sadd.s32 1, %s6154_s19  ;;  %s31_s22 = sadd.s32 1, %s6158_s0  ;;  %s6162_s20 = sphi %s6201_s20, %s19_s20   ;;  %s6158_s0 = sphi %s6199_s0, %s9500_s0   ;;  %s6154_s19 = sphi %s6197_s19, %s9499_s19   ;;  %s6150_s18 = sphi %s6195_s18, %s9498_s18   ;;  %s6146_s17 = sphi %s6193_s17, %s9497_s17  }
  0x13   : > { %p29_p5 = scmp.ge.s32.totalorder %s28_s21, 4  ;;  %p5046_p6 = scmp.ge.s32.totalorder %s6162_s20, 1 }
  0x14   : > { %p132_p7 = scmp.lt.s32.totalorder %s6162_s20, 9 }
  0x15   : > { %s9502_s21 = smov (%p29_p5, %s28_s21), 0  ;;  %s9504_s22 = smov (!%p29_p5, %s31_s22), %s6158_s0 }
  0x16   : > { %p133_p8 = pnand %p5046_p6, %p132_p7  ;;  %p33_p9 = scmp.ge.s32.totalorder %s9504_s22, 2 }
  0x18   : > { %s9506_s22 = smov (%p33_p9, %s9504_s22), 0  ;;  %136 = sbr.rel (%p133_p8) target bundleno = 1386 (0x56a), region = 28 }
  0x1f   : > { %s5047_s23 = sshll.u32 %s6150_s18, 7  ;;  %p5051_p11 = scmp.ne.s32.totalorder %s6146_s17, 0 }
  0x20   : > { %p155_p10 = scmp.lt.s32.totalorder %s5047_s23, 255  ;;  %v6165_v0 = vmov (!%p5051_p11), 0.0  }
  0x21   : > { %169 = sbr.rel (%p5051_p11) target bundleno = 101 (0x65), region = 32 }
  0x22   : > { %s9508_s23 = smov (!%p155_p10, %s5047_s23), 255 }
  0x23   : > { %s5048_s24 = sshll.u32 %s9508_s23, 3 }
  0x24   : > { %s6231_s27 = scalar_lea.vmem %s9099_s1, %s5048_s24  ;;  %s6236_s30 = scalar_lea.vmem %s9101_s3, %s5048_s24 }
  0x25   : > { %170 = vst [vmem:[%s6236_s30] sm:$0xff] (!%p5051_p11), %v6165_v0  ;;  %171 = vst [vmem:[%s6236_s30 + $0x8] sm:$0xff] (!%p5051_p11), %v6165_v0 }
  0x26   : > { %172 = vst [vmem:[%s6236_s30 + $0x10] sm:$0xff] (!%p5051_p11), %v6165_v0  ;;  %173 = vst [vmem:[%s6236_s30 + $0x18] sm:$0xff] (!%p5051_p11), %v6165_v0 }
  0x27   : > { %174 = vst [vmem:[%s6236_s30 + $0x20] sm:$0xff] (!%p5051_p11), %v6165_v0  ;;  %175 = vst [vmem:[%s6236_s30 + $0x28] sm:$0xff] (!%p5051_p11), %v6165_v0 }
  0x28   : > { %176 = vst [vmem:[%s6236_s30 + $0x30] sm:$0xff] %v6165_v0  ;;  %177 = vst [vmem:[%s6236_s30 + $0x38] sm:$0xff] %v6165_v0 }
  0x29   : > { %178 = vst [vmem:[%s6236_s30 + $0x40] sm:$0xff] %v6165_v0  ;;  %179 = vst [vmem:[%s6236_s30 + $0x48] sm:$0xff] %v6165_v0 }
  0x2a   : > { %180 = vst [vmem:[%s6236_s30 + $0x50] sm:$0xff] %v6165_v0  ;;  %181 = vst [vmem:[%s6236_s30 + $0x58] sm:$0xff] %v6165_v0 }
  0x2b   : > { %182 = vst [vmem:[%s6236_s30 + $0x60] sm:$0xff] %v6165_v0  ;;  %183 = vst [vmem:[%s6236_s30 + $0x68] sm:$0xff] %v6165_v0 }
  0x2c   : > { %184 = vst [vmem:[%s6236_s30 + $0x70] sm:$0xff] %v6165_v0  ;;  %185 = vst [vmem:[%s6236_s30 + $0x78] sm:$0xff] %v6165_v0 }
  0x2d   : > { %186 = vst [vmem:[%s6236_s30 + $0x80] sm:$0xff] %v6165_v0  ;;  %187 = vst [vmem:[%s6236_s30 + $0x88] sm:$0xff] %v6165_v0 }
  0x2e   : > { %188 = vst [vmem:[%s6236_s30 + $0x90] sm:$0xff] %v6165_v0  ;;  %189 = vst [vmem:[%s6236_s30 + $0x98] sm:$0xff] %v6165_v0 }
  0x2f   : > { %190 = vst [vmem:[%s6236_s30 + $0xa0] sm:$0xff] %v6165_v0  ;;  %191 = vst [vmem:[%s6236_s30 + $0xa8] sm:$0xff] %v6165_v0 }
  0x30   : > { %192 = vst [vmem:[%s6236_s30 + $0xb0] sm:$0xff] %v6165_v0  ;;  %193 = vst [vmem:[%s6236_s30 + $0xb8] sm:$0xff] %v6165_v0 }
  0x31   : > { %194 = vst [vmem:[%s6236_s30 + $0xc0] sm:$0xff] %v6165_v0  ;;  %195 = vst [vmem:[%s6236_s30 + $0xc8] sm:$0xff] %v6165_v0 }
  0x32   : > { %196 = vst [vmem:[%s6236_s30 + $0xd0] sm:$0xff] %v6165_v0  ;;  %197 = vst [vmem:[%s6236_s30 + $0xd8] sm:$0xff] %v6165_v0 }
  0x33   : > { %198 = vst [vmem:[%s6236_s30 + $0xe0] sm:$0xff] %v6165_v0  ;;  %199 = vst [vmem:[%s6236_s30 + $0xe8] sm:$0xff] %v6165_v0 }
  0x34   : > { %200 = vst [vmem:[%s6236_s30 + $0xf0] sm:$0xff] %v6165_v0  ;;  %201 = vst [vmem:[%s6236_s30 + $0xf8] sm:$0xff] %v6165_v0 }
  0x35   : > { %202 = vst [vmem:[%s6236_s30 + $0x100] sm:$0xff] %v6165_v0  ;;  %203 = vst [vmem:[%s6236_s30 + $0x108] sm:$0xff] %v6165_v0 }
  0x36   : > { %204 = vst [vmem:[%s6236_s30 + $0x110] sm:$0xff] %v6165_v0  ;;  %205 = vst [vmem:[%s6236_s30 + $0x118] sm:$0xff] %v6165_v0 }
  0x37   : > { %206 = vst [vmem:[%s6236_s30 + $0x120] sm:$0xff] %v6165_v0  ;;  %207 = vst [vmem:[%s6236_s30 + $0x128] sm:$0xff] %v6165_v0 }
  0x38   : > { %208 = vst [vmem:[%s6236_s30 + $0x130] sm:$0xff] %v6165_v0  ;;  %209 = vst [vmem:[%s6236_s30 + $0x138] sm:$0xff] %v6165_v0 }
  0x39   : > { %210 = vst [vmem:[%s6236_s30 + $0x140] sm:$0xff] %v6165_v0  ;;  %211 = vst [vmem:[%s6236_s30 + $0x148] sm:$0xff] %v6165_v0 }
  0x3a   : > { %212 = vst [vmem:[%s6236_s30 + $0x150] sm:$0xff] %v6165_v0  ;;  %213 = vst [vmem:[%s6236_s30 + $0x158] sm:$0xff] %v6165_v0 }
  0x3b   : > { %214 = vst [vmem:[%s6236_s30 + $0x160] sm:$0xff] %v6165_v0  ;;  %215 = vst [vmem:[%s6236_s30 + $0x168] sm:$0xff] %v6165_v0 }
  0x3c   : > { %216 = vst [vmem:[%s6236_s30 + $0x170] sm:$0xff] %v6165_v0  ;;  %217 = vst [vmem:[%s6236_s30 + $0x178] sm:$0xff] %v6165_v0 }
  0x3d   : > { %218 = vst [vmem:[%s6236_s30 + $0x180] sm:$0xff] %v6165_v0  ;;  %219 = vst [vmem:[%s6236_s30 + $0x188] sm:$0xff] %v6165_v0 }
  0x3e   : > { %220 = vst [vmem:[%s6236_s30 + $0x190] sm:$0xff] %v6165_v0  ;;  %221 = vst [vmem:[%s6236_s30 + $0x198] sm:$0xff] %v6165_v0 }
  0x3f   : > { %222 = vst [vmem:[%s6236_s30 + $0x1a0] sm:$0xff] %v6165_v0  ;;  %223 = vst [vmem:[%s6236_s30 + $0x1a8] sm:$0xff] %v6165_v0 }
  0x40   : > { %224 = vst [vmem:[%s6236_s30 + $0x1b0] sm:$0xff] %v6165_v0  ;;  %225 = vst [vmem:[%s6236_s30 + $0x1b8] sm:$0xff] %v6165_v0 }
  0x41   : > { %226 = vst [vmem:[%s6236_s30 + $0x1c0] sm:$0xff] %v6165_v0  ;;  %227 = vst [vmem:[%s6236_s30 + $0x1c8] sm:$0xff] %v6165_v0 }
  0x42   : > { %228 = vst [vmem:[%s6236_s30 + $0x1d0] sm:$0xff] %v6165_v0  ;;  %229 = vst [vmem:[%s6236_s30 + $0x1d8] sm:$0xff] %v6165_v0 }
  0x43   : > { %230 = vst [vmem:[%s6236_s30 + $0x1e0] sm:$0xff] %v6165_v0  ;;  %231 = vst [vmem:[%s6236_s30 + $0x1e8] sm:$0xff] %v6165_v0 }
  0x44   : > { %232 = vst [vmem:[%s6236_s30 + $0x1f0] sm:$0xff] %v6165_v0  ;;  %233 = vst [vmem:[%s6236_s30 + $0x1f8] sm:$0xff] %v6165_v0 }
  0x45   : > { %234 = vst [vmem:[%s6236_s30 + $0x200] sm:$0xff] %v6165_v0  ;;  %235 = vst [vmem:[%s6236_s30 + $0x208] sm:$0xff] %v6165_v0 }
  0x46   : > { %236 = vst [vmem:[%s6236_s30 + $0x210] sm:$0xff] %v6165_v0  ;;  %237 = vst [vmem:[%s6236_s30 + $0x218] sm:$0xff] %v6165_v0 }
  0x47   : > { %238 = vst [vmem:[%s6236_s30 + $0x220] sm:$0xff] %v6165_v0  ;;  %239 = vst [vmem:[%s6236_s30 + $0x228] sm:$0xff] %v6165_v0 }
  0x48   : > { %240 = vst [vmem:[%s6236_s30 + $0x230] sm:$0xff] %v6165_v0  ;;  %241 = vst [vmem:[%s6236_s30 + $0x238] sm:$0xff] %v6165_v0 }
  0x49   : > { %242 = vst [vmem:[%s6236_s30 + $0x240] sm:$0xff] %v6165_v0  ;;  %243 = vst [vmem:[%s6236_s30 + $0x248] sm:$0xff] %v6165_v0 }
  0x4a   : > { %244 = vst [vmem:[%s6236_s30 + $0x250] sm:$0xff] %v6165_v0  ;;  %245 = vst [vmem:[%s6236_s30 + $0x258] sm:$0xff] %v6165_v0 }
  0x4b   : > { %246 = vst [vmem:[%s6236_s30 + $0x260] sm:$0xff] %v6165_v0  ;;  %247 = vst [vmem:[%s6236_s30 + $0x268] sm:$0xff] %v6165_v0 }
  0x4c   : > { %248 = vst [vmem:[%s6236_s30 + $0x270] sm:$0xff] %v6165_v0  ;;  %249 = vst [vmem:[%s6236_s30 + $0x278] sm:$0xff] %v6165_v0 }
  0x4d   : > { %250 = vst [vmem:[%s6236_s30 + $0x280] sm:$0xff] %v6165_v0  ;;  %251 = vst [vmem:[%s6236_s30 + $0x288] sm:$0xff] %v6165_v0 }
  0x4e   : > { %252 = vst [vmem:[%s6236_s30 + $0x290] sm:$0xff] %v6165_v0  ;;  %253 = vst [vmem:[%s6236_s30 + $0x298] sm:$0xff] %v6165_v0 }
  0x4f   : > { %254 = vst [vmem:[%s6236_s30 + $0x2a0] sm:$0xff] %v6165_v0  ;;  %255 = vst [vmem:[%s6236_s30 + $0x2a8] sm:$0xff] %v6165_v0 }
  0x50   : > { %256 = vst [vmem:[%s6236_s30 + $0x2b0] sm:$0xff] %v6165_v0  ;;  %257 = vst [vmem:[%s6236_s30 + $0x2b8] sm:$0xff] %v6165_v0 }
  0x51   : > { %258 = vst [vmem:[%s6236_s30 + $0x2c0] sm:$0xff] %v6165_v0  ;;  %259 = vst [vmem:[%s6236_s30 + $0x2c8] sm:$0xff] %v6165_v0 }
  0x52   : > { %260 = vst [vmem:[%s6236_s30 + $0x2d0] sm:$0xff] %v6165_v0  ;;  %261 = vst [vmem:[%s6236_s30 + $0x2d8] sm:$0xff] %v6165_v0 }
  0x53   : > { %262 = vst [vmem:[%s6236_s30 + $0x2e0] sm:$0xff] %v6165_v0  ;;  %263 = vst [vmem:[%s6236_s30 + $0x2e8] sm:$0xff] %v6165_v0 }
  0x54   : > { %264 = vst [vmem:[%s6236_s30 + $0x2f0] sm:$0xff] %v6165_v0  ;;  %265 = vst [vmem:[%s6236_s30 + $0x2f8] sm:$0xff] %v6165_v0 }
  0x55   : > { %266 = vst [vmem:[%s6236_s30 + $0x300] sm:$0xff] %v6165_v0  ;;  %267 = vst [vmem:[%s6236_s30 + $0x308] sm:$0xff] %v6165_v0 }
  0x56   : > { %268 = vst [vmem:[%s6236_s30 + $0x310] sm:$0xff] %v6165_v0  ;;  %269 = vst [vmem:[%s6236_s30 + $0x318] sm:$0xff] %v6165_v0 }
  0x57   : > { %270 = vst [vmem:[%s6236_s30 + $0x320] sm:$0xff] %v6165_v0  ;;  %271 = vst [vmem:[%s6236_s30 + $0x328] sm:$0xff] %v6165_v0 }
  0x58   : > { %272 = vst [vmem:[%s6236_s30 + $0x330] sm:$0xff] %v6165_v0  ;;  %273 = vst [vmem:[%s6236_s30 + $0x338] sm:$0xff] %v6165_v0 }
  0x59   : > { %274 = vst [vmem:[%s6236_s30 + $0x340] sm:$0xff] %v6165_v0  ;;  %275 = vst [vmem:[%s6236_s30 + $0x348] sm:$0xff] %v6165_v0 }
  0x5a   : > { %276 = vst [vmem:[%s6236_s30 + $0x350] sm:$0xff] %v6165_v0  ;;  %277 = vst [vmem:[%s6236_s30 + $0x358] sm:$0xff] %v6165_v0 }
  0x5b   : > { %278 = vst [vmem:[%s6236_s30 + $0x360] sm:$0xff] %v6165_v0  ;;  %279 = vst [vmem:[%s6236_s30 + $0x368] sm:$0xff] %v6165_v0 }
  0x5c   : > { %280 = vst [vmem:[%s6236_s30 + $0x370] sm:$0xff] %v6165_v0  ;;  %281 = vst [vmem:[%s6236_s30 + $0x378] sm:$0xff] %v6165_v0 }
  0x5d   : > { %282 = vst [vmem:[%s6236_s30 + $0x380] sm:$0xff] %v6165_v0  ;;  %283 = vst [vmem:[%s6236_s30 + $0x388] sm:$0xff] %v6165_v0 }
  0x5e   : > { %284 = vst [vmem:[%s6236_s30 + $0x390] sm:$0xff] %v6165_v0  ;;  %285 = vst [vmem:[%s6236_s30 + $0x398] sm:$0xff] %v6165_v0 }
  0x5f   : > { %286 = vst [vmem:[%s6236_s30 + $0x3a0] sm:$0xff] %v6165_v0  ;;  %287 = vst [vmem:[%s6236_s30 + $0x3a8] sm:$0xff] %v6165_v0 }
  0x60   : > { %288 = vst [vmem:[%s6236_s30 + $0x3b0] sm:$0xff] %v6165_v0  ;;  %289 = vst [vmem:[%s6236_s30 + $0x3b8] sm:$0xff] %v6165_v0 }
  0x61   : > { %290 = vst [vmem:[%s6236_s30 + $0x3c0] sm:$0xff] %v6165_v0  ;;  %291 = vst [vmem:[%s6236_s30 + $0x3c8] sm:$0xff] %v6165_v0 }
  0x62   : > { %292 = vst [vmem:[%s6236_s30 + $0x3d0] sm:$0xff] %v6165_v0  ;;  %293 = vst [vmem:[%s6236_s30 + $0x3d8] sm:$0xff] %v6165_v0 }
  0x63   : > { %294 = vst [vmem:[%s6236_s30 + $0x3e0] sm:$0xff] %v6165_v0  ;;  %295 = vst [vmem:[%s6236_s30 + $0x3e8] sm:$0xff] %v6165_v0 }
  0x64   : > { %296 = vst [vmem:[%s6236_s30 + $0x3f0] sm:$0xff] %v6165_v0  ;;  %297 = vst [vmem:[%s6236_s30 + $0x3f8] sm:$0xff] %v6165_v0 }
  0x65 PF: > { %p298_p12 = scmp.gt.s32.totalorder %s6146_s17, 1  ;;  %v6499_v1 = vld [vmem:[%s9100_s2 + $0x8] sm:$0xff]  ;;  %v6504_v2 = vld [vmem:[%s9100_s2 + $0x18] sm:$0xff]  ;;  %v766_v3 = vld [vmem:[%s9100_s2] sm:$0xff]  ;;  %s302_s10 = sshra.s32 %s6146_s17, 7  ;;  %v9102_v56 = vmov 0.0  }
  0x66   : > { %s307_s11 = sand.u32 127, %s6146_s17  ;;  %v798_v4 = vand.u32 4294901760, %v6499_v1  ;;  %v802_v5 = vand.u32 4294901760, %v6504_v2  ;;  %v768_v6 = vld [vmem:[%s9100_s2 + $0x10] sm:$0xff]  ;;  %v800_v7 = vand.u32 4294901760, %v766_v3  ;;  %v771_v9 = vld [vmem:[%s9100_s2 + $0x28] sm:$0xff]  ;;  %s304_s28 = sadd.s32 %s6150_s18, %s302_s10  ;;  %2177 = vmatprep.mubr.f32.mxu0 %v9102_v56  ;;  %894 = vmatprep.mubr.f32.mxu1 %v9102_v56 }
  0x67   : > { %s299_s14 = scalar_select %p298_p12, %s6146_s17, 1  ;;  %v804_v8 = vand.u32 4294901760, %v768_v6  ;;  %v773_v10 = vld [vmem:[%s9100_s2 + $0x38] sm:$0xff]  ;;  %v770_v11 = vld [vmem:[%s9100_s2 + $0x20] sm:$0xff]  ;;  %v772_v14 = vld [vmem:[%s9100_s2 + $0x30] sm:$0xff]  ;;  %v806_v19 = vand.u32 4294901760, %v771_v9 }
  0x68   : > { %v6531_v12 = vpack.c.bf16 %v802_v5, %v798_v4  ;;  %v6533_v13 = vsub.f32 %v766_v3, %v800_v7  ;;  %v775_v15 = vld [vmem:[%s9100_s2 + $0x48] sm:$0xff]  ;;  %v777_v16 = vld [vmem:[%s9100_s2 + $0x58] sm:$0xff]  ;;  %s5054_s9 = sshll.u32 %s304_s28, 7  ;;  %v810_v20 = vand.u32 4294901760, %v773_v10  ;;  %v774_v21 = vld [vmem:[%s9100_s2 + $0x40] sm:$0xff]  ;;  %v808_v22 = vand.u32 4294901760, %v770_v11 }
  0x69   : > { %s5052_s18 = sadd.s32 4294967295, %s299_s14  ;;  %v6544_v17 = vpack.c.bf16 %v804_v8, %v800_v7  ;;  %v6546_v18 = vsub.f32 %v768_v6, %v804_v8  ;;  %s308_s15 = sadd.s32 %s5054_s9, %s307_s11  ;;  %v812_v23 = vand.u32 4294901760, %v772_v14  ;;  %v814_v24 = vand.u32 4294901760, %v775_v15  ;;  %v776_v26 = vld [vmem:[%s9100_s2 + $0x50] sm:$0xff]  ;;  %v779_v31 = vld [vmem:[%s9100_s2 + $0x68] sm:$0xff]  ;;  %v781_v32 = vld [vmem:[%s9100_s2 + $0x78] sm:$0xff] }
  0x6a   : > { %9200 = vst [vmem:[#allocation5_spill] sm:$0xff] %v6533_v13  ;;  %s6551_s13 = sshll.u32 %s5052_s18, 8  ;;  %5219 = vmatprep.subr.bf16.mxu0 %v6531_v12  ;;  %5123 = vmatprep.subr.bf16.mxu1 %v6531_v12  ;;  %v818_v25 = vand.u32 4294901760, %v777_v16  ;;  %s6562_s24 = sld [smem:[#allocation3 + %s308_s15]]  ;;  %v6566_v27 = vpack.c.bf16 %v810_v20, %v806_v19  ;;  %v6568_v28 = vsub.f32 %v771_v9, %v806_v19  ;;  %v816_v30 = vand.u32 4294901760, %v774_v21  ;;  %v778_v33 = vld [vmem:[%s9100_s2 + $0x60] sm:$0xff] }
  0x6b   : > { %9201 = vst [vmem:[#allocation6_spill] sm:$0xff] %v6544_v17  ;;  %9202 = vst [vmem:[#allocation7_spill] sm:$0xff] %v6546_v18  ;;  %s6560_s23 = scalar_lea.vmem %s6236_s30, %s6551_s13  ;;  %5221 = vmatpush1.bf16.msra.mxu0 %v6544_v17  ;;  %5125 = vmatpush1.bf16.msra.mxu1 %v6544_v17  ;;  %v6570_v29 = vsub.f32 %v773_v10, %v810_v20  ;;  %v6587_v36 = vpack.c.bf16 %v812_v23, %v808_v22  ;;  %v780_v40 = vld [vmem:[%s9100_s2 + $0x70] sm:$0xff]  ;;  %s6166_s7 = smov 32   ;;  %v820_v43 = vand.u32 4294901760, %v776_v26  ;;  %v783_v9 = vld [vmem:[%s9100_s2 + $0x88] sm:$0xff] }
  0x6c   : > { %9203 = vst [vmem:[#allocation8_spill] sm:$0xff] %v6566_v27  ;;  %9204 = vst [vmem:[#allocation9_spill] sm:$0xff] %v6568_v28  ;;  %v6582_v34 = vld [vmem:[%s6560_s23 + $0x8] sm:$0xff]  ;;  %v6585_v35 = vld [vmem:[%s6560_s23] sm:$0xff]  ;;  %v6589_v37 = vsub.f32 %v770_v11, %v808_v22  ;;  %v6591_v38 = vsub.f32 %v772_v14, %v812_v23  ;;  %v6593_v39 = vpack.c.bf16 %v818_v25, %v814_v24  ;;  %5223 = vmatprep.subr.bf16.mxu0 %v6566_v27  ;;  %s6168_s9 = smov 64   ;;  %vm667_vm0 = vcmask 261120  }
  0x6d   : > { %9205 = vst [vmem:[#allocation10_spill] sm:$0xff] %v6570_v29  ;;  %9206 = vst [vmem:[#allocation11_spill] sm:$0xff] %v6587_v36  ;;  %445 = vrot.lane.b32.xlu1 %v6582_v34, %s6166_s7  ;;  %443 = vrot.lane.b32.xlu0 %v6585_v35, %s6166_s7  ;;  %v6602_v41 = vsub.f32 %v775_v15, %v814_v24  ;;  %v6604_v42 = vsub.f32 %v777_v16, %v818_v25  ;;  %v822_v45 = vand.u32 4294901760, %v779_v31  ;;  %v6644_v60 = vld [vmem:[%s6560_s23 + $0x10] sm:$0xff]  ;;  %v314_v62 = vld [vmem:[%s6560_s23 + $0x18] sm:$0xff]  ;;  %s5055_s10 = sshll.u32 %s6146_s17, 8 }
  0x6e   : > { %9207 = vst [vmem:[#allocation12_spill] sm:$0xff] %v6589_v37  ;;  %9208 = vst [vmem:[#allocation13_spill] sm:$0xff] %v6591_v38  ;;  %v6606_v44 = vsub.f32 %v774_v21, %v816_v30  ;;  %5127 = vmatprep.subr.bf16.mxu1 %v6566_v27  ;;  %v826_v46 = vand.u32 4294901760, %v781_v32  ;;  %v6612_v47 = vpack.c.bf16 %v820_v43, %v816_v30  ;;  %v824_v49 = vand.u32 4294901760, %v778_v33  ;;  %v315_v0 = vld [vmem:[%s6560_s23 + $0x20] sm:$0xff]  ;;  %v316_v8 = vld [vmem:[%s6560_s23 + $0x28] sm:$0xff]  ;;  %s6959_s12 = scalar_lea.vmem %s6231_s27, %s5055_s10 }
  0x6f   : > { %9209 = vst [vmem:[#allocation14_spill] sm:$0xff] %v6593_v39  ;;  %9210 = vst [vmem:[#allocation15_spill] sm:$0xff] %v6602_v41  ;;  %5225 = vmatpush1.bf16.msra.mxu0 %v6587_v36  ;;  %5129 = vmatpush1.bf16.msra.mxu1 %v6587_v36  ;;  %v6614_v48 = vsub.f32 %v776_v26, %v820_v43  ;;  %v828_v50 = vand.u32 4294901760, %v780_v40  ;;  %v6618_v51 = vsub.f32 %v779_v31, %v822_v45  ;;  %v785_v10 = vld [vmem:[%s9100_s2 + $0x98] sm:$0xff]  ;;  %v787_v23 = vld [vmem:[%s9100_s2 + $0xa8] sm:$0xff]  ;;  %vm700_vm1 = vcmask 523264  }
  0x70   : > { %9211 = vst [vmem:[#allocation16_spill] sm:$0xff] %v6604_v42  ;;  %9212 = vst [vmem:[#allocation17_spill] sm:$0xff] %v6606_v44  ;;  %5227 = vmatprep.subr.bf16.mxu0 %v6593_v39  ;;  %5131 = vmatprep.subr.bf16.mxu1 %v6593_v39  ;;  %v6620_v52 = vsub.f32 %v781_v32, %v826_v46  ;;  %s343_s8 = sadd.s32 %s6551_s13, %s6562_s24  ;;  %v6624_v53 = vpack.c.bf16 %v826_v46, %v822_v45  ;;  %v834_v11 = vand.u32 4294901760, %v785_v10  ;;  %v789_v24 = vld [vmem:[%s9100_s2 + $0xb8] sm:$0xff]  ;;  %v786_v25 = vld [vmem:[%s9100_s2 + $0xa0] sm:$0xff]  ;;  %vm733_vm2 = vcmask 785408  }
  0x71   : > { %9213 = vst [vmem:[#allocation18_spill] sm:$0xff] %v6612_v47  ;;  %9214 = vst [vmem:[#allocation19_spill] sm:$0xff] %v6614_v48  ;;  %v6626_v54 = vsub.f32 %v778_v33, %v824_v49  ;;  %v6628_v55 = vsub.f32 %v780_v40, %v828_v50  ;;  %s6633_s18 = scalar_lea.vmem %s6236_s30, %s343_s8  ;;  %v6639_v59 = vpack.c.bf16 %v828_v50, %v824_v49  ;;  %v317_v26 = vld [vmem:[%s6560_s23 + $0x30] sm:$0xff]  ;;  %v838_v33 = vand.u32 4294901760, %v787_v23  ;;  %v791_v50 = vld [vmem:[%s9100_s2 + $0xc8] sm:$0xff]  ;;  %s6169_s27 = smov 96  }
  0x72   : > { %9215 = vst [vmem:[#allocation20_spill] sm:$0xff] %v6620_v52  ;;  %9216 = vst [vmem:[#allocation21_spill] sm:$0xff] %v6624_v53  ;;  %v346_v57 = vld [vmem:[%s6633_s18 + $0x8] sm:$0xff]  ;;  %v345_v58 = vld [vmem:[%s6633_s18] sm:$0xff]  ;;  %v6663_v6 = vsub.f32 %v6499_v1, %v798_v4  ;;  %v6668_v7 = vsub.f32 %v6504_v2, %v802_v5  ;;  %v830_v4 = vand.u32 4294901760, %v783_v9  ;;  %v6692_v22 = vsub.f32 %v785_v10, %v834_v11 }
  0x73   : > { %9217 = vst [vmem:[#allocation22_spill] sm:$0xff] %v6626_v54  ;;  %9218 = vst [vmem:[#allocation23_spill] sm:$0xff] %v6628_v55  ;;  %5229 = vmatpush1.bf16.msra.mxu0 %v6612_v47  ;;  %5133 = vmatpush1.bf16.msra.mxu1 %v6612_v47  ;;  %v347_v61 = vld [vmem:[%s6633_s18 + $0x10] sm:$0xff]  ;;  %v348_v63 = vld [vmem:[%s6633_s18 + $0x18] sm:$0xff]  ;;  %v842_v45 = vand.u32 4294901760, %v789_v24  ;;  %v840_v46 = vand.u32 4294901760, %v786_v25 }
  0x74   : > { %9219 = vst [vmem:[#allocation24_spill] sm:$0xff] %v6639_v59  ;;  %573 = vrot.lane.b32.xlu1 %v346_v57, %s6168_s9  ;;  %571 = vrot.lane.b32.xlu0 %v345_v58, %s6168_s9  ;;  %v349_v3 = vld [vmem:[%s6633_s18 + $0x20] sm:$0xff]  ;;  %v350_v1 = vld [vmem:[%s6633_s18 + $0x28] sm:$0xff]  ;;  %v9105_v14 = vand.u32 4294901760, %v6663_v6  ;;  %v9104_v19 = vand.u32 4294901760, %v6668_v7  ;;  %v6688_v20 = vpack.c.bf16 %v834_v11, %v830_v4  ;;  %v6690_v21 = vsub.f32 %v783_v9, %v830_v4 }
  0x75   : > { %5231 = vmatprep.subr.bf16.mxu0 %v6624_v53  ;;  %5135 = vmatprep.subr.bf16.mxu1 %v6624_v53  ;;  %v782_v2 = vld [vmem:[%s9100_s2 + $0x80] sm:$0xff]  ;;  %v784_v5 = vld [vmem:[%s9100_s2 + $0x90] sm:$0xff]  ;;  %9222 = vst [vmem:[#allocation27_spill] sm:$0xff] %v6692_v22  ;;  %v793_v57 = vld [vmem:[%s9100_s2 + $0xd8] sm:$0xff]  ;;  %v6740_v9 = vpack.c.bf16 %v842_v45, %v838_v33  ;;  %v6742_v10 = vsub.f32 %v789_v24, %v842_v45  ;;  %v1297_v39 = vand.u32 4294901760, %v6602_v41  ;;  %v1309_v36 = vand.u32 4294901760, %v6604_v42 }
  0x76   : > { %v832_v15 = vand.u32 4294901760, %v782_v2  ;;  %v836_v16 = vand.u32 4294901760, %v784_v5  ;;  %9220 = vst [vmem:[#allocation25_spill] sm:$0xff] %v6688_v20  ;;  %9221 = vst [vmem:[#allocation26_spill] sm:$0xff] %v6690_v21  ;;  %v788_v40 = vld [vmem:[%s9100_s2 + $0xb0] sm:$0xff]  ;;  %v1250_v58 = vsub.f32 %v6663_v6, %v9105_v14  ;;  %v6746_v4 = vsub.f32 %v786_v25, %v840_v46  ;;  %v795_v11 = vld [vmem:[%s9100_s2 + $0xe8] sm:$0xff] }
  0x77   : > { %5233 = vmatpush1.bf16.msra.mxu0 %v6639_v59  ;;  %5137 = vmatpush1.bf16.msra.mxu1 %v6639_v59  ;;  %v351_v43 = vld [vmem:[%s6633_s18 + $0x30] sm:$0xff]  ;;  %v844_v49 = vand.u32 4294901760, %v788_v40  ;;  %9224 = vst [vmem:[#allocation29_spill] sm:$0xff] %v6740_v9  ;;  %v794_v24 = vld [vmem:[%s9100_s2 + $0xe0] sm:$0xff]  ;;  %v6766_v25 = vld [vmem:[%s6560_s23 + $0x38] sm:$0xff]  ;;  %v1273_v59 = vand.u32 4294901760, %v6568_v28 }
  0x78   : > { %447 = vrot.lane.b32.xlu0 %v6644_v60, %s6166_s7  ;;  %575 = vrot.lane.b32.xlu1 %v347_v61, %s6168_s9  ;;  %v6706_v30 = vpack.c.bf16 %v836_v16, %v832_v15  ;;  %v6708_v31 = vsub.f32 %v782_v2, %v832_v15  ;;  %v6710_v32 = vsub.f32 %v784_v5, %v836_v16  ;;  %v1251_v56 = vand.u32 4294901760, %v1250_v58  ;;  %v338_v53 = vld [vmem:[%s6560_s23 + $0xd8] sm:$0xff] }
  0x79   : > { %5235 = vmatprep.subr.bf16.mxu0 %v6688_v20  ;;  %5139 = vmatprep.subr.bf16.mxu1 %v6688_v20  ;;  %v6729_v61 = vsub.f32 %v787_v23, %v838_v33  ;;  %v6753_v2 = vsub.f32 %v788_v40, %v844_v49  ;;  %v797_v23 = vld [vmem:[%s9100_s2 + $0xf8] sm:$0xff]  ;;  %v369_v20 = vld [vmem:[%s6633_s18 + $0xc0] sm:$0xff] }
  0x7a   : > { %9223 = vst [vmem:[#allocation28_spill] sm:$0xff] %v6706_v30  ;;  %v858_v45 = vand.u32 4294901760, %v797_v23  ;;  %v372_v47 = vld [vmem:[%s6633_s18 + $0xd8] sm:$0xff] }
  0x7b   : > { %5237 = vmatpush1.bf16.msra.mxu0 %v6706_v30  ;;  %5141 = vmatpush1.bf16.msra.mxu1 %v6706_v30  ;;  %v367_v30 = vld [vmem:[%s6633_s18 + $0xb0] sm:$0xff] }
  0x7c   : > { %449 = vrot.lane.b32.xlu0 %v314_v62, %s6166_s7  ;;  %577 = vrot.lane.b32.xlu1 %v348_v63, %s6168_s9  ;;  %v846_v62 = vand.u32 4294901760, %v791_v50  ;;  %v850_v63 = vand.u32 4294901760, %v793_v57  ;;  %v6793_v58 = vsub.f32 %v797_v23, %v858_v45  ;;  %v9231_v23 = vand.u32 4294901760, %v6663_v6 }
  0x7d   : > { %5239 = vmatprep.subr.bf16.mxu0 %v6740_v9  ;;  %5143 = vmatprep.subr.bf16.mxu1 %v6740_v9  ;;  %v333_v9 = vld [vmem:[%s6560_s23 + $0xb0] sm:$0xff] }
  0x7e   : > { %v6755_v5 = vpack.c.bf16 %v850_v63, %v846_v62  ;;  %v6757_v15 = vsub.f32 %v791_v50, %v846_v62  ;;  %v6771_v33 = vsub.f32 %v793_v57, %v850_v63  ;;  %v856_v50 = vand.u32 4294901760, %v794_v24 }
  0x80   : > { %451 = vrot.lane.b32.xlu0 %v315_v0, %s6166_s7  ;;  %579 = vrot.lane.b32.xlu1 %v349_v3, %s6168_s9  ;;  %v790_v0 = vld [vmem:[%s9100_s2 + $0xc0] sm:$0xff]  ;;  %v792_v3 = vld [vmem:[%s9100_s2 + $0xd0] sm:$0xff]  ;;  %9226 = vst [vmem:[#allocation31_spill] sm:$0xff] %v6755_v5 }
  0x81   : > { %v848_v16 = vand.u32 4294901760, %v790_v0  ;;  %v852_v40 = vand.u32 4294901760, %v792_v3 }
  0x83   : > { %v6781_v57 = vpack.c.bf16 %v852_v40, %v848_v16  ;;  %v6783_v63 = vsub.f32 %v792_v3, %v852_v40  ;;  %v353_v3 = vld [vmem:[%s6633_s18 + $0x40] sm:$0xff]  ;;  %v6799_v40 = vsub.f32 %v794_v24, %v856_v50  ;;  %v9232_v24 = vand.u32 4294901760, %v6668_v7 }
  0x84   : > { %453 = vrot.lane.b32.xlu0 %v316_v8, %s6166_s7  ;;  %581 = vrot.lane.b32.xlu1 %v350_v1, %s6168_s9  ;;  %v1262_v8 = vsub.f32 %v6668_v7, %v9104_v19  ;;  %v6744_v1 = vpack.c.bf16 %v844_v49, %v840_v46  ;;  %v796_v46 = vld [vmem:[%s9100_s2 + $0xf0] sm:$0xff]  ;;  %v6778_v49 = vsub.f32 %v790_v0, %v848_v16  ;;  %v6796_v16 = vld [vmem:[%s6560_s23 + $0x40] sm:$0xff] }
  0x85   : > { %v860_v62 = vand.u32 4294901760, %v796_v46  ;;  %9227 = vst [vmem:[#allocation32_spill] sm:$0xff] %v6781_v57  ;;  %9229 = vst [vmem:[#allocation34_spill] sm:$0xff] %v6796_v16 }
  0x86   : > { %9225 = vst [vmem:[#allocation30_spill] sm:$0xff] %v6744_v1  ;;  %5241 = vmatpush1.bf16.msra.mxu0 %v6744_v1  ;;  %5145 = vmatpush1.bf16.msra.mxu1 %v6744_v1  ;;  %v1263_v14 = vand.u32 4294901760, %v1262_v8  ;;  %v332_v1 = vld [vmem:[%s6560_s23 + $0xa8] sm:$0xff] }
  0x87   : > { %5243 = vmatprep.subr.bf16.mxu0 %v6755_v5  ;;  %5147 = vmatprep.subr.bf16.mxu1 %v6755_v5  ;;  %v6801_v5 = vsub.f32 %v796_v46, %v860_v62  ;;  %v6805_v8 = vpack.c.bf16 %v860_v62, %v856_v50  ;;  %v6833_v46 = vld [vmem:[%s6560_s23 + $0x58] sm:$0xff]  ;;  %v6840_v62 = vld [vmem:[%s6560_s23 + $0x60] sm:$0xff] }
  0x88   : > { %455 = vrot.lane.b32.xlu0 %v317_v26, %s6166_s7  ;;  %583 = vrot.lane.b32.xlu1 %v351_v43, %s6168_s9  ;;  %v352_v26 = vld [vmem:[%s6633_s18 + $0x38] sm:$0xff]  ;;  %v854_v43 = vand.u32 4294901760, %v795_v11  ;;  %9235 = vst [vmem:[#allocation38_spill] sm:$0xff] %v6833_v46  ;;  %9236 = vst [vmem:[#allocation39_spill] sm:$0xff] %v6840_v62 }
  0x89   : > { %9230 = vst [vmem:[#allocation35_spill] sm:$0xff] %v6805_v8  ;;  %v356_v50 = vld [vmem:[%s6633_s18 + $0x58] sm:$0xff] }
  0x8a   : > { %v6786_v19 = vpack.c.bf16 %v858_v45, %v854_v43  ;;  %v6791_v0 = vsub.f32 %v795_v11, %v854_v43  ;;  %5245 = vmatpush1.bf16.msra.mxu0 %v6781_v57  ;;  %5149 = vmatpush1.bf16.msra.mxu1 %v6781_v57  ;;  %v5154_v11 = vpack.c.bf16 %v1263_v14, %v1251_v56  ;;  %v6817_v43 = vld [vmem:[%s6560_s23 + $0x48] sm:$0xff]  ;;  %v6826_v56 = vld [vmem:[%s6560_s23 + $0x50] sm:$0xff]  ;;  %v365_v57 = vld [vmem:[%s6633_s18 + $0xa0] sm:$0xff] }
  0x8b   : > { %9233 = vst [vmem:[#allocation36_spill] sm:$0xff] %v6817_v43  ;;  %v354_v45 = vld [vmem:[%s6633_s18 + $0x48] sm:$0xff]  ;;  %9234 = vst [vmem:[#allocation37_spill] sm:$0xff] %v6826_v56  ;;  %v355_v14 = vld [vmem:[%s6633_s18 + $0x50] sm:$0xff] }
  0x8c   : > { %9228 = vst [vmem:[#allocation33_spill] sm:$0xff] %v6786_v19  ;;  %457 = vrot.lane.b32.xlu0 %v6766_v25, %s6166_s7  ;;  %585 = vrot.lane.b32.xlu1 %v352_v26, %s6168_s9  ;;  %v5250_v26 = vpack.c.bf16 %v9232_v24, %v9231_v23  ;;  %v358_v23 = vld [vmem:[%s6633_s18 + $0x68] sm:$0xff]  ;;  %v6854_v24 = vld [vmem:[%s6560_s23 + $0x70] sm:$0xff] }
  0x8d   : > { %5247 = vmatprep.subr.bf16.mxu0 %v6786_v19  ;;  %5151 = vmatprep.subr.bf16.mxu1 %v6786_v19  ;;  %9238 = vst [vmem:[#allocation41_spill] sm:$0xff] %v6854_v24  ;;  %v364_v19 = vld [vmem:[%s6633_s18 + $0x98] sm:$0xff] }
  0x8e   : > { %5249 = vmatpush1.bf16.msra.mxu0 %v6805_v8  ;;  %5153 = vmatpush1.bf16.msra.mxu1 %v6805_v8  ;;  %v363_v8 = vld [vmem:[%s6633_s18 + $0x90] sm:$0xff] }
  0x8f   : > { %5155 = vmatprep.subr.bf16.mxu1 %v5154_v11  ;;  %5251 = vmatprep.subr.bf16.mxu0 %v5250_v26  ;;  %v6847_v11 = vld [vmem:[%s6560_s23 + $0x68] sm:$0xff]  ;;  %v359_v26 = vld [vmem:[%s6633_s18 + $0x70] sm:$0xff] }
  0x90   : > { %459 = vrot.lane.b32.xlu0 %v6796_v16, %s6166_s7  ;;  %587 = vrot.lane.b32.xlu1 %v353_v3, %s6168_s9  ;;  %v357_v3 = vld [vmem:[%s6633_s18 + $0x60] sm:$0xff]  ;;  %9237 = vst [vmem:[#allocation40_spill] sm:$0xff] %v6847_v11 }
  0x94   : > { %461 = vrot.lane.b32.xlu0 %v6817_v43, %s6166_s7  ;;  %589 = vrot.lane.b32.xlu1 %v354_v45, %s6168_s9  ;;  %v6861_v45 = vld [vmem:[%s6560_s23 + $0x78] sm:$0xff] }
  0x95   : > { %9239 = vst [vmem:[#allocation42_spill] sm:$0xff] %v6861_v45 }
  0x98   : > { %463 = vrot.lane.b32.xlu0 %v6826_v56, %s6166_s7  ;;  %591 = vrot.lane.b32.xlu1 %v355_v14, %s6168_s9  ;;  %v360_v14 = vld [vmem:[%s6633_s18 + $0x78] sm:$0xff]  ;;  %v1345_v56 = vand.u32 4294901760, %v6690_v21 }
  0x9c   : > { %465 = vrot.lane.b32.xlu0 %v6833_v46, %s6166_s7  ;;  %593 = vrot.lane.b32.xlu1 %v356_v50, %s6168_s9  ;;  %v6868_v50 = vld [vmem:[%s6560_s23 + $0x80] sm:$0xff] }
  0x9d   : > { %9240 = vst [vmem:[#allocation43_spill] sm:$0xff] %v6868_v50 }
  0xa0   : > { %467 = vrot.lane.b32.xlu0 %v6840_v62, %s6166_s7  ;;  %595 = vrot.lane.b32.xlu1 %v357_v3, %s6168_s9  ;;  %v361_v3 = vld [vmem:[%s6633_s18 + $0x80] sm:$0xff] }
  0xa4   : > { %469 = vrot.lane.b32.xlu0 %v6847_v11, %s6166_s7  ;;  %597 = vrot.lane.b32.xlu1 %v358_v23, %s6168_s9  ;;  %v6875_v23 = vld [vmem:[%s6560_s23 + $0x88] sm:$0xff] }
  0xa5   : > { %9241 = vst [vmem:[#allocation44_spill] sm:$0xff] %v6875_v23 }
  0xa8   : > { %471 = vrot.lane.b32.xlu0 %v6854_v24, %s6166_s7  ;;  %599 = vrot.lane.b32.xlu1 %v359_v26, %s6168_s9  ;;  %v362_v26 = vld [vmem:[%s6633_s18 + $0x88] sm:$0xff]  ;;  %v9245_v24 = vand.u32 4294901760, %v6614_v48 }
  0xaa   : > { %v1316_v11 = vsub.f32 %v6614_v48, %v9245_v24 }
  0xac   : > { %473 = vrot.lane.b32.xlu0 %v6861_v45, %s6166_s7  ;;  %601 = vrot.lane.b32.xlu1 %v360_v14, %s6168_s9  ;;  %v6882_v14 = vld [vmem:[%s6560_s23 + $0x90] sm:$0xff] }
  0xad   : > { %9242 = vst [vmem:[#allocation45_spill] sm:$0xff] %v6882_v14 }
  0xb0   : > { %475 = vrot.lane.b32.xlu0 %v6868_v50, %s6166_s7  ;;  %603 = vrot.lane.b32.xlu1 %v361_v3, %s6168_s9  ;;  %v6889_v3 = vld [vmem:[%s6560_s23 + $0x98] sm:$0xff] }
  0xb1   : > { %9243 = vst [vmem:[#allocation46_spill] sm:$0xff] %v6889_v3 }
  0xb4   : > { %477 = vrot.lane.b32.xlu0 %v6875_v23, %s6166_s7  ;;  %605 = vrot.lane.b32.xlu1 %v362_v26, %s6168_s9  ;;  %v331_v26 = vld [vmem:[%s6560_s23 + $0xa0] sm:$0xff] }
  0xb5   : > { %v373_v23 = vld [vmem:[%s6633_s18 + $0xe0] sm:$0xff] }
  0xb8   : > { %479 = vrot.lane.b32.xlu0 %v6882_v14, %s6166_s7  ;;  %607 = vrot.lane.b32.xlu1 %v363_v8, %s6168_s9  ;;  %v366_v8 = vld [vmem:[%s6633_s18 + $0xa8] sm:$0xff]  ;;  %v339_v14 = vld [vmem:[%s6560_s23 + $0xe0] sm:$0xff] }
  0xbc   : > { %481 = vrot.lane.b32.xlu0 %v6889_v3, %s6166_s7  ;;  %609 = vrot.lane.b32.xlu1 %v364_v19, %s6168_s9  ;;  %v334_v19 = vld [vmem:[%s6560_s23 + $0xb8] sm:$0xff] }
  0xc0   : > { %483 = vrot.lane.b32.xlu0 %v331_v26, %s6166_s7  ;;  %611 = vrot.lane.b32.xlu1 %v365_v57, %s6168_s9  ;;  %v368_v26 = vld [vmem:[%s6633_s18 + $0xb8] sm:$0xff]  ;;  %v335_v57 = vld [vmem:[%s6560_s23 + $0xc0] sm:$0xff] }
  0xc4   : > { %485 = vrot.lane.b32.xlu0 %v332_v1, %s6166_s7  ;;  %613 = vrot.lane.b32.xlu1 %v366_v8, %s6168_s9  ;;  %v336_v1 = vld [vmem:[%s6560_s23 + $0xc8] sm:$0xff] }
  0xc5   : > { %v370_v8 = vld [vmem:[%s6633_s18 + $0xc8] sm:$0xff] }
  0xc8   : > { %487 = vrot.lane.b32.xlu0 %v333_v9, %s6166_s7  ;;  %615 = vrot.lane.b32.xlu1 %v367_v30, %s6168_s9  ;;  %v1255_v30 = vand.u32 4294901760, %v6533_v13  ;;  %v337_v9 = vld [vmem:[%s6560_s23 + $0xd0] sm:$0xff] }
  0xcc   : > { %489 = vrot.lane.b32.xlu0 %v334_v19, %s6166_s7  ;;  %617 = vrot.lane.b32.xlu1 %v368_v26, %s6168_s9  ;;  %v371_v19 = vld [vmem:[%s6633_s18 + $0xd0] sm:$0xff]  ;;  %v1267_v26 = vand.u32 4294901760, %v6546_v18 }
  0xce   : > { %v6951_v50 = vpack.c.bf16 %v1267_v26, %v1255_v30 }
  0xd0   : > { %491 = vrot.lane.b32.xlu0 %v335_v57, %s6166_s7  ;;  %619 = vrot.lane.b32.xlu1 %v369_v20, %s6168_s9  ;;  %v1256_v20 = vsub.f32 %v6533_v13, %v1255_v30  ;;  %v1285_v57 = vand.u32 4294901760, %v6570_v29  ;;  %v340_v30 = vld [vmem:[%s6560_s23 + $0xe8] sm:$0xff] }
  0xd2   : > { %v1257_v27 = vand.u32 4294901760, %v1256_v20  ;;  %v1286_v17 = vsub.f32 %v6570_v29, %v1285_v57  ;;  %v6982_v46 = vpack.c.bf16 %v1285_v57, %v1273_v59  ;;  %v6999_v57 = vld [vmem:[%s6560_s23 + $0xf0] sm:$0xff] }
  0xd4   : > { %493 = vrot.lane.b32.xlu0 %v336_v1, %s6166_s7  ;;  %621 = vrot.lane.b32.xlu1 %v370_v8, %s6168_s9  ;;  %v1279_v1 = vand.u32 4294901760, %v6589_v37  ;;  %v1291_v8 = vand.u32 4294901760, %v6591_v38 }
  0xd6   : > { %v1280_v13 = vsub.f32 %v6589_v37, %v1279_v1  ;;  %v1292_v3 = vsub.f32 %v6591_v38, %v1291_v8  ;;  %v1287_v38 = vand.u32 4294901760, %v1286_v17  ;;  %v9246_v17 = vand.u32 4294901760, %v6618_v51 }
  0xd7   : > { %v6984_v24 = vpack.c.bf16 %v1291_v8, %v1279_v1  ;;  %v375_v1 = vld [vmem:[%s6633_s18 + $0xf0] sm:$0xff] }
  0xd8   : > { %495 = vrot.lane.b32.xlu0 %v337_v9, %s6166_s7  ;;  %623 = vrot.lane.b32.xlu1 %v371_v19, %s6168_s9  ;;  %v1268_v9 = vsub.f32 %v6546_v18, %v1267_v26  ;;  %v1274_v19 = vsub.f32 %v6568_v28, %v1273_v59  ;;  %v1298_v18 = vsub.f32 %v6602_v41, %v1297_v39  ;;  %v374_v26 = vld [vmem:[%s6633_s18 + $0xe8] sm:$0xff]  ;;  %v1357_v59 = vand.u32 4294901760, %v6692_v22 }
  0xd9   : > { %v1310_v28 = vsub.f32 %v6604_v42, %v1309_v36  ;;  %v380_v42 = vld [vmem:[%s6959_s12 + $0x8] sm:$0xff] }
  0xda   : > { %v1269_v20 = vand.u32 4294901760, %v1268_v9  ;;  %v1275_v29 = vand.u32 4294901760, %v1274_v19  ;;  %v1299_v45 = vand.u32 4294901760, %v1298_v18 }
  0xdb   : > { %v1311_v41 = vand.u32 4294901760, %v1310_v28  ;;  %v9248_v28 = vand.u32 4294901760, %v6626_v54 }
  0xdc   : > { %497 = vrot.lane.b32.xlu0 %v338_v53, %s6166_s7  ;;  %625 = vrot.lane.b32.xlu1 %v372_v47, %s6168_s9  ;;  %v1281_v47 = vand.u32 4294901760, %v1280_v13  ;;  %v1293_v53 = vand.u32 4294901760, %v1292_v3  ;;  %v6970_v62 = vpack.c.bf16 %v1269_v20, %v1257_v27  ;;  %v1322_v13 = vsub.f32 %v6618_v51, %v9246_v17 }
  0xdd   : > { %v9247_v3 = vand.u32 4294901760, %v6620_v52  ;;  %v1328_v19 = vsub.f32 %v6626_v54, %v9248_v28  ;;  %v9249_v27 = vand.u32 4294901760, %v6628_v55  ;;  %v7002_v8 = vpack.c.bf16 %v1311_v41, %v1299_v45 }
  0xde   : > { %v6995_v28 = vpack.c.bf16 %v1293_v53, %v1281_v47  ;;  %v1358_v45 = vsub.f32 %v6692_v22, %v1357_v59  ;;  %v9253_v22 = vand.u32 4294901760, %v6620_v52 }
  0xdf   : > { %v446_v9 = vpop.permute.xlu1 %445  ;;  %v444_v37 = vpop.permute.xlu0 %443  ;;  %v1334_v18 = vsub.f32 %v6620_v52, %v9247_v3  ;;  %v1340_v20 = vsub.f32 %v6628_v55, %v9249_v27  ;;  %v6993_v3 = vpack.c.bf16 %v1287_v38, %v1275_v29  ;;  %v7004_v27 = vpack.c.bf16 %v1309_v36, %v1297_v39 }
  0xe0   : > { %499 = vrot.lane.b32.xlu0 %v339_v14, %s6166_s7  ;;  %627 = vrot.lane.b32.xlu1 %v373_v23, %s6168_s9  ;;  %v9244_v14 = vand.u32 4294901760, %v6606_v44  ;;  %v669_v17 = vsel %vm667_vm0, %v380_v42, %v446_v9  ;;  %v1317_v42 = vand.u32 4294901760, %v1316_v11  ;;  %v1323_v29 = vand.u32 4294901760, %v1322_v13 }
  0xe1   : > { %v1335_v38 = vand.u32 4294901760, %v1334_v18  ;;  %v1329_v53 = vand.u32 4294901760, %v1328_v19  ;;  %v1341_v41 = vand.u32 4294901760, %v1340_v20  ;;  %v1346_v36 = vsub.f32 %v6690_v21, %v1345_v56  ;;  %v7023_v19 = vld [vmem:[%s6560_s23 + $0xf8] sm:$0xff] }
  0xe2   : > { %v1304_v23 = vsub.f32 %v6606_v44, %v9244_v14  ;;  %v379_v14 = vld [vmem:[%s6959_s12] sm:$0xff]  ;;  %v9250_v20 = vand.u32 4294901760, %v6606_v44  ;;  %v9254_v44 = vand.u32 4294901760, %v6626_v54 }
  0xe3   : > { %v668_v9 = vsel %vm667_vm0, %v379_v14, %v444_v37  ;;  %v381_v37 = vld [vmem:[%s6959_s12 + $0x10] sm:$0xff]  ;;  %v376_v14 = vld [vmem:[%s6633_s18 + $0xf8] sm:$0xff] }
  0xe4   : > { %501 = vrot.lane.b32.xlu0 %v340_v30, %s6166_s7  ;;  %629 = vrot.lane.b32.xlu1 %v374_v26, %s6168_s9  ;;  %v1305_v43 = vand.u32 4294901760, %v1304_v23  ;;  %v9252_v23 = vand.u32 4294901760, %v6618_v51 }
  0xe6   : > { %v574_v30 = vpop.permute.xlu1 %573  ;;  %v572_v26 = vpop.permute.xlu0 %571  ;;  %v7041_v21 = vpack.c.bf16 %v9253_v22, %v9252_v23  ;;  %v382_v22 = vld [vmem:[%s6959_s12 + $0x18] sm:$0xff] }
  0xe7   : > { %v702_v47 = vsel %vm700_vm1, %v669_v17, %v574_v30  ;;  %v701_v16 = vsel %vm700_vm1, %v668_v9, %v572_v26  ;;  %v7033_v26 = vpack.c.bf16 %v1317_v42, %v1305_v43 }
  0xe8   : > { %v735_v39 = vsel %vm733_vm2, %v702_v47, 0.0  ;;  %v734_v11 = vsel %vm733_vm2, %v701_v16, 0.0  ;;  %503 = vrot.lane.b32.xlu0 %v6999_v57, %s6166_s7  ;;  %631 = vrot.lane.b32.xlu1 %v375_v1, %s6168_s9  ;;  %v9251_v16 = vand.u32 4294901760, %v6614_v48  ;;  %v9147_v1 = vand.u32 4294901760, %v6710_v32 }
  0xe9   : > { %v7018_v13 = vand.u32 4294901760, %v735_v39  ;;  %v7020_v18 = vand.u32 4294901760, %v734_v11  ;;  %v7035_v47 = vpack.c.bf16 %v1335_v38, %v1323_v29  ;;  %v9255_v48 = vand.u32 4294901760, %v6628_v55 }
  0xea   : > { %v7030_v17 = vpack.c.bf16 %v9251_v16, %v9250_v20  ;;  %v448_v9 = vpop.permute.xlu0 %447  ;;  %v576_v30 = vpop.permute.xlu1 %575  ;;  %v7056_v29 = vpack.c.bf16 %v1341_v41, %v1329_v53  ;;  %v1364_v41 = vsub.f32 %v6710_v32, %v9147_v1 }
  0xeb   : > { %v7047_v20 = vpack.c.bf16 %v9255_v48, %v9254_v44  ;;  %v7050_v16 = vsub.f32 %v735_v39, %v7018_v13  ;;  %v7053_v43 = vsub.f32 %v734_v11, %v7020_v18  ;;  %v670_v42 = vsel %vm667_vm0, %v381_v37, %v448_v9 }
  0xec   : > { %v703_v38 = vsel %vm700_vm1, %v670_v42, %v576_v30  ;;  %505 = vrot.lane.b32.xlu0 %v7023_v19, %s6166_s7  ;;  %633 = vrot.lane.b32.xlu1 %v376_v14, %s6168_s9  ;;  %v1347_v44 = vand.u32 4294901760, %v1346_v36  ;;  %v1359_v48 = vand.u32 4294901760, %v1358_v45  ;;  %v9258_v39 = vand.u32 4294901760, %v6708_v31 }
  0xed   : > { %9256 = vst [vmem:[#allocation47_spill] sm:$0xff] %v7050_v16  ;;  %9257 = vst [vmem:[#allocation48_spill] sm:$0xff] %v7053_v43  ;;  %v736_v11 = vsel %vm733_vm2, %v703_v38, 0.0  ;;  %v897_v37 = vand.u32 4294901760, %v7053_v43  ;;  %v908_v53 = vand.u32 4294901760, %v7050_v16  ;;  %v7074_v45 = vpack.c.bf16 %v1357_v59, %v1345_v56  ;;  %v383_v59 = vld [vmem:[%s6959_s12 + $0x20] sm:$0xff] }
  0xee   : > { %v1352_v23 = vsub.f32 %v6708_v31, %v9258_v39  ;;  %v7072_v9 = vand.u32 4294901760, %v736_v11  ;;  %v450_v14 = vpop.permute.xlu0 %449  ;;  %v578_v36 = vpop.permute.xlu1 %577  ;;  %v9149_v30 = vand.u32 4294901760, %v6729_v61  ;;  %v9260_v56 = vmov 0.0  }
  0xef   : > { %v671_v38 = vsel %vm667_vm0, %v382_v22, %v450_v14  ;;  %2181 = vmatmul.mubr.f32.vlgmr.msra.gmra.mrb[0].mxu0 %v897_v37  ;;  %v898_v39 = vsub.f32 %v7053_v43, %v897_v37  ;;  %v7089_v42 = vpack.c.bf16 %v1359_v48, %v1347_v44  ;;  %v909_v55 = vsub.f32 %v7050_v16, %v908_v53 }
  0xf0   : > { %v7083_v1 = vsub.f32 %v736_v11, %v7072_v9  ;;  %v704_v52 = vsel %vm700_vm1, %v671_v38, %v578_v36  ;;  %2186 = vmatprep.mubr.f32.mxu0 %v9260_v56  ;;  %5253 = vmatpush1.bf16.msra.mxu0 %v6951_v50  ;;  %v1353_v22 = vand.u32 4294901760, %v1352_v23  ;;  %v1365_v54 = vand.u32 4294901760, %v1364_v41 }
  0xf1   : > { %v737_v14 = vsel %vm733_vm2, %v704_v52, 0.0  ;;  %v899_v37 = vand.u32 4294901760, %v898_v39  ;;  %5255 = vmatprep.subr.bf16.mxu0 %v6982_v46  ;;  %3908 = vrot.lane.b32.xlu0 %v6585_v35, %s6168_s9  ;;  %v1370_v52 = vsub.f32 %v6729_v61, %v9149_v30  ;;  %v9261_v44 = vand.u32 4294901760, %v6742_v10 }
  0xf2   : > { %9259 = vst [vmem:[#allocation49_spill] sm:$0xff] %v7083_v1  ;;  %v7096_v11 = vand.u32 4294901760, %v737_v14  ;;  %v452_v36 = vpop.permute.xlu0 %451  ;;  %v580_v38 = vpop.permute.xlu1 %579  ;;  %v919_v50 = vand.u32 4294901760, %v7083_v1  ;;  %3910 = vrot.lane.b32.xlu1 %v6582_v34, %s6168_s9  ;;  %v9262_v46 = vand.u32 4294901760, %v6746_v4  ;;  %v9263_v41 = vand.u32 4294901760, %v6753_v2  ;;  %v384_v34 = vld [vmem:[%s6959_s12 + $0x28] sm:$0xff] }
  0xf3   : > { %v1382_v48 = vsub.f32 %v6742_v10, %v9261_v44  ;;  %v672_v35 = vsel %vm667_vm0, %v383_v59, %v452_v36  ;;  %900 = vmatmul.mubr.f32.vlgmr.msra.gmra.mrb[0].mxu1 %v899_v37  ;;  %2190 = vmatmul.mubr.f32.gmra.mrb[2].mxu0 %v908_v53  ;;  %v9264_v53 = vand.u32 4294901760, %v6708_v31  ;;  %v9265_v59 = vand.u32 4294901760, %v6710_v32 }
  0xf4   : > { %v1376_v23 = vsub.f32 %v6746_v4, %v9262_v46  ;;  %v1388_v39 = vsub.f32 %v6753_v2, %v9263_v41  ;;  %v7116_v16 = vsub.f32 %v737_v14, %v7096_v11  ;;  %v705_v44 = vsel %vm700_vm1, %v672_v35, %v580_v38  ;;  %5157 = vmatpush1.bf16.msra.mxu1 %v6970_v62 }
  0xf5   : > { %905 = vmatprep.mubr.f32.mxu1 %v9260_v56  ;;  %v7126_v37 = vpack.c.bf16 %v9265_v59, %v9264_v53  ;;  %v1405_v36 = vand.u32 4294901760, %v6771_v33  ;;  %v738_v46 = vsel %vm733_vm2, %v705_v44, 0.0  ;;  %2195 = vmatprep.mubr.f32.mxu0 %v9260_v56  ;;  %v910_v14 = vand.u32 4294901760, %v909_v55 }
  0xf6   : > { %v920_v38 = vsub.f32 %v7083_v1, %v919_v50  ;;  %5159 = vmatprep.subr.bf16.mxu1 %v6993_v3  ;;  %v7133_v62 = vpack.c.bf16 %v1365_v54, %v1353_v22  ;;  %v7135_v35 = vand.u32 4294901760, %v738_v46  ;;  %v454_v41 = vpop.permute.xlu0 %453  ;;  %v582_v30 = vpop.permute.xlu1 %581  ;;  %v930_v53 = vand.u32 4294901760, %v7116_v16  ;;  %5257 = vmatpush1.bf16.msra.mxu0 %v6984_v24 }
  0xf7   : > { %v1371_v59 = vand.u32 4294901760, %v1370_v52  ;;  %v1383_v44 = vand.u32 4294901760, %v1382_v48  ;;  %3912 = vrot.lane.b32.xlu0 %v6644_v60, %s6168_s9  ;;  %v673_v55 = vsel %vm667_vm0, %v384_v34, %v454_v41  ;;  %911 = vmatmul.mubr.f32.gmra.mrb[2].mxu1 %v910_v14  ;;  %v1377_v54 = vand.u32 4294901760, %v1376_v23  ;;  %v385_v60 = vld [vmem:[%s6959_s12 + $0x30] sm:$0xff] }
  0xf8   : > { %2199 = vmatmul.mubr.f32.gmra.mrb[4].mxu0 %v919_v50  ;;  %v1389_v3 = vand.u32 4294901760, %v1388_v39  ;;  %v9266_v22 = vand.u32 4294901760, %v6757_v15  ;;  %v7146_v43 = vsub.f32 %v738_v46, %v7135_v35  ;;  %v706_v24 = vsel %vm700_vm1, %v673_v55, %v582_v30  ;;  %916 = vmatprep.mubr.f32.mxu1 %v9260_v56 }
  0xf9   : > { %2204 = vmatprep.mubr.f32.mxu0 %v9260_v56  ;;  %v1406_v52 = vsub.f32 %v6771_v33, %v1405_v36  ;;  %v739_v50 = vsel %vm733_vm2, %v706_v24, 0.0  ;;  %v921_v48 = vand.u32 4294901760, %v920_v38  ;;  %v931_v23 = vsub.f32 %v7116_v16, %v930_v53  ;;  %5161 = vmatpush1.bf16.msra.mxu1 %v6995_v28 }
  0xfa   : > { %v1394_v1 = vsub.f32 %v6757_v15, %v9266_v22  ;;  %9267 = vst [vmem:[#allocation50_spill] sm:$0xff] %v7146_v43  ;;  %5259 = vmatprep.subr.bf16.mxu0 %v7004_v27  ;;  %v9268_v39 = vand.u32 4294901760, %v6729_v61  ;;  %v9269_v30 = vand.u32 4294901760, %v6742_v10  ;;  %v7163_v46 = vand.u32 4294901760, %v739_v50  ;;  %v456_v14 = vpop.permute.xlu0 %455  ;;  %v584_v41 = vpop.permute.xlu1 %583  ;;  %5163 = vmatprep.subr.bf16.mxu1 %v7002_v8 }
  0xfb   : > { %v941_v55 = vand.u32 4294901760, %v7146_v43  ;;  %5261 = vmatpush1.bf16.msra.mxu0 %v7030_v17  ;;  %v7168_v28 = vpack.c.bf16 %v1383_v44, %v1371_v59  ;;  %v9270_v27 = vand.u32 4294901760, %v6746_v4  ;;  %v9271_v38 = vand.u32 4294901760, %v6753_v2  ;;  %922 = vmatmul.mubr.f32.gmra.mrb[4].mxu1 %v921_v48  ;;  %v386_v44 = vld [vmem:[%s6959_s12 + $0x38] sm:$0xff] }
  0xfc   : > { %v7161_v34 = vpack.c.bf16 %v9269_v30, %v9268_v39  ;;  %v674_v24 = vsel %vm667_vm0, %v385_v60, %v456_v14  ;;  %2208 = vmatmul.mubr.f32.gmra.mrb[6].mxu0 %v930_v53  ;;  %v7177_v39 = vpack.c.bf16 %v1389_v3, %v1377_v54  ;;  %v1399_v30 = vand.u32 4294901760, %v6778_v49  ;;  %927 = vmatprep.mubr.f32.mxu1 %v9260_v56 }
  0xfd   : > { %v7174_v22 = vpack.c.bf16 %v9271_v38, %v9270_v27  ;;  %v1411_v8 = vand.u32 4294901760, %v6783_v63  ;;  %v7182_v17 = vsub.f32 %v739_v50, %v7163_v46  ;;  %v707_v59 = vsel %vm700_vm1, %v674_v24, %v584_v41  ;;  %2213 = vmatprep.mubr.f32.mxu0 %v9260_v56  ;;  %5165 = vmatpush1.bf16.msra.mxu1 %v7033_v26 }
  0xfe   : > { %v1395_v27 = vand.u32 4294901760, %v1394_v1  ;;  %v1407_v60 = vand.u32 4294901760, %v1406_v52  ;;  %v740_v53 = vsel %vm733_vm2, %v707_v59, 0.0  ;;  %v932_v54 = vand.u32 4294901760, %v931_v23  ;;  %5263 = vmatprep.subr.bf16.mxu0 %v7041_v21  ;;  %v458_v41 = vpop.permute.xlu0 %457  ;;  %v586_v38 = vpop.permute.xlu1 %585  ;;  %5167 = vmatprep.subr.bf16.mxu1 %v7035_v47  ;;  %v387_v47 = vld [vmem:[%s6959_s12 + $0x40] sm:$0xff] }
  0xff   : > { %9272 = vst [vmem:[#allocation51_spill] sm:$0xff] %v7182_v17  ;;  %v942_v3 = vsub.f32 %v7146_v43, %v941_v55  ;;  %v9273_v50 = vand.u32 4294901760, %v6757_v15  ;;  %v7196_v14 = vand.u32 4294901760, %v740_v53  ;;  %v952_v1 = vand.u32 4294901760, %v7182_v17  ;;  %5265 = vmatpush1.bf16.msra.mxu0 %v7047_v20 }
 0x100   : > { %v9154_v52 = vand.u32 4294901760, %v6791_v0  ;;  %v1429_v26 = vand.u32 4294901760, %v6793_v58  ;;  %v675_v21 = vsel %vm667_vm0, %v386_v44, %v458_v41  ;;  %933 = vmatmul.mubr.f32.gmra.mrb[6].mxu1 %v932_v54  ;;  %2217 = vmatmul.mubr.f32.gmra.mrb[8].mxu0 %v941_v55  ;;  %v1412_v23 = vsub.f32 %v6783_v63, %v1411_v8 }
 0x101   : > { %v7194_v48 = vpack.c.bf16 %v1405_v36, %v9273_v50  ;;  %v1400_v36 = vsub.f32 %v6778_v49, %v1399_v30  ;;  %v7207_v24 = vsub.f32 %v740_v53, %v7196_v14  ;;  %v708_v59 = vsel %vm700_vm1, %v675_v21, %v586_v38  ;;  %938 = vmatprep.mubr.f32.mxu1 %v9260_v56 }
 0x102   : > { %2222 = vmatprep.mubr.f32.mxu0 %v9260_v56  ;;  %v5178_v20 = vpack.c.bf16 %v1407_v60, %v1395_v27  ;;  %v741_v44 = vsel %vm733_vm2, %v708_v59, 0.0  ;;  %v943_v55 = vand.u32 4294901760, %v942_v3  ;;  %v953_v54 = vsub.f32 %v7182_v17, %v952_v1  ;;  %5169 = vmatpush1.bf16.msra.mxu1 %v7056_v29  ;;  %v460_v38 = vpop.permute.xlu0 %459  ;;  %v588_v21 = vpop.permute.xlu1 %587 }
 0x103   : > { %9274 = vst [vmem:[#allocation52_spill] sm:$0xff] %v7207_v24  ;;  %5267 = vmatprep.subr.bf16.mxu0 %v7074_v45  ;;  %v1435_v53 = vand.u32 4294901760, %v6801_v5  ;;  %v7219_v41 = vand.u32 4294901760, %v741_v44  ;;  %v963_v27 = vand.u32 4294901760, %v7207_v24  ;;  %5171 = vmatprep.subr.bf16.mxu1 %v7089_v42  ;;  %v1418_v60 = vsub.f32 %v6791_v0, %v9154_v52 }
 0x104   : > { %5269 = vmatpush1.bf16.msra.mxu0 %v7126_v37  ;;  %v1430_v29 = vsub.f32 %v6793_v58, %v1429_v26  ;;  %v676_v45 = vsel %vm667_vm0, %v387_v47, %v460_v38  ;;  %944 = vmatmul.mubr.f32.gmra.mrb[8].mxu1 %v943_v55  ;;  %v1401_v3 = vand.u32 4294901760, %v1400_v36  ;;  %v1413_v59 = vand.u32 4294901760, %v1412_v23  ;;  %v388_v37 = vld [vmem:[%s6959_s12 + $0x48] sm:$0xff] }
 0x105   : > { %2226 = vmatmul.mubr.f32.gmra.mrb[10].mxu0 %v952_v1  ;;  %v5276_v50 = vpack.c.bf16 %v1411_v8, %v1399_v30  ;;  %v7230_v17 = vsub.f32 %v741_v44, %v7219_v41  ;;  %v709_v42 = vsel %vm700_vm1, %v676_v45, %v588_v21  ;;  %949 = vmatprep.mubr.f32.mxu1 %v9260_v56  ;;  %v9276_v52 = vand.u32 4294901760, %v6799_v40  ;;  %v389_v45 = vld [vmem:[%s6959_s12 + $0x50] sm:$0xff] }
 0x106   : > { %2231 = vmatprep.mubr.f32.mxu0 %v9260_v56  ;;  %v742_v47 = vsel %vm733_vm2, %v709_v42, 0.0  ;;  %v954_v1 = vand.u32 4294901760, %v953_v54  ;;  %v964_v36 = vsub.f32 %v7207_v24, %v963_v27  ;;  %5173 = vmatpush1.bf16.msra.mxu1 %v7133_v62  ;;  %v1436_v30 = vsub.f32 %v6801_v5, %v1435_v53  ;;  %v462_v23 = vpop.permute.xlu0 %461  ;;  %v590_v44 = vpop.permute.xlu1 %589 }
 0x107   : > { %9275 = vst [vmem:[#allocation53_spill] sm:$0xff] %v7230_v17  ;;  %v1424_v43 = vsub.f32 %v6799_v40, %v9276_v52  ;;  %5271 = vmatprep.subr.bf16.mxu0 %v7161_v34  ;;  %v7244_v8 = vand.u32 4294901760, %v742_v47  ;;  %v974_v55 = vand.u32 4294901760, %v7230_v17  ;;  %5175 = vmatprep.subr.bf16.mxu1 %v7168_v28  ;;  %v1419_v52 = vand.u32 4294901760, %v1418_v60 }
 0x108   : > { %5273 = vmatpush1.bf16.msra.mxu0 %v7174_v22  ;;  %v1431_v54 = vand.u32 4294901760, %v1430_v29  ;;  %v677_v38 = vsel %vm667_vm0, %v388_v37, %v462_v23  ;;  %955 = vmatmul.mubr.f32.gmra.mrb[10].mxu1 %v954_v1  ;;  %v5180_v62 = vpack.c.bf16 %v1413_v59, %v1401_v3  ;;  %v9278_v28 = vand.u32 4294901760, %v6791_v0 }
 0x109   : > { %2235 = vmatmul.mubr.f32.gmra.mrb[12].mxu0 %v963_v27  ;;  %v7251_v34 = vsub.f32 %v742_v47, %v7244_v8  ;;  %v710_v21 = vsel %vm700_vm1, %v677_v38, %v590_v44  ;;  %960 = vmatprep.mubr.f32.mxu1 %v9260_v56  ;;  %v1425_v60 = vand.u32 4294901760, %v1424_v43  ;;  %v965_v42 = vand.u32 4294901760, %v964_v36 }
 0x10a   : > { %2240 = vmatprep.mubr.f32.mxu0 %v9260_v56  ;;  %v5278_v22 = vpack.c.bf16 %v1429_v26, %v9278_v28  ;;  %v743_v29 = vsel %vm733_vm2, %v710_v21, 0.0  ;;  %v975_v27 = vsub.f32 %v7230_v17, %v974_v55  ;;  %5177 = vmatpush1.bf16.msra.mxu1 %v7177_v39  ;;  %v1437_v3 = vand.u32 4294901760, %v1436_v30  ;;  %v464_v37 = vpop.permute.xlu0 %463  ;;  %v592_v47 = vpop.permute.xlu1 %591  ;;  %v390_v30 = vld [vmem:[%s6959_s12 + $0x58] sm:$0xff] }
 0x10b   : > { %9277 = vst [vmem:[#allocation54_spill] sm:$0xff] %v7251_v34  ;;  %5275 = vmatprep.subr.bf16.mxu0 %v7194_v48  ;;  %v7263_v59 = vand.u32 4294901760, %v743_v29  ;;  %v985_v1 = vand.u32 4294901760, %v7251_v34  ;;  %5179 = vmatprep.subr.bf16.mxu1 %v5178_v20  ;;  %v5182_v43 = vpack.c.bf16 %v1431_v54, %v1419_v52  ;;  %v9279_v26 = vand.u32 4294901760, %v6799_v40 }
 0x10c   : > { %5277 = vmatpush1.bf16.msra.mxu0 %v5276_v50  ;;  %v678_v23 = vsel %vm667_vm0, %v389_v45, %v464_v37  ;;  %966 = vmatmul.mubr.f32.gmra.mrb[12].mxu1 %v965_v42  ;;  %v976_v50 = vand.u32 4294901760, %v975_v27  ;;  %v5186_v21 = vpack.c.bf16 %v6668_v7, %v6663_v6  ;;  %v6064_v37 = vld [vmem:[%s6560_s23 + $0x18] sm:$0xff] }
 0x10d   : > { %v5280_v36 = vpack.c.bf16 %v1435_v53, %v9279_v26  ;;  %2244 = vmatmul.mubr.f32.gmra.mrb[14].mxu0 %v974_v55  ;;  %v7270_v39 = vsub.f32 %v743_v29, %v7263_v59  ;;  %v711_v48 = vsel %vm700_vm1, %v678_v23, %v592_v47  ;;  %971 = vmatprep.mubr.f32.mxu1 %v9260_v56 }
 0x10e   : > { %2249 = vmatprep.mubr.f32.mxu0 %v9260_v56  ;;  %v744_v20 = vsel %vm733_vm2, %v711_v48, 0.0  ;;  %v986_v44 = vsub.f32 %v7251_v34, %v985_v1  ;;  %5181 = vmatpush1.bf16.msra.mxu1 %v5180_v62  ;;  %v5184_v53 = vpack.c.bf16 %v1437_v3, %v1425_v60  ;;  %v466_v52 = vpop.permute.xlu0 %465  ;;  %v594_v54 = vpop.permute.xlu1 %593  ;;  %v6065_v48 = vld [vmem:[%s6560_s23 + $0x20] sm:$0xff] }
 0x10f   : > { %9280 = vst [vmem:[#allocation55_spill] sm:$0xff] %v7270_v39  ;;  %5279 = vmatprep.subr.bf16.mxu0 %v5278_v22  ;;  %v7278_v55 = vand.u32 4294901760, %v744_v20  ;;  %v996_v38 = vand.u32 4294901760, %v7270_v39  ;;  %5183 = vmatprep.subr.bf16.mxu1 %v5182_v43  ;;  %v679_v45 = vsel %vm667_vm0, %v390_v30, %v466_v52  ;;  %v391_v22 = vld [vmem:[%s6959_s12 + $0x60] sm:$0xff]  ;;  %v392_v43 = vld [vmem:[%s6959_s12 + $0x68] sm:$0xff] }
 0x110   : > { %5281 = vmatpush1.bf16.msra.mxu0 %v5280_v36  ;;  %977 = vmatmul.mubr.f32.gmra.mrb[14].mxu1 %v976_v50  ;;  %v712_v28 = vsel %vm700_vm1, %v679_v45, %v594_v54  ;;  %v987_v29 = vand.u32 4294901760, %v986_v44 }
 0x111   : > { %2253 = vmatmul.mubr.f32.gmra.mrb[16].mxu0 %v985_v1  ;;  %v7285_v62 = vsub.f32 %v744_v20, %v7278_v55  ;;  %982 = vmatprep.mubr.f32.mxu1 %v9260_v56  ;;  %v745_v60 = vsel %vm733_vm2, %v712_v28, 0.0  ;;  %v997_v6 = vsub.f32 %v7270_v39, %v996_v38 }
 0x112   : > { %2258 = vmatprep.mubr.f32.mxu0 %v9260_v56  ;;  %5185 = vmatpush1.bf16.msra.mxu1 %v5184_v53  ;;  %v7294_v7 = vand.u32 4294901760, %v745_v60  ;;  %v468_v42 = vpop.permute.xlu0 %467  ;;  %v596_v27 = vpop.permute.xlu1 %595  ;;  %v6066_v53 = vld [vmem:[%s6560_s23 + $0x28] sm:$0xff] }
 0x113   : > { %9281 = vst [vmem:[#allocation56_spill] sm:$0xff] %v7285_v62  ;;  %5283 = vmatprep.subr.bf16.mxu0 %v6531_v12  ;;  %v1007_v3 = vand.u32 4294901760, %v7285_v62  ;;  %5187 = vmatprep.subr.bf16.mxu1 %v5186_v21  ;;  %v680_v47 = vsel %vm667_vm0, %v391_v22, %v468_v42  ;;  %v998_v36 = vand.u32 4294901760, %v997_v6  ;;  %v393_v21 = vld [vmem:[%s6959_s12 + $0x70] sm:$0xff] }
 0x114   : > { %3914 = vrot.lane.b32.xlu1 %v6064_v37, %s6168_s9  ;;  %988 = vmatmul.mubr.f32.gmra.mrb[16].mxu1 %v987_v29  ;;  %v7301_v1 = vsub.f32 %v745_v60, %v7294_v7  ;;  %v713_v12 = vsel %vm700_vm1, %v680_v47, %v596_v27  ;;  %v6067_v60 = vld [vmem:[%s6560_s23 + $0x30] sm:$0xff] }
 0x115   : > { %2262 = vmatmul.mubr.f32.gmra.mrb[18].mxu0 %v996_v38  ;;  %993 = vmatprep.mubr.f32.mxu1 %v9260_v56  ;;  %v746_v26 = vsel %vm733_vm2, %v713_v12, 0.0  ;;  %v1008_v23 = vsub.f32 %v7285_v62, %v1007_v3  ;;  %v394_v12 = vld [vmem:[%s6959_s12 + $0x78] sm:$0xff] }
 0x116   : > { %9282 = vst [vmem:[#allocation57_spill] sm:$0xff] %v7301_v1  ;;  %2267 = vmatprep.mubr.f32.mxu0 %v9260_v56  ;;  %3916 = vrot.lane.b32.xlu0 %v6065_v48, %s6168_s9  ;;  %v7311_v30 = vand.u32 4294901760, %v746_v26  ;;  %v470_v20 = vpop.permute.xlu0 %469  ;;  %v598_v50 = vpop.permute.xlu1 %597  ;;  %v1018_v44 = vand.u32 4294901760, %v7301_v1 }
 0x117   : > { %v681_v52 = vsel %vm667_vm0, %v392_v43, %v470_v20  ;;  %v1009_v28 = vand.u32 4294901760, %v1008_v23 }
 0x118   : > { %3918 = vrot.lane.b32.xlu1 %v6066_v53, %s6168_s9  ;;  %999 = vmatmul.mubr.f32.gmra.mrb[18].mxu1 %v998_v36  ;;  %v7318_v54 = vsub.f32 %v746_v26, %v7311_v30  ;;  %v714_v38 = vsel %vm700_vm1, %v681_v52, %v598_v50  ;;  %v1019_v22 = vsub.f32 %v7301_v1, %v1018_v44  ;;  %v9285_v36 = vld [vmem:[#allocation34_spill] sm:$0xff] }
 0x119   : > { %2271 = vmatmul.mubr.f32.gmra.mrb[20].mxu0 %v1007_v3  ;;  %1004 = vmatprep.mubr.f32.mxu1 %v9260_v56  ;;  %v747_v45 = vsel %vm733_vm2, %v714_v38, 0.0 }
 0x11a   : > { %9283 = vst [vmem:[#allocation58_spill] sm:$0xff] %v7318_v54  ;;  %2276 = vmatprep.mubr.f32.mxu0 %v9260_v56  ;;  %3920 = vrot.lane.b32.xlu0 %v6067_v60, %s6168_s9  ;;  %v7328_v29 = vand.u32 4294901760, %v747_v45  ;;  %v472_v6 = vpop.permute.xlu0 %471  ;;  %v600_v42 = vpop.permute.xlu1 %599  ;;  %v1029_v27 = vand.u32 4294901760, %v7318_v54  ;;  %v1020_v26 = vand.u32 4294901760, %v1019_v22  ;;  %v9288_v60 = vld [vmem:[#allocation37_spill] sm:$0xff] }
 0x11b   : > { %v682_v3 = vsel %vm667_vm0, %v393_v21, %v472_v6  ;;  %v395_v21 = vld [vmem:[%s6959_s12 + $0x80] sm:$0xff] }
 0x11c   : > { %3922 = vrot.lane.b32.xlu1 %v6766_v25, %s6168_s9  ;;  %1010 = vmatmul.mubr.f32.gmra.mrb[20].mxu1 %v1009_v28  ;;  %v7335_v37 = vsub.f32 %v747_v45, %v7328_v29  ;;  %v715_v47 = vsel %vm700_vm1, %v682_v3, %v600_v42  ;;  %v1030_v25 = vsub.f32 %v7318_v54, %v1029_v27 }
 0x11d   : > { %2280 = vmatmul.mubr.f32.gmra.mrb[22].mxu0 %v1018_v44  ;;  %1015 = vmatprep.mubr.f32.mxu1 %v9260_v56  ;;  %v748_v43 = vsel %vm733_vm2, %v715_v47, 0.0  ;;  %v9286_v44 = vld [vmem:[#allocation36_spill] sm:$0xff]  ;;  %v9289_v47 = vld [vmem:[#allocation38_spill] sm:$0xff] }
 0x11e   : > { %9284 = vst [vmem:[#allocation59_spill] sm:$0xff] %v7335_v37  ;;  %2285 = vmatprep.mubr.f32.mxu0 %v9260_v56  ;;  %3924 = vrot.lane.b32.xlu0 %v9285_v36, %s6168_s9  ;;  %v7345_v23 = vand.u32 4294901760, %v748_v43  ;;  %v474_v48 = vpop.permute.xlu0 %473  ;;  %v602_v20 = vpop.permute.xlu1 %601  ;;  %v1040_v50 = vand.u32 4294901760, %v7335_v37  ;;  %v1031_v28 = vand.u32 4294901760, %v1030_v25  ;;  %v396_v25 = vld [vmem:[%s6959_s12 + $0x88] sm:$0xff] }
 0x11f   : > { %v683_v53 = vsel %vm667_vm0, %v394_v12, %v474_v48 }
 0x120   : > { %3926 = vrot.lane.b32.xlu1 %v9286_v44, %s6168_s9  ;;  %1021 = vmatmul.mubr.f32.gmra.mrb[22].mxu1 %v1020_v26  ;;  %v7352_v52 = vsub.f32 %v748_v43, %v7345_v23  ;;  %v716_v38 = vsel %vm700_vm1, %v683_v53, %v602_v20  ;;  %v1041_v22 = vsub.f32 %v7335_v37, %v1040_v50  ;;  %v9291_v44 = vld [vmem:[#allocation39_spill] sm:$0xff] }
 0x121   : > { %2289 = vmatmul.mubr.f32.gmra.mrb[24].mxu0 %v1029_v27  ;;  %1026 = vmatprep.mubr.f32.mxu1 %v9260_v56  ;;  %v749_v45 = vsel %vm733_vm2, %v716_v38, 0.0 }
 0x122   : > { %9287 = vst [vmem:[#allocation34_spill] sm:$0xff] %v7352_v52  ;;  %2294 = vmatprep.mubr.f32.mxu0 %v9260_v56  ;;  %3928 = vrot.lane.b32.xlu0 %v9288_v60, %s6168_s9  ;;  %v7362_v6 = vand.u32 4294901760, %v749_v45  ;;  %v476_v42 = vpop.permute.xlu0 %475  ;;  %v604_v27 = vpop.permute.xlu1 %603  ;;  %v1051_v3 = vand.u32 4294901760, %v7352_v52  ;;  %v1042_v48 = vand.u32 4294901760, %v1041_v22 }
 0x123   : > { %v684_v12 = vsel %vm667_vm0, %v395_v21, %v476_v42  ;;  %v397_v42 = vld [vmem:[%s6959_s12 + $0x90] sm:$0xff] }
 0x124   : > { %3930 = vrot.lane.b32.xlu1 %v9289_v47, %s6168_s9  ;;  %1032 = vmatmul.mubr.f32.gmra.mrb[24].mxu1 %v1031_v28  ;;  %v7369_v43 = vsub.f32 %v749_v45, %v7362_v6  ;;  %v717_v26 = vsel %vm700_vm1, %v684_v12, %v604_v27  ;;  %v1052_v20 = vsub.f32 %v7352_v52, %v1051_v3  ;;  %v9292_v45 = vld [vmem:[#allocation40_spill] sm:$0xff] }
 0x125   : > { %2298 = vmatmul.mubr.f32.gmra.mrb[26].mxu0 %v1040_v50  ;;  %1037 = vmatprep.mubr.f32.mxu1 %v9260_v56  ;;  %v750_v36 = vsel %vm733_vm2, %v717_v26, 0.0  ;;  %v9294_v26 = vld [vmem:[#allocation41_spill] sm:$0xff] }
 0x126   : > { %9290 = vst [vmem:[#allocation36_spill] sm:$0xff] %v7369_v43  ;;  %2303 = vmatprep.mubr.f32.mxu0 %v9260_v56  ;;  %3932 = vrot.lane.b32.xlu0 %v9291_v44, %s6168_s9  ;;  %v7379_v50 = vand.u32 4294901760, %v750_v36  ;;  %v478_v53 = vpop.permute.xlu0 %477  ;;  %v606_v38 = vpop.permute.xlu1 %605  ;;  %v1062_v21 = vand.u32 4294901760, %v7369_v43  ;;  %v1053_v47 = vand.u32 4294901760, %v1052_v20  ;;  %v9295_v44 = vld [vmem:[#allocation42_spill] sm:$0xff] }
 0x127   : > { %v685_v28 = vsel %vm667_vm0, %v396_v25, %v478_v53 }
 0x128   : > { %3934 = vrot.lane.b32.xlu1 %v9292_v45, %s6168_s9  ;;  %1043 = vmatmul.mubr.f32.gmra.mrb[26].mxu1 %v1042_v48  ;;  %v7386_v22 = vsub.f32 %v750_v36, %v7379_v50  ;;  %v718_v60 = vsel %vm700_vm1, %v685_v28, %v606_v38  ;;  %v1063_v12 = vsub.f32 %v7369_v43, %v1062_v21  ;;  %v398_v45 = vld [vmem:[%s6959_s12 + $0x98] sm:$0xff] }
 0x129   : > { %2307 = vmatmul.mubr.f32.gmra.mrb[28].mxu0 %v1051_v3  ;;  %1048 = vmatprep.mubr.f32.mxu1 %v9260_v56  ;;  %v751_v27 = vsel %vm733_vm2, %v718_v60, 0.0 }
 0x12a   : > { %9293 = vst [vmem:[#allocation37_spill] sm:$0xff] %v7386_v22  ;;  %2312 = vmatprep.mubr.f32.mxu0 %v9260_v56  ;;  %3936 = vrot.lane.b32.xlu0 %v9294_v26, %s6168_s9  ;;  %v7396_v3 = vand.u32 4294901760, %v751_v27  ;;  %v480_v25 = vpop.permute.xlu0 %479  ;;  %v608_v36 = vpop.permute.xlu1 %607  ;;  %v1073_v48 = vand.u32 4294901760, %v7386_v22  ;;  %v1064_v60 = vand.u32 4294901760, %v1063_v12 }
 0x12b   : > { %v686_v53 = vsel %vm667_vm0, %v397_v42, %v480_v25  ;;  %v9297_v42 = vld [vmem:[#allocation43_spill] sm:$0xff] }
 0x12c   : > { %3938 = vrot.lane.b32.xlu1 %v9295_v44, %s6168_s9  ;;  %1054 = vmatmul.mubr.f32.gmra.mrb[28].mxu1 %v1053_v47  ;;  %v7403_v20 = vsub.f32 %v751_v27, %v7396_v3  ;;  %v719_v38 = vsel %vm700_vm1, %v686_v53, %v608_v36  ;;  %v1074_v26 = vsub.f32 %v7386_v22, %v1073_v48  ;;  %v9298_v36 = vld [vmem:[#allocation44_spill] sm:$0xff] }
 0x12d   : > { %2316 = vmatmul.mubr.f32.gmra.mrb[30].mxu0 %v1062_v21  ;;  %1059 = vmatprep.mubr.f32.mxu1 %v9260_v56  ;;  %v752_v28 = vsel %vm733_vm2, %v719_v38, 0.0  ;;  %v399_v38 = vld [vmem:[%s6959_s12 + $0xa0] sm:$0xff] }
 0x12e   : > { %9296 = vst [vmem:[#allocation38_spill] sm:$0xff] %v7403_v20  ;;  %2321 = vmatprep.mubr.f32.mxu0 %v9260_v56  ;;  %3940 = vrot.lane.b32.xlu0 %v9297_v42, %s6168_s9  ;;  %v7413_v21 = vand.u32 4294901760, %v752_v28  ;;  %v482_v27 = vpop.permute.xlu0 %481  ;;  %v610_v47 = vpop.permute.xlu1 %609  ;;  %v1084_v25 = vand.u32 4294901760, %v7403_v20  ;;  %v1075_v22 = vand.u32 4294901760, %v1074_v26 }
 0x12f   : > { %v687_v44 = vsel %vm667_vm0, %v398_v45, %v482_v27  ;;  %v9300_v45 = vld [vmem:[#allocation45_spill] sm:$0xff] }
 0x130   : > { %3942 = vrot.lane.b32.xlu1 %v9298_v36, %s6168_s9  ;;  %1065 = vmatmul.mubr.f32.gmra.mrb[30].mxu1 %v1064_v60  ;;  %v7420_v12 = vsub.f32 %v752_v28, %v7413_v21  ;;  %v720_v53 = vsel %vm700_vm1, %v687_v44, %v610_v47  ;;  %v1085_v36 = vsub.f32 %v7403_v20, %v1084_v25  ;;  %v9301_v47 = vld [vmem:[#allocation46_spill] sm:$0xff] }
 0x131   : > { %2325 = vmatmul.mubr.f32.gmra.mrb[32].mxu0 %v1073_v48  ;;  %1070 = vmatprep.mubr.f32.mxu1 %v9260_v56  ;;  %v753_v42 = vsel %vm733_vm2, %v720_v53, 0.0 }
 0x132   : > { %9299 = vst [vmem:[#allocation39_spill] sm:$0xff] %v7420_v12  ;;  %2330 = vmatprep.mubr.f32.mxu0 %v9260_v56  ;;  %3944 = vrot.lane.b32.xlu0 %v9300_v45, %s6168_s9  ;;  %v7430_v48 = vand.u32 4294901760, %v753_v42  ;;  %v484_v28 = vpop.permute.xlu0 %483  ;;  %v612_v60 = vpop.permute.xlu1 %611  ;;  %v1095_v27 = vand.u32 4294901760, %v7420_v12  ;;  %v400_v45 = vld [vmem:[%s6959_s12 + $0xa8] sm:$0xff]  ;;  %v1086_v43 = vand.u32 4294901760, %v1085_v36 }
 0x133   : > { %v688_v44 = vsel %vm667_vm0, %v399_v38, %v484_v28  ;;  %v6068_v38 = vld [vmem:[%s6560_s23 + $0xa0] sm:$0xff] }
 0x134   : > { %3946 = vrot.lane.b32.xlu1 %v9301_v47, %s6168_s9  ;;  %1076 = vmatmul.mubr.f32.gmra.mrb[32].mxu1 %v1075_v22  ;;  %v7437_v26 = vsub.f32 %v753_v42, %v7430_v48  ;;  %v721_v53 = vsel %vm700_vm1, %v688_v44, %v612_v60  ;;  %v1096_v47 = vsub.f32 %v7420_v12, %v1095_v27  ;;  %v6069_v60 = vld [vmem:[%s6560_s23 + $0xa8] sm:$0xff] }
 0x135   : > { %2334 = vmatmul.mubr.f32.gmra.mrb[34].mxu0 %v1084_v25  ;;  %1081 = vmatprep.mubr.f32.mxu1 %v9260_v56  ;;  %v754_v20 = vsel %vm733_vm2, %v721_v53, 0.0 }
 0x136   : > { %9302 = vst [vmem:[#allocation40_spill] sm:$0xff] %v7437_v26  ;;  %2339 = vmatprep.mubr.f32.mxu0 %v9260_v56  ;;  %3948 = vrot.lane.b32.xlu0 %v6068_v38, %s6168_s9  ;;  %v7447_v22 = vand.u32 4294901760, %v754_v20  ;;  %v486_v25 = vpop.permute.xlu0 %485  ;;  %v614_v42 = vpop.permute.xlu1 %613  ;;  %v1106_v28 = vand.u32 4294901760, %v7437_v26  ;;  %v401_v38 = vld [vmem:[%s6959_s12 + $0xb0] sm:$0xff]  ;;  %v1097_v52 = vand.u32 4294901760, %v1096_v47 }
 0x137   : > { %v689_v44 = vsel %vm667_vm0, %v400_v45, %v486_v25  ;;  %v6070_v45 = vld [vmem:[%s6560_s23 + $0xb0] sm:$0xff] }
 0x138   : > { %3950 = vrot.lane.b32.xlu1 %v6069_v60, %s6168_s9  ;;  %1087 = vmatmul.mubr.f32.gmra.mrb[34].mxu1 %v1086_v43  ;;  %v7454_v36 = vsub.f32 %v754_v20, %v7447_v22  ;;  %v722_v53 = vsel %vm700_vm1, %v689_v44, %v614_v42  ;;  %v1107_v60 = vsub.f32 %v7437_v26, %v1106_v28  ;;  %v6071_v42 = vld [vmem:[%s6560_s23 + $0xb8] sm:$0xff] }
 0x139   : > { %2343 = vmatmul.mubr.f32.gmra.mrb[36].mxu0 %v1095_v27  ;;  %1092 = vmatprep.mubr.f32.mxu1 %v9260_v56  ;;  %v755_v12 = vsel %vm733_vm2, %v722_v53, 0.0 }
 0x13a   : > { %9303 = vst [vmem:[#allocation41_spill] sm:$0xff] %v7454_v36  ;;  %2348 = vmatprep.mubr.f32.mxu0 %v9260_v56  ;;  %3952 = vrot.lane.b32.xlu0 %v6070_v45, %s6168_s9  ;;  %v7464_v43 = vand.u32 4294901760, %v755_v12  ;;  %v488_v20 = vpop.permute.xlu0 %487  ;;  %v616_v27 = vpop.permute.xlu1 %615  ;;  %v1117_v25 = vand.u32 4294901760, %v7454_v36  ;;  %v402_v45 = vld [vmem:[%s6959_s12 + $0xb8] sm:$0xff]  ;;  %v1108_v37 = vand.u32 4294901760, %v1107_v60 }
 0x13b   : > { %v690_v44 = vsel %vm667_vm0, %v401_v38, %v488_v20  ;;  %v6072_v38 = vld [vmem:[%s6560_s23 + $0xc0] sm:$0xff] }
 0x13c   : > { %3954 = vrot.lane.b32.xlu1 %v6071_v42, %s6168_s9  ;;  %1098 = vmatmul.mubr.f32.gmra.mrb[36].mxu1 %v1097_v52  ;;  %v7471_v47 = vsub.f32 %v755_v12, %v7464_v43  ;;  %v723_v53 = vsel %vm700_vm1, %v690_v44, %v616_v27  ;;  %v1118_v42 = vsub.f32 %v7454_v36, %v1117_v25  ;;  %v6073_v27 = vld [vmem:[%s6560_s23 + $0xc8] sm:$0xff] }
 0x13d   : > { %2352 = vmatmul.mubr.f32.gmra.mrb[38].mxu0 %v1106_v28  ;;  %1103 = vmatprep.mubr.f32.mxu1 %v9260_v56  ;;  %v756_v26 = vsel %vm733_vm2, %v723_v53, 0.0 }
 0x13e   : > { %9304 = vst [vmem:[#allocation42_spill] sm:$0xff] %v7471_v47  ;;  %2357 = vmatprep.mubr.f32.mxu0 %v9260_v56  ;;  %3956 = vrot.lane.b32.xlu0 %v6072_v38, %s6168_s9  ;;  %v7481_v52 = vand.u32 4294901760, %v756_v26  ;;  %v490_v12 = vpop.permute.xlu0 %489  ;;  %v618_v28 = vpop.permute.xlu1 %617  ;;  %v1128_v20 = vand.u32 4294901760, %v7471_v47  ;;  %v403_v38 = vld [vmem:[%s6959_s12 + $0xc0] sm:$0xff]  ;;  %v1119_v54 = vand.u32 4294901760, %v1118_v42 }
 0x13f   : > { %v691_v44 = vsel %vm667_vm0, %v402_v45, %v490_v12  ;;  %v6074_v45 = vld [vmem:[%s6560_s23 + $0xd0] sm:$0xff] }
 0x140   : > { %3958 = vrot.lane.b32.xlu1 %v6073_v27, %s6168_s9  ;;  %1109 = vmatmul.mubr.f32.gmra.mrb[38].mxu1 %v1108_v37  ;;  %v7488_v60 = vsub.f32 %v756_v26, %v7481_v52  ;;  %v724_v53 = vsel %vm700_vm1, %v691_v44, %v618_v28  ;;  %v1129_v27 = vsub.f32 %v7471_v47, %v1128_v20  ;;  %v6075_v28 = vld [vmem:[%s6560_s23 + $0xd8] sm:$0xff] }
 0x141   : > { %2361 = vmatmul.mubr.f32.gmra.mrb[40].mxu0 %v1117_v25  ;;  %1114 = vmatprep.mubr.f32.mxu1 %v9260_v56  ;;  %v757_v36 = vsel %vm733_vm2, %v724_v53, 0.0 }
 0x142   : > { %9305 = vst [vmem:[#allocation43_spill] sm:$0xff] %v7488_v60  ;;  %2366 = vmatprep.mubr.f32.mxu0 %v9260_v56  ;;  %3960 = vrot.lane.b32.xlu0 %v6074_v45, %s6168_s9  ;;  %v7498_v37 = vand.u32 4294901760, %v757_v36  ;;  %v492_v26 = vpop.permute.xlu0 %491  ;;  %v620_v25 = vpop.permute.xlu1 %619  ;;  %v1139_v12 = vand.u32 4294901760, %v7488_v60  ;;  %v404_v45 = vld [vmem:[%s6959_s12 + $0xc8] sm:$0xff]  ;;  %v1130_v1 = vand.u32 4294901760, %v1129_v27 }
 0x143   : > { %v692_v44 = vsel %vm667_vm0, %v403_v38, %v492_v26  ;;  %v6076_v38 = vld [vmem:[%s6560_s23 + $0xe0] sm:$0xff] }
 0x144   : > { %3962 = vrot.lane.b32.xlu1 %v6075_v28, %s6168_s9  ;;  %1120 = vmatmul.mubr.f32.gmra.mrb[40].mxu1 %v1119_v54  ;;  %v7505_v42 = vsub.f32 %v757_v36, %v7498_v37  ;;  %v725_v53 = vsel %vm700_vm1, %v692_v44, %v620_v25  ;;  %v1140_v28 = vsub.f32 %v7488_v60, %v1139_v12  ;;  %v6077_v25 = vld [vmem:[%s6560_s23 + $0xe8] sm:$0xff]  ;;  %s8947_s23 = scalar_lea.vmem %s6236_s30, %s5055_s10 }
 0x145   : > { %2370 = vmatmul.mubr.f32.gmra.mrb[42].mxu0 %v1128_v20  ;;  %1125 = vmatprep.mubr.f32.mxu1 %v9260_v56  ;;  %v758_v47 = vsel %vm733_vm2, %v725_v53, 0.0 }
 0x146   : > { %9306 = vst [vmem:[#allocation44_spill] sm:$0xff] %v7505_v42  ;;  %2375 = vmatprep.mubr.f32.mxu0 %v9260_v56  ;;  %3964 = vrot.lane.b32.xlu0 %v6076_v38, %s6168_s9  ;;  %v7515_v54 = vand.u32 4294901760, %v758_v47  ;;  %v494_v36 = vpop.permute.xlu0 %493  ;;  %v622_v20 = vpop.permute.xlu1 %621  ;;  %v1150_v26 = vand.u32 4294901760, %v7505_v42  ;;  %v405_v38 = vld [vmem:[%s6959_s12 + $0xd0] sm:$0xff]  ;;  %v1141_v62 = vand.u32 4294901760, %v1140_v28 }
 0x147   : > { %v693_v44 = vsel %vm667_vm0, %v404_v45, %v494_v36 }
 0x148   : > { %3966 = vrot.lane.b32.xlu1 %v6077_v25, %s6168_s9  ;;  %1131 = vmatmul.mubr.f32.gmra.mrb[42].mxu1 %v1130_v1  ;;  %v7522_v27 = vsub.f32 %v758_v47, %v7515_v54  ;;  %v726_v53 = vsel %vm700_vm1, %v693_v44, %v622_v20  ;;  %v1151_v25 = vsub.f32 %v7505_v42, %v1150_v26 }
 0x149   : > { %2379 = vmatmul.mubr.f32.gmra.mrb[44].mxu0 %v1139_v12  ;;  %1136 = vmatprep.mubr.f32.mxu1 %v9260_v56  ;;  %v759_v60 = vsel %vm733_vm2, %v726_v53, 0.0 }
 0x14a   : > { %9307 = vst [vmem:[#allocation45_spill] sm:$0xff] %v7522_v27  ;;  %2384 = vmatprep.mubr.f32.mxu0 %v9260_v56  ;;  %3968 = vrot.lane.b32.xlu0 %v6999_v57, %s6168_s9  ;;  %v7532_v1 = vand.u32 4294901760, %v759_v60  ;;  %v496_v47 = vpop.permute.xlu0 %495  ;;  %v624_v12 = vpop.permute.xlu1 %623  ;;  %v1161_v45 = vand.u32 4294901760, %v7522_v27  ;;  %v406_v57 = vld [vmem:[%s6959_s12 + $0xd8] sm:$0xff]  ;;  %v1152_v53 = vand.u32 4294901760, %v1151_v25  ;;  %v407_v25 = vld [vmem:[%s6959_s12 + $0xe0] sm:$0xff] }
 0x14b   : > { %v694_v36 = vsel %vm667_vm0, %v405_v38, %v496_v47 }
 0x14c   : > { %3970 = vrot.lane.b32.xlu1 %v7023_v19, %s6168_s9  ;;  %1142 = vmatmul.mubr.f32.gmra.mrb[44].mxu1 %v1141_v62  ;;  %v7539_v28 = vsub.f32 %v759_v60, %v7532_v1  ;;  %v727_v20 = vsel %vm700_vm1, %v694_v36, %v624_v12  ;;  %v1162_v19 = vsub.f32 %v7522_v27, %v1161_v45 }
 0x14d   : > { %2388 = vmatmul.mubr.f32.gmra.mrb[46].mxu0 %v1150_v26  ;;  %1147 = vmatprep.mubr.f32.mxu1 %v9260_v56  ;;  %v760_v44 = vsel %vm733_vm2, %v727_v20, 0.0 }
 0x14e   : > { %9308 = vst [vmem:[#allocation46_spill] sm:$0xff] %v7539_v28  ;;  %2393 = vmatprep.mubr.f32.mxu0 %v9260_v56  ;;  %v7547_v42 = vand.u32 4294901760, %v760_v44  ;;  %v498_v62 = vpop.permute.xlu0 %497  ;;  %v626_v26 = vpop.permute.xlu1 %625  ;;  %v1172_v60 = vand.u32 4294901760, %v7539_v28  ;;  %v1163_v20 = vand.u32 4294901760, %v1162_v19  ;;  %v408_v19 = vld [vmem:[%s6959_s12 + $0xe8] sm:$0xff] }
 0x14f   : > { %v695_v38 = vsel %vm667_vm0, %v406_v57, %v498_v62 }
 0x150   : > { %1153 = vmatmul.mubr.f32.gmra.mrb[46].mxu1 %v1152_v53  ;;  %v7552_v47 = vsub.f32 %v760_v44, %v7547_v42  ;;  %v728_v12 = vsel %vm700_vm1, %v695_v38, %v626_v26  ;;  %v1173_v27 = vsub.f32 %v7539_v28, %v1172_v60 }
 0x151   : > { %2397 = vmatmul.mubr.f32.gmra.mrb[48].mxu0 %v1161_v45  ;;  %1158 = vmatprep.mubr.f32.mxu1 %v9260_v56  ;;  %v761_v36 = vsel %vm733_vm2, %v728_v12, 0.0 }
 0x152   : > { %9309 = vst [vmem:[#allocation60_spill] sm:$0xff] %v7552_v47  ;;  %2402 = vmatprep.mubr.f32.mxu0 %v9260_v56  ;;  %v7560_v39 = vand.u32 4294901760, %v761_v36  ;;  %v500_v57 = vpop.permute.xlu0 %499  ;;  %v628_v45 = vpop.permute.xlu1 %627  ;;  %v1183_v44 = vand.u32 4294901760, %v7552_v47  ;;  %v1174_v12 = vand.u32 4294901760, %v1173_v27  ;;  %v409_v27 = vld [vmem:[%s6959_s12 + $0xf0] sm:$0xff] }
 0x153   : > { %v696_v53 = vsel %vm667_vm0, %v407_v25, %v500_v57 }
 0x154   : > { %1164 = vmatmul.mubr.f32.gmra.mrb[48].mxu1 %v1163_v20  ;;  %v7565_v62 = vsub.f32 %v761_v36, %v7560_v39  ;;  %v729_v26 = vsel %vm700_vm1, %v696_v53, %v628_v45  ;;  %v1184_v28 = vsub.f32 %v7552_v47, %v1183_v44 }
 0x155   : > { %2406 = vmatmul.mubr.f32.gmra.mrb[50].mxu0 %v1172_v60  ;;  %1169 = vmatprep.mubr.f32.mxu1 %v9260_v56  ;;  %v762_v38 = vsel %vm733_vm2, %v729_v26, 0.0 }
 0x156   : > { %9310 = vst [vmem:[#allocation61_spill] sm:$0xff] %v7565_v62  ;;  %2411 = vmatprep.mubr.f32.mxu0 %v9260_v56  ;;  %v7573_v34 = vand.u32 4294901760, %v762_v38  ;;  %v502_v25 = vpop.permute.xlu0 %501  ;;  %v630_v60 = vpop.permute.xlu1 %629  ;;  %v1194_v36 = vand.u32 4294901760, %v7565_v62  ;;  %v1185_v26 = vand.u32 4294901760, %v1184_v28  ;;  %v410_v28 = vld [vmem:[%s6959_s12 + $0xf8] sm:$0xff] }
 0x157   : > { %v697_v20 = vsel %vm667_vm0, %v408_v19, %v502_v25 }
 0x158   : > { %1175 = vmatmul.mubr.f32.gmra.mrb[50].mxu1 %v1174_v12  ;;  %v7578_v57 = vsub.f32 %v762_v38, %v7573_v34  ;;  %v730_v45 = vsel %vm700_vm1, %v697_v20, %v630_v60  ;;  %v1195_v47 = vsub.f32 %v7565_v62, %v1194_v36 }
 0x159   : > { %2415 = vmatmul.mubr.f32.gmra.mrb[52].mxu0 %v1183_v44  ;;  %1180 = vmatprep.mubr.f32.mxu1 %v9260_v56  ;;  %v763_v53 = vsel %vm733_vm2, %v730_v45, 0.0 }
 0x15a   : > { %9311 = vst [vmem:[#allocation62_spill] sm:$0xff] %v7578_v57  ;;  %2420 = vmatprep.mubr.f32.mxu0 %v9260_v56  ;;  %v7586_v17 = vand.u32 4294901760, %v763_v53  ;;  %v504_v19 = vpop.permute.xlu0 %503  ;;  %v632_v44 = vpop.permute.xlu1 %631  ;;  %v1205_v38 = vand.u32 4294901760, %v7578_v57  ;;  %v1196_v45 = vand.u32 4294901760, %v1195_v47 }
 0x15b   : > { %v698_v12 = vsel %vm667_vm0, %v409_v27, %v504_v19 }
 0x15c   : > { %1186 = vmatmul.mubr.f32.gmra.mrb[52].mxu1 %v1185_v26  ;;  %v7591_v25 = vsub.f32 %v763_v53, %v7586_v17  ;;  %v731_v60 = vsel %vm700_vm1, %v698_v12, %v632_v44  ;;  %v1206_v62 = vsub.f32 %v7578_v57, %v1205_v38 }
 0x15d   : > { %2424 = vmatmul.mubr.f32.gmra.mrb[54].mxu0 %v1194_v36  ;;  %1191 = vmatprep.mubr.f32.mxu1 %v9260_v56  ;;  %v764_v20 = vsel %vm733_vm2, %v731_v60, 0.0 }
 0x15e   : > { %2429 = vmatprep.mubr.f32.mxu0 %v9260_v56  ;;  %v7599_v24 = vand.u32 4294901760, %v764_v20  ;;  %v506_v27 = vpop.permute.xlu0 %505  ;;  %v634_v26 = vpop.permute.xlu1 %633  ;;  %v1216_v36 = vand.u32 4294901760, %v7591_v25  ;;  %v1207_v12 = vand.u32 4294901760, %v1206_v62 }
 0x15f   : > { %v699_v53 = vsel %vm667_vm0, %v410_v28, %v506_v27 }
 0x160   : > { %1197 = vmatmul.mubr.f32.gmra.mrb[54].mxu1 %v1196_v45  ;;  %v7604_v19 = vsub.f32 %v764_v20, %v7599_v24  ;;  %v732_v44 = vsel %vm700_vm1, %v699_v53, %v634_v26  ;;  %v1217_v60 = vsub.f32 %v7591_v25, %v1216_v36  ;;  %v9312_v53 = vld [vmem:[#allocation5_spill] sm:$0xff] }
 0x161   : > { %2433 = vmatmul.mubr.f32.gmra.mrb[56].mxu0 %v1205_v38  ;;  %1202 = vmatprep.mubr.f32.mxu1 %v9260_v56  ;;  %v765_v47 = vsel %vm733_vm2, %v732_v44, 0.0  ;;  %v9313_v44 = vld [vmem:[#allocation7_spill] sm:$0xff] }
 0x162   : > { %2438 = vmatprep.mubr.f32.mxu0 %v9260_v56  ;;  %v7611_v57 = vand.u32 4294901760, %v765_v47  ;;  %v1227_v28 = vand.u32 4294901760, %v7604_v19  ;;  %v1218_v20 = vand.u32 4294901760, %v1217_v60  ;;  %v9315_v60 = vld [vmem:[#allocation9_spill] sm:$0xff] }
 0x164   : > { %1208 = vmatmul.mubr.f32.gmra.mrb[56].mxu1 %v1207_v12  ;;  %v7615_v38 = vsub.f32 %v765_v47, %v7611_v57  ;;  %v1228_v45 = vsub.f32 %v7604_v19, %v1227_v28  ;;  %v5188_v47 = vpack.c.bf16 %v9313_v44, %v9312_v53  ;;  %v9314_v12 = vld [vmem:[#allocation6_spill] sm:$0xff]  ;;  %v9321_v53 = vld [vmem:[#allocation15_spill] sm:$0xff]  ;;  %v9322_v44 = vld [vmem:[#allocation16_spill] sm:$0xff] }
 0x165   : > { %2442 = vmatmul.mubr.f32.gmra.mrb[58].mxu0 %v1216_v36  ;;  %1213 = vmatprep.mubr.f32.mxu1 %v9260_v56 }
 0x166   : > { %2447 = vmatprep.mubr.f32.mxu0 %v9260_v56  ;;  %v1238_v62 = vand.u32 4294901760, %v7615_v38  ;;  %v1229_v27 = vand.u32 4294901760, %v1228_v45  ;;  %v9317_v45 = vld [vmem:[#allocation8_spill] sm:$0xff] }
 0x168   : > { %1219 = vmatmul.mubr.f32.gmra.mrb[58].mxu1 %v1218_v20  ;;  %v1239_v26 = vsub.f32 %v7615_v38, %v1238_v62 }
 0x169   : > { %2451 = vmatmul.mubr.f32.gmra.mrb[60].mxu0 %v1227_v28  ;;  %1224 = vmatprep.mubr.f32.mxu1 %v9260_v56  ;;  %v9316_v28 = vld [vmem:[#allocation10_spill] sm:$0xff] }
 0x16a   : > { %2456 = vmatprep.mubr.f32.mxu0 %v9260_v56  ;;  %v1240_v36 = vand.u32 4294901760, %v1239_v26  ;;  %v5190_v20 = vpack.c.bf16 %v9316_v28, %v9315_v60  ;;  %v9324_v60 = vld [vmem:[#allocation17_spill] sm:$0xff]  ;;  %v9325_v28 = vld [vmem:[#allocation19_spill] sm:$0xff] }
 0x16c   : > { %1230 = vmatmul.mubr.f32.gmra.mrb[60].mxu1 %v1229_v27  ;;  %v9319_v27 = vld [vmem:[#allocation13_spill] sm:$0xff] }
 0x16d   : > { %2460 = vmatmul.mubr.f32.gmra.mrb[62].mxu0 %v1238_v62  ;;  %1235 = vmatprep.mubr.f32.mxu1 %v9260_v56  ;;  %v9318_v62 = vld [vmem:[#allocation12_spill] sm:$0xff] }
 0x16e   : > { %2626 = vmatprep.mubr.f32.mxu0 %v9260_v56  ;;  %v5192_v26 = vpack.c.bf16 %v9319_v27, %v9318_v62  ;;  %v9327_v62 = vld [vmem:[#allocation20_spill] sm:$0xff] }
 0x16f   : > { %v5198_v27 = vpack.c.bf16 %v9327_v62, %v6618_v51  ;;  %v5206_v62 = vpack.c.bf16 %v6742_v10, %v6729_v61  ;;  %v5210_v61 = vpack.c.bf16 %v6771_v33, %v6757_v15  ;;  %v9338_v10 = vld [vmem:[#allocation31_spill] sm:$0xff]  ;;  %v5214_v15 = vpack.c.bf16 %v6793_v58, %v6791_v0  ;;  %v9340_v33 = vld [vmem:[#allocation33_spill] sm:$0xff] }
 0x170   : > { %1241 = vmatmul.mubr.f32.gmra.mrb[62].mxu1 %v1240_v36  ;;  %v9320_v36 = vld [vmem:[#allocation11_spill] sm:$0xff]  ;;  %v9344_v58 = vld [vmem:[#allocation49_spill] sm:$0xff] }
 0x171   : > { %2628 = vmatmul.mubr.f32.vlgmr.msra.gmra.mrb[0].mxu0 %v7020_v18  ;;  %1471 = vmatprep.mubr.f32.mxu1 %v9260_v56  ;;  %v9343_v0 = vld [vmem:[#allocation47_spill] sm:$0xff] }
 0x172   : > { %2633 = vmatprep.mubr.f32.mxu0 %v9260_v56  ;;  %5285 = vmatpush1.bf16.msra.mxu0 %v9314_v12  ;;  %v5194_v12 = vpack.c.bf16 %v9322_v44, %v9321_v53  ;;  %v9330_v53 = vld [vmem:[#allocation23_spill] sm:$0xff] }
 0x173   : > { %5287 = vmatprep.subr.bf16.mxu0 %v9317_v45  ;;  %v9326_v45 = vld [vmem:[#allocation18_spill] sm:$0xff] }
 0x174   : > { %1473 = vmatmul.mubr.f32.vlgmr.msra.gmra.mrb[0].mxu1 %v7020_v18 }
 0x175   : > { %2635 = vmatmul.mubr.f32.gmra.mrb[2].mxu0 %v7018_v13  ;;  %5189 = vmatpush1.bf16.msra.mxu1 %v5188_v47  ;;  %v9323_v47 = vld [vmem:[#allocation14_spill] sm:$0xff] }
 0x176   : > { %1478 = vmatprep.mubr.f32.mxu1 %v9260_v56  ;;  %2640 = vmatprep.mubr.f32.mxu0 %v9260_v56 }
 0x177   : > { %5191 = vmatprep.subr.bf16.mxu1 %v5190_v20  ;;  %5289 = vmatpush1.bf16.msra.mxu0 %v9320_v36  ;;  %v5196_v20 = vpack.c.bf16 %v9325_v28, %v9324_v60  ;;  %v9329_v36 = vld [vmem:[#allocation22_spill] sm:$0xff]  ;;  %v9333_v60 = vld [vmem:[#allocation27_spill] sm:$0xff]  ;;  %v9334_v28 = vld [vmem:[#allocation25_spill] sm:$0xff] }
 0x178   : > { %1480 = vmatmul.mubr.f32.gmra.mrb[2].mxu1 %v7018_v13  ;;  %5291 = vmatprep.subr.bf16.mxu0 %v9323_v47  ;;  %v5200_v44 = vpack.c.bf16 %v9330_v53, %v9329_v36  ;;  %v9332_v47 = vld [vmem:[#allocation26_spill] sm:$0xff] }
 0x179   : > { %2642 = vmatmul.mubr.f32.gmra.mrb[4].mxu0 %v7072_v9  ;;  %1485 = vmatprep.mubr.f32.mxu1 %v9260_v56  ;;  %v5202_v51 = vpack.c.bf16 %v9333_v60, %v9332_v47 }
 0x17a   : > { %2647 = vmatprep.mubr.f32.mxu0 %v9260_v56  ;;  %5193 = vmatpush1.bf16.msra.mxu1 %v5192_v26  ;;  %v9328_v26 = vld [vmem:[#allocation21_spill] sm:$0xff] }
 0x17b   : > { %5195 = vmatprep.subr.bf16.mxu1 %v5194_v12  ;;  %5293 = vmatpush1.bf16.msra.mxu0 %v9326_v45  ;;  %v9331_v12 = vld [vmem:[#allocation24_spill] sm:$0xff] }
 0x17c   : > { %1487 = vmatmul.mubr.f32.gmra.mrb[4].mxu1 %v7072_v9  ;;  %5295 = vmatprep.subr.bf16.mxu0 %v9328_v26  ;;  %v9335_v45 = vld [vmem:[#allocation28_spill] sm:$0xff] }
 0x17d   : > { %2649 = vmatmul.mubr.f32.gmra.mrb[6].mxu0 %v7096_v11  ;;  %1492 = vmatprep.mubr.f32.mxu1 %v9260_v56 }
 0x17e   : > { %2654 = vmatprep.mubr.f32.mxu0 %v9260_v56  ;;  %5197 = vmatpush1.bf16.msra.mxu1 %v5196_v20  ;;  %v5204_v20 = vpack.c.bf16 %v6710_v32, %v6708_v31  ;;  %v5208_v31 = vpack.c.bf16 %v6753_v2, %v6746_v4  ;;  %v9337_v32 = vld [vmem:[#allocation30_spill] sm:$0xff]  ;;  %v5212_v4 = vpack.c.bf16 %v6783_v63, %v6778_v49  ;;  %v9339_v2 = vld [vmem:[#allocation32_spill] sm:$0xff]  ;;  %v9341_v63 = vld [vmem:[#allocation35_spill] sm:$0xff] }
 0x17f   : > { %5199 = vmatprep.subr.bf16.mxu1 %v5198_v27  ;;  %5297 = vmatpush1.bf16.msra.mxu0 %v9331_v12  ;;  %v9336_v27 = vld [vmem:[#allocation29_spill] sm:$0xff]  ;;  %v5216_v49 = vpack.c.bf16 %v6801_v5, %v6799_v40  ;;  %v9342_v5 = vld [vmem:[#allocation48_spill] sm:$0xff]  ;;  %v9345_v40 = vld [vmem:[#allocation50_spill] sm:$0xff] }
 0x180   : > { %1494 = vmatmul.mubr.f32.gmra.mrb[6].mxu1 %v7096_v11  ;;  %5299 = vmatprep.subr.bf16.mxu0 %v9334_v28 }
 0x181   : > { %2656 = vmatmul.mubr.f32.gmra.mrb[8].mxu0 %v7135_v35  ;;  %1499 = vmatprep.mubr.f32.mxu1 %v9260_v56 }
 0x182   : > { %2661 = vmatprep.mubr.f32.mxu0 %v9260_v56  ;;  %5201 = vmatpush1.bf16.msra.mxu1 %v5200_v44 }
 0x183   : > { %5203 = vmatprep.subr.bf16.mxu1 %v5202_v51  ;;  %5301 = vmatpush1.bf16.msra.mxu0 %v9335_v45 }
 0x184   : > { %1501 = vmatmul.mubr.f32.gmra.mrb[8].mxu1 %v7135_v35  ;;  %5303 = vmatprep.subr.bf16.mxu0 %v9336_v27 }
 0x185   : > { %2663 = vmatmul.mubr.f32.gmra.mrb[10].mxu0 %v7163_v46  ;;  %1506 = vmatprep.mubr.f32.mxu1 %v9260_v56 }
 0x186   : > { %2668 = vmatprep.mubr.f32.mxu0 %v9260_v56  ;;  %5205 = vmatpush1.bf16.msra.mxu1 %v5204_v20 }
 0x187   : > { %5207 = vmatprep.subr.bf16.mxu1 %v5206_v62  ;;  %5305 = vmatpush1.bf16.msra.mxu0 %v9337_v32 }
 0x188   : > { %1508 = vmatmul.mubr.f32.gmra.mrb[10].mxu1 %v7163_v46  ;;  %5307 = vmatprep.subr.bf16.mxu0 %v9338_v10 }
 0x189   : > { %2670 = vmatmul.mubr.f32.gmra.mrb[12].mxu0 %v7196_v14  ;;  %1513 = vmatprep.mubr.f32.mxu1 %v9260_v56 }
 0x18a   : > { %2675 = vmatprep.mubr.f32.mxu0 %v9260_v56  ;;  %5209 = vmatpush1.bf16.msra.mxu1 %v5208_v31 }
 0x18b   : > { %5211 = vmatprep.subr.bf16.mxu1 %v5210_v61  ;;  %5309 = vmatpush1.bf16.msra.mxu0 %v9339_v2 }
 0x18c   : > { %1515 = vmatmul.mubr.f32.gmra.mrb[12].mxu1 %v7196_v14  ;;  %5311 = vmatprep.subr.bf16.mxu0 %v9340_v33 }
 0x18d   : > { %2677 = vmatmul.mubr.f32.gmra.mrb[14].mxu0 %v7219_v41  ;;  %1520 = vmatprep.mubr.f32.mxu1 %v9260_v56 }
 0x18e   : > { %2682 = vmatprep.mubr.f32.mxu0 %v9260_v56  ;;  %5213 = vmatpush1.bf16.msra.mxu1 %v5212_v4 }
 0x18f   : > { %5215 = vmatprep.subr.bf16.mxu1 %v5214_v15  ;;  %5313 = vmatpush1.bf16.msra.mxu0 %v9341_v63 }
 0x190   : > { %1522 = vmatmul.mubr.f32.gmra.mrb[14].mxu1 %v7219_v41 }
 0x191   : > { %2684 = vmatmul.mubr.f32.gmra.mrb[16].mxu0 %v7244_v8  ;;  %1527 = vmatprep.mubr.f32.mxu1 %v9260_v56 }
 0x192   : > { %2689 = vmatprep.mubr.f32.mxu0 %v9260_v56  ;;  %5217 = vmatpush1.bf16.msra.mxu1 %v5216_v49 }
 0x194   : > { %1529 = vmatmul.mubr.f32.gmra.mrb[16].mxu1 %v7244_v8 }
 0x195   : > { %2691 = vmatmul.mubr.f32.gmra.mrb[18].mxu0 %v7263_v59  ;;  %1534 = vmatprep.mubr.f32.mxu1 %v9260_v56 }
 0x196   : > { %2696 = vmatprep.mubr.f32.mxu0 %v9260_v56 }
 0x198   : > { %1536 = vmatmul.mubr.f32.gmra.mrb[18].mxu1 %v7263_v59 }
 0x199   : > { %2698 = vmatmul.mubr.f32.gmra.mrb[20].mxu0 %v7278_v55  ;;  %1541 = vmatprep.mubr.f32.mxu1 %v9260_v56 }
 0x19a   : > { %2703 = vmatprep.mubr.f32.mxu0 %v9260_v56 }
 0x19c   : > { %1543 = vmatmul.mubr.f32.gmra.mrb[20].mxu1 %v7278_v55 }
 0x19d   : > { %2705 = vmatmul.mubr.f32.gmra.mrb[22].mxu0 %v7294_v7  ;;  %1548 = vmatprep.mubr.f32.mxu1 %v9260_v56 }
 0x19e   : > { %2710 = vmatprep.mubr.f32.mxu0 %v9260_v56 }
 0x1a0   : > { %1550 = vmatmul.mubr.f32.gmra.mrb[22].mxu1 %v7294_v7 }
 0x1a1   : > { %2712 = vmatmul.mubr.f32.gmra.mrb[24].mxu0 %v7311_v30  ;;  %1555 = vmatprep.mubr.f32.mxu1 %v9260_v56 }
 0x1a2   : > { %2717 = vmatprep.mubr.f32.mxu0 %v9260_v56 }
 0x1a4   : > { %1557 = vmatmul.mubr.f32.gmra.mrb[24].mxu1 %v7311_v30 }
 0x1a5   : > { %2719 = vmatmul.mubr.f32.gmra.mrb[26].mxu0 %v7328_v29  ;;  %1562 = vmatprep.mubr.f32.mxu1 %v9260_v56 }
 0x1a6   : > { %2724 = vmatprep.mubr.f32.mxu0 %v9260_v56 }
 0x1a8   : > { %1564 = vmatmul.mubr.f32.gmra.mrb[26].mxu1 %v7328_v29 }
 0x1a9   : > { %2726 = vmatmul.mubr.f32.gmra.mrb[28].mxu0 %v7345_v23  ;;  %1569 = vmatprep.mubr.f32.mxu1 %v9260_v56 }
 0x1aa   : > { %2731 = vmatprep.mubr.f32.mxu0 %v9260_v56 }
 0x1ac   : > { %1571 = vmatmul.mubr.f32.gmra.mrb[28].mxu1 %v7345_v23 }
 0x1ad   : > { %2733 = vmatmul.mubr.f32.gmra.mrb[30].mxu0 %v7362_v6  ;;  %1576 = vmatprep.mubr.f32.mxu1 %v9260_v56 }
 0x1ae   : > { %2738 = vmatprep.mubr.f32.mxu0 %v9260_v56 }
 0x1b0   : > { %1578 = vmatmul.mubr.f32.gmra.mrb[30].mxu1 %v7362_v6 }
 0x1b1   : > { %2740 = vmatmul.mubr.f32.gmra.mrb[32].mxu0 %v7379_v50  ;;  %1583 = vmatprep.mubr.f32.mxu1 %v9260_v56 }
 0x1b2   : > { %2745 = vmatprep.mubr.f32.mxu0 %v9260_v56 }
 0x1b4   : > { %1585 = vmatmul.mubr.f32.gmra.mrb[32].mxu1 %v7379_v50 }
 0x1b5   : > { %2747 = vmatmul.mubr.f32.gmra.mrb[34].mxu0 %v7396_v3  ;;  %1590 = vmatprep.mubr.f32.mxu1 %v9260_v56 }
 0x1b6   : > { %2752 = vmatprep.mubr.f32.mxu0 %v9260_v56 }
 0x1b8   : > { %1592 = vmatmul.mubr.f32.gmra.mrb[34].mxu1 %v7396_v3 }
 0x1b9   : > { %2754 = vmatmul.mubr.f32.gmra.mrb[36].mxu0 %v7413_v21  ;;  %1597 = vmatprep.mubr.f32.mxu1 %v9260_v56 }
 0x1ba   : > { %2759 = vmatprep.mubr.f32.mxu0 %v9260_v56 }
 0x1bc   : > { %1599 = vmatmul.mubr.f32.gmra.mrb[36].mxu1 %v7413_v21 }
 0x1bd   : > { %2761 = vmatmul.mubr.f32.gmra.mrb[38].mxu0 %v7430_v48  ;;  %1604 = vmatprep.mubr.f32.mxu1 %v9260_v56 }
 0x1be   : > { %2766 = vmatprep.mubr.f32.mxu0 %v9260_v56 }
 0x1c0   : > { %1606 = vmatmul.mubr.f32.gmra.mrb[38].mxu1 %v7430_v48 }
 0x1c1   : > { %2768 = vmatmul.mubr.f32.gmra.mrb[40].mxu0 %v7447_v22  ;;  %1611 = vmatprep.mubr.f32.mxu1 %v9260_v56 }
 0x1c2   : > { %2773 = vmatprep.mubr.f32.mxu0 %v9260_v56 }
 0x1c4   : > { %1613 = vmatmul.mubr.f32.gmra.mrb[40].mxu1 %v7447_v22 }
 0x1c5   : > { %2775 = vmatmul.mubr.f32.gmra.mrb[42].mxu0 %v7464_v43  ;;  %1618 = vmatprep.mubr.f32.mxu1 %v9260_v56 }
 0x1c6   : > { %2780 = vmatprep.mubr.f32.mxu0 %v9260_v56 }
 0x1c8   : > { %1620 = vmatmul.mubr.f32.gmra.mrb[42].mxu1 %v7464_v43 }
 0x1c9   : > { %2782 = vmatmul.mubr.f32.gmra.mrb[44].mxu0 %v7481_v52  ;;  %1625 = vmatprep.mubr.f32.mxu1 %v9260_v56 }
 0x1ca   : > { %2787 = vmatprep.mubr.f32.mxu0 %v9260_v56 }
 0x1cc   : > { %1627 = vmatmul.mubr.f32.gmra.mrb[44].mxu1 %v7481_v52 }
 0x1cd   : > { %2789 = vmatmul.mubr.f32.gmra.mrb[46].mxu0 %v7498_v37  ;;  %1632 = vmatprep.mubr.f32.mxu1 %v9260_v56 }
 0x1ce   : > { %2794 = vmatprep.mubr.f32.mxu0 %v9260_v56 }
 0x1d0   : > { %1634 = vmatmul.mubr.f32.gmra.mrb[46].mxu1 %v7498_v37 }
 0x1d1   : > { %2796 = vmatmul.mubr.f32.gmra.mrb[48].mxu0 %v7515_v54  ;;  %1639 = vmatprep.mubr.f32.mxu1 %v9260_v56 }
 0x1d2   : > { %2801 = vmatprep.mubr.f32.mxu0 %v9260_v56 }
 0x1d4   : > { %1641 = vmatmul.mubr.f32.gmra.mrb[48].mxu1 %v7515_v54 }
 0x1d5   : > { %2803 = vmatmul.mubr.f32.gmra.mrb[50].mxu0 %v7532_v1  ;;  %1646 = vmatprep.mubr.f32.mxu1 %v9260_v56 }
 0x1d6   : > { %2808 = vmatprep.mubr.f32.mxu0 %v9260_v56 }
 0x1d8   : > { %1648 = vmatmul.mubr.f32.gmra.mrb[50].mxu1 %v7532_v1 }
 0x1d9   : > { %2810 = vmatmul.mubr.f32.gmra.mrb[52].mxu0 %v7547_v42  ;;  %1653 = vmatprep.mubr.f32.mxu1 %v9260_v56 }
 0x1da   : > { %2815 = vmatprep.mubr.f32.mxu0 %v9260_v56 }
 0x1dc   : > { %1655 = vmatmul.mubr.f32.gmra.mrb[52].mxu1 %v7547_v42 }
 0x1dd   : > { %2817 = vmatmul.mubr.f32.gmra.mrb[54].mxu0 %v7560_v39  ;;  %1660 = vmatprep.mubr.f32.mxu1 %v9260_v56 }
 0x1de   : > { %2822 = vmatprep.mubr.f32.mxu0 %v9260_v56 }
 0x1e0   : > { %1662 = vmatmul.mubr.f32.gmra.mrb[54].mxu1 %v7560_v39 }
 0x1e1   : > { %2824 = vmatmul.mubr.f32.gmra.mrb[56].mxu0 %v7573_v34  ;;  %1667 = vmatprep.mubr.f32.mxu1 %v9260_v56 }
 0x1e2   : > { %2829 = vmatprep.mubr.f32.mxu0 %v9260_v56 }
 0x1e4   : > { %1669 = vmatmul.mubr.f32.gmra.mrb[56].mxu1 %v7573_v34 }
 0x1e5   : > { %2831 = vmatmul.mubr.f32.gmra.mrb[58].mxu0 %v7586_v17  ;;  %1674 = vmatprep.mubr.f32.mxu1 %v9260_v56 }
 0x1e6   : > { %2836 = vmatprep.mubr.f32.mxu0 %v9260_v56 }
 0x1e8   : > { %1676 = vmatmul.mubr.f32.gmra.mrb[58].mxu1 %v7586_v17 }
 0x1e9   : > { %2838 = vmatmul.mubr.f32.gmra.mrb[60].mxu0 %v7599_v24  ;;  %1681 = vmatprep.mubr.f32.mxu1 %v9260_v56 }
 0x1ea   : > { %2843 = vmatprep.mubr.f32.mxu0 %v9260_v56 }
 0x1ec   : > { %1683 = vmatmul.mubr.f32.gmra.mrb[60].mxu1 %v7599_v24 }
 0x1ed   : > { %2845 = vmatmul.mubr.f32.gmra.mrb[62].mxu0 %v7611_v57  ;;  %1688 = vmatprep.mubr.f32.mxu1 %v9260_v56 }
 0x1ee   : > { %2947 = vmatprep.mubr.f32.mxu0 %v9260_v56 }
 0x1f0   : > { %1690 = vmatmul.mubr.f32.gmra.mrb[62].mxu1 %v7611_v57 }
 0x1f1   : > { %2949 = vmatmul.mubr.f32.vlgmr.msra.gmra.mrb[0].mxu0 %v7020_v18  ;;  %1824 = vmatprep.mubr.f32.mxu1 %v9260_v56  ;;  %v9347_v18 = vld [vmem:[#allocation52_spill] sm:$0xff] }
 0x1f2   : > { %2954 = vmatprep.mubr.f32.mxu0 %v9260_v56 }
 0x1f4   : > { %1827 = vmatmul.mubr.f32.vlgmr.msra.gmra.mrb[0].mxu1 %v9342_v5 }
 0x1f5   : > { %2956 = vmatmul.mubr.f32.gmra.mrb[2].mxu0 %v7018_v13  ;;  %1832 = vmatprep.mubr.f32.mxu1 %v9260_v56  ;;  %v9346_v13 = vld [vmem:[#allocation51_spill] sm:$0xff] }
 0x1f6   : > { %2961 = vmatprep.mubr.f32.mxu0 %v9260_v56 }
 0x1f8   : > { %1835 = vmatmul.mubr.f32.gmra.mrb[2].mxu1 %v9343_v0  ;;  %v7942_v0 = vpop.permute.xlu0 %3908 }
 0x1f9   : > { %2963 = vmatmul.mubr.f32.gmra.mrb[4].mxu0 %v7072_v9  ;;  %1840 = vmatprep.mubr.f32.mxu1 %v9260_v56  ;;  %v9349_v9 = vld [vmem:[#allocation54_spill] sm:$0xff] }
 0x1fa   : > { %2968 = vmatprep.mubr.f32.mxu0 %v9260_v56 }
 0x1fc   : > { %1843 = vmatmul.mubr.f32.gmra.mrb[4].mxu1 %v9344_v58 }
 0x1fd   : > { %2970 = vmatmul.mubr.f32.gmra.mrb[6].mxu0 %v7096_v11  ;;  %1848 = vmatprep.mubr.f32.mxu1 %v9260_v56  ;;  %v9350_v11 = vld [vmem:[#allocation55_spill] sm:$0xff] }
 0x1fe   : > { %2975 = vmatprep.mubr.f32.mxu0 %v9260_v56 }
 0x200   : > { %1851 = vmatmul.mubr.f32.gmra.mrb[6].mxu1 %v7116_v16  ;;  %v9348_v16 = vld [vmem:[#allocation53_spill] sm:$0xff] }
 0x201   : > { %2977 = vmatmul.mubr.f32.gmra.mrb[8].mxu0 %v7135_v35  ;;  %1856 = vmatprep.mubr.f32.mxu1 %v9260_v56  ;;  %v9351_v35 = vld [vmem:[#allocation56_spill] sm:$0xff] }
 0x202   : > { %2982 = vmatprep.mubr.f32.mxu0 %v9260_v56 }
 0x204   : > { %1859 = vmatmul.mubr.f32.gmra.mrb[8].mxu1 %v9345_v40 }
 0x205   : > { %2984 = vmatmul.mubr.f32.gmra.mrb[10].mxu0 %v7163_v46  ;;  %1864 = vmatprep.mubr.f32.mxu1 %v9260_v56  ;;  %v9352_v46 = vld [vmem:[#allocation57_spill] sm:$0xff] }
 0x206   : > { %2989 = vmatprep.mubr.f32.mxu0 %v9260_v56 }
 0x208   : > { %1867 = vmatmul.mubr.f32.gmra.mrb[10].mxu1 %v9346_v13 }
 0x209   : > { %2991 = vmatmul.mubr.f32.gmra.mrb[12].mxu0 %v7196_v14  ;;  %1872 = vmatprep.mubr.f32.mxu1 %v9260_v56  ;;  %v9353_v14 = vld [vmem:[#allocation58_spill] sm:$0xff] }
 0x20a   : > { %2996 = vmatprep.mubr.f32.mxu0 %v9260_v56 }
 0x20c   : > { %1875 = vmatmul.mubr.f32.gmra.mrb[12].mxu1 %v9347_v18 }
 0x20d   : > { %2998 = vmatmul.mubr.f32.gmra.mrb[14].mxu0 %v7219_v41  ;;  %1880 = vmatprep.mubr.f32.mxu1 %v9260_v56  ;;  %v9354_v41 = vld [vmem:[#allocation59_spill] sm:$0xff] }
 0x20e   : > { %3003 = vmatprep.mubr.f32.mxu0 %v9260_v56 }
 0x210   : > { %1883 = vmatmul.mubr.f32.gmra.mrb[14].mxu1 %v9348_v16 }
 0x211   : > { %3005 = vmatmul.mubr.f32.gmra.mrb[16].mxu0 %v7244_v8  ;;  %1888 = vmatprep.mubr.f32.mxu1 %v9260_v56  ;;  %v9355_v8 = vld [vmem:[#allocation34_spill] sm:$0xff] }
 0x212   : > { %3010 = vmatprep.mubr.f32.mxu0 %v9260_v56 }
 0x214   : > { %1891 = vmatmul.mubr.f32.gmra.mrb[16].mxu1 %v9349_v9 }
 0x215   : > { %3012 = vmatmul.mubr.f32.gmra.mrb[18].mxu0 %v7263_v59  ;;  %1896 = vmatprep.mubr.f32.mxu1 %v9260_v56  ;;  %v9356_v59 = vld [vmem:[#allocation36_spill] sm:$0xff] }
 0x216   : > { %3017 = vmatprep.mubr.f32.mxu0 %v9260_v56 }
 0x218   : > { %1899 = vmatmul.mubr.f32.gmra.mrb[18].mxu1 %v9350_v11 }
 0x219   : > { %3019 = vmatmul.mubr.f32.gmra.mrb[20].mxu0 %v7278_v55  ;;  %1904 = vmatprep.mubr.f32.mxu1 %v9260_v56  ;;  %v9357_v55 = vld [vmem:[#allocation37_spill] sm:$0xff] }
 0x21a   : > { %3024 = vmatprep.mubr.f32.mxu0 %v9260_v56 }
 0x21c   : > { %1907 = vmatmul.mubr.f32.gmra.mrb[20].mxu1 %v9351_v35 }
 0x21d   : > { %3026 = vmatmul.mubr.f32.gmra.mrb[22].mxu0 %v7294_v7  ;;  %1912 = vmatprep.mubr.f32.mxu1 %v9260_v56  ;;  %v9358_v7 = vld [vmem:[#allocation38_spill] sm:$0xff] }
 0x21e   : > { %3031 = vmatprep.mubr.f32.mxu0 %v9260_v56 }
 0x220   : > { %1915 = vmatmul.mubr.f32.gmra.mrb[22].mxu1 %v9352_v46 }
 0x221   : > { %3033 = vmatmul.mubr.f32.gmra.mrb[24].mxu0 %v7311_v30  ;;  %1920 = vmatprep.mubr.f32.mxu1 %v9260_v56  ;;  %v9359_v30 = vld [vmem:[#allocation39_spill] sm:$0xff] }
 0x222   : > { %3038 = vmatprep.mubr.f32.mxu0 %v9260_v56 }
 0x224   : > { %1923 = vmatmul.mubr.f32.gmra.mrb[24].mxu1 %v9353_v14 }
 0x225   : > { %3040 = vmatmul.mubr.f32.gmra.mrb[26].mxu0 %v7328_v29  ;;  %1928 = vmatprep.mubr.f32.mxu1 %v9260_v56  ;;  %v9360_v29 = vld [vmem:[#allocation40_spill] sm:$0xff] }
 0x226   : > { %3045 = vmatprep.mubr.f32.mxu0 %v9260_v56 }
 0x228   : > { %1931 = vmatmul.mubr.f32.gmra.mrb[26].mxu1 %v9354_v41 }
 0x229   : > { %3047 = vmatmul.mubr.f32.gmra.mrb[28].mxu0 %v7345_v23  ;;  %1936 = vmatprep.mubr.f32.mxu1 %v9260_v56  ;;  %v9361_v23 = vld [vmem:[#allocation41_spill] sm:$0xff] }
 0x22a   : > { %3052 = vmatprep.mubr.f32.mxu0 %v9260_v56 }
 0x22c   : > { %1939 = vmatmul.mubr.f32.gmra.mrb[28].mxu1 %v9355_v8 }
 0x22d   : > { %3054 = vmatmul.mubr.f32.gmra.mrb[30].mxu0 %v7362_v6  ;;  %1944 = vmatprep.mubr.f32.mxu1 %v9260_v56  ;;  %v9362_v6 = vld [vmem:[#allocation42_spill] sm:$0xff] }
 0x22e   : > { %3059 = vmatprep.mubr.f32.mxu0 %v9260_v56 }
 0x230   : > { %1947 = vmatmul.mubr.f32.gmra.mrb[30].mxu1 %v9356_v59 }
 0x231   : > { %3061 = vmatmul.mubr.f32.gmra.mrb[32].mxu0 %v7379_v50  ;;  %1952 = vmatprep.mubr.f32.mxu1 %v9260_v56  ;;  %v9363_v50 = vld [vmem:[#allocation43_spill] sm:$0xff] }
 0x232   : > { %3066 = vmatprep.mubr.f32.mxu0 %v9260_v56 }
 0x234   : > { %1955 = vmatmul.mubr.f32.gmra.mrb[32].mxu1 %v9357_v55 }
 0x235   : > { %3068 = vmatmul.mubr.f32.gmra.mrb[34].mxu0 %v7396_v3  ;;  %1960 = vmatprep.mubr.f32.mxu1 %v9260_v56  ;;  %v9364_v3 = vld [vmem:[#allocation44_spill] sm:$0xff] }
 0x236   : > { %3073 = vmatprep.mubr.f32.mxu0 %v9260_v56 }
 0x238   : > { %1963 = vmatmul.mubr.f32.gmra.mrb[34].mxu1 %v9358_v7 }
 0x239   : > { %3075 = vmatmul.mubr.f32.gmra.mrb[36].mxu0 %v7413_v21  ;;  %1968 = vmatprep.mubr.f32.mxu1 %v9260_v56  ;;  %v9365_v21 = vld [vmem:[#allocation45_spill] sm:$0xff] }
 0x23a   : > { %3080 = vmatprep.mubr.f32.mxu0 %v9260_v56 }
 0x23c   : > { %1971 = vmatmul.mubr.f32.gmra.mrb[36].mxu1 %v9359_v30 }
 0x23d   : > { %3082 = vmatmul.mubr.f32.gmra.mrb[38].mxu0 %v7430_v48  ;;  %1976 = vmatprep.mubr.f32.mxu1 %v9260_v56  ;;  %v9366_v48 = vld [vmem:[#allocation46_spill] sm:$0xff] }
 0x23e   : > { %3087 = vmatprep.mubr.f32.mxu0 %v9260_v56 }
 0x240   : > { %1979 = vmatmul.mubr.f32.gmra.mrb[38].mxu1 %v9360_v29 }
 0x241   : > { %3089 = vmatmul.mubr.f32.gmra.mrb[40].mxu0 %v7447_v22  ;;  %1984 = vmatprep.mubr.f32.mxu1 %v9260_v56  ;;  %v9367_v22 = vld [vmem:[#allocation60_spill] sm:$0xff] }
 0x242   : > { %3094 = vmatprep.mubr.f32.mxu0 %v9260_v56 }
 0x244   : > { %1987 = vmatmul.mubr.f32.gmra.mrb[40].mxu1 %v9361_v23 }
 0x245   : > { %3096 = vmatmul.mubr.f32.gmra.mrb[42].mxu0 %v7464_v43  ;;  %1992 = vmatprep.mubr.f32.mxu1 %v9260_v56  ;;  %v9368_v43 = vld [vmem:[#allocation61_spill] sm:$0xff] }
 0x246   : > { %3101 = vmatprep.mubr.f32.mxu0 %v9260_v56 }
 0x248   : > { %1995 = vmatmul.mubr.f32.gmra.mrb[42].mxu1 %v9362_v6 }
 0x249   : > { %3103 = vmatmul.mubr.f32.gmra.mrb[44].mxu0 %v7481_v52  ;;  %2000 = vmatprep.mubr.f32.mxu1 %v9260_v56  ;;  %v9369_v52 = vld [vmem:[#allocation62_spill] sm:$0xff] }
 0x24a   : > { %3108 = vmatprep.mubr.f32.mxu0 %v9260_v56 }
 0x24c   : > { %2003 = vmatmul.mubr.f32.gmra.mrb[44].mxu1 %v9363_v50  ;;  %v7951_v50 = vpop.permute.xlu1 %3910 }
 0x24d   : > { %3110 = vmatmul.mubr.f32.gmra.mrb[46].mxu0 %v7498_v37  ;;  %2008 = vmatprep.mubr.f32.mxu1 %v9260_v56 }
 0x24e   : > { %3115 = vmatprep.mubr.f32.mxu0 %v9260_v56 }
 0x250   : > { %2011 = vmatmul.mubr.f32.gmra.mrb[46].mxu1 %v9364_v3  ;;  %v7953_v3 = vpop.permute.xlu0 %3912 }
 0x251   : > { %3117 = vmatmul.mubr.f32.gmra.mrb[48].mxu0 %v7515_v54  ;;  %2016 = vmatprep.mubr.f32.mxu1 %v9260_v56 }
 0x252   : > { %3122 = vmatprep.mubr.f32.mxu0 %v9260_v56 }
 0x254   : > { %2019 = vmatmul.mubr.f32.gmra.mrb[48].mxu1 %v9365_v21 }
 0x255   : > { %3124 = vmatmul.mubr.f32.gmra.mrb[50].mxu0 %v7532_v1  ;;  %2024 = vmatprep.mubr.f32.mxu1 %v9260_v56 }
 0x256   : > { %3129 = vmatprep.mubr.f32.mxu0 %v9260_v56 }
 0x258   : > { %2027 = vmatmul.mubr.f32.gmra.mrb[50].mxu1 %v9366_v48 }
 0x259   : > { %3131 = vmatmul.mubr.f32.gmra.mrb[52].mxu0 %v7547_v42  ;;  %2032 = vmatprep.mubr.f32.mxu1 %v9260_v56 }
 0x25a   : > { %3136 = vmatprep.mubr.f32.mxu0 %v9260_v56 }
 0x25c   : > { %2035 = vmatmul.mubr.f32.gmra.mrb[52].mxu1 %v9367_v22 }
 0x25d   : > { %3138 = vmatmul.mubr.f32.gmra.mrb[54].mxu0 %v7560_v39  ;;  %2040 = vmatprep.mubr.f32.mxu1 %v9260_v56 }
 0x25e   : > { %3143 = vmatprep.mubr.f32.mxu0 %v9260_v56 }
 0x260   : > { %2043 = vmatmul.mubr.f32.gmra.mrb[54].mxu1 %v9368_v43 }
 0x261   : > { %3145 = vmatmul.mubr.f32.gmra.mrb[56].mxu0 %v7573_v34  ;;  %2048 = vmatprep.mubr.f32.mxu1 %v9260_v56 }
 0x262   : > { %3150 = vmatprep.mubr.f32.mxu0 %v9260_v56 }
 0x264   : > { %2051 = vmatmul.mubr.f32.gmra.mrb[56].mxu1 %v9369_v52 }
 0x265   : > { %3152 = vmatmul.mubr.f32.gmra.mrb[58].mxu0 %v7586_v17  ;;  %2056 = vmatprep.mubr.f32.mxu1 %v9260_v56 }
 0x266   : > { %3157 = vmatprep.mubr.f32.mxu0 %v9260_v56 }
 0x268   : > { %2059 = vmatmul.mubr.f32.gmra.mrb[58].mxu1 %v7591_v25 }
 0x269   : > { %3159 = vmatmul.mubr.f32.gmra.mrb[60].mxu0 %v7599_v24  ;;  %2064 = vmatprep.mubr.f32.mxu1 %v9260_v56 }
 0x26a   : > { %3164 = vmatprep.mubr.f32.mxu0 %v9260_v56 }
 0x26c   : > { %2067 = vmatmul.mubr.f32.gmra.mrb[60].mxu1 %v7604_v19 }
 0x26d   : > { %3166 = vmatmul.mubr.f32.gmra.mrb[62].mxu0 %v7611_v57  ;;  %2072 = vmatprep.mubr.f32.mxu1 %v9260_v56 }
 0x270   : > { %2075 = vmatmul.mubr.f32.gmra.mrb[62].mxu1 %v7615_v38 }
 0x2c4   : > { %v2950_v17 = vpop.f32.mrb[0].mxu0 }
 0x2c5   : > { %v2952_v34 = vpop.f32.mrb[1].mxu0 }
 0x2c7   : > { %v1828_v39 = vpop.f32.mrb[0].mxu1 }
 0x2c8   : > { %v2957_v37 = vpop.f32.mrb[2].mxu0  ;;  %v7926_v42 = vadd.f32 %v2950_v17, %v1828_v39  ;;  %v1830_v54 = vpop.f32.mrb[1].mxu1 }
 0x2c9   : > { %v2959_v24 = vpop.f32.mrb[3].mxu0  ;;  %v5315_v1 = vadd.f32 %v2952_v34, %v1830_v54 }
 0x2ca   : > { %5680 = vtanh.f32 %v7926_v42 }
 0x2cb   : > { %v1836_v25 = vpop.f32.mrb[2].mxu1  ;;  %v5088_v56 = vmul.f32 -1.442695, %v5315_v1 }
 0x2cc   : > { %v2964_v26 = vpop.f32.mrb[4].mxu0  ;;  %v7929_v19 = vadd.f32 %v2957_v37, %v1836_v25  ;;  %v1838_v57 = vpop.f32.mrb[3].mxu1 }
 0x2cd   : > { %v2966_v36 = vpop.f32.mrb[5].mxu0  ;;  %v5317_v53 = vadd.f32 %v2959_v24, %v1838_v57 }
 0x2ce   : > { %5682 = vtanh.f32 %v7929_v19 }
 0x2cf   : > { %v1844_v38 = vpop.f32.mrb[4].mxu1  ;;  %5684 = vpow2.f32 %v5088_v56  ;;  %v5089_v28 = vmul.f32 -1.442695, %v5317_v53 }
 0x2d0   : > { %v2971_v44 = vpop.f32.mrb[6].mxu0  ;;  %v7932_v12 = vadd.f32 %v2964_v26, %v1844_v38  ;;  %v1846_v47 = vpop.f32.mrb[5].mxu1 }
 0x2d1   : > { %v2973_v60 = vpop.f32.mrb[7].mxu0  ;;  %v5319_v51 = vadd.f32 %v2966_v36, %v1846_v47  ;;  %v7962_v38 = vpop.permute.xlu1 %3914 }
 0x2d2   : > { %5686 = vtanh.f32 %v7932_v12 }
 0x2d3   : > { %v1852_v20 = vpop.f32.mrb[6].mxu1  ;;  %v5090_v15 = vmul.f32 -1.442695, %v5319_v51 }
 0x2d4   : > { %v2978_v45 = vpop.f32.mrb[8].mxu0  ;;  %v5681_v62 = vpop.eup %5680  ;;  %v7935_v27 = vadd.f32 %v2971_v44, %v1852_v20 }
 0x2d5   : > { %v1854_v31 = vpop.f32.mrb[7].mxu1  ;;  %v2980_v32 = vpop.f32.mrb[9].mxu0  ;;  %3620 = vrot.lane.b32.xlu0 %v5681_v62, %s6168_s9 }
 0x2d6   : > { %v5321_v61 = vadd.f32 %v2973_v60, %v1854_v31  ;;  %5688 = vtanh.f32 %v7935_v27  ;;  %v7964_v44 = vpop.permute.xlu0 %3916 }
 0x2d7   : > { %5690 = vpow2.f32 %v5089_v28  ;;  %v1860_v10 = vpop.f32.mrb[8].mxu1 }
 0x2d8   : > { %v2985_v4 = vpop.f32.mrb[10].mxu0  ;;  %v5683_v2 = vpop.eup %5682  ;;  %v7939_v33 = vadd.f32 %v2978_v45, %v1860_v10  ;;  %5692 = vpow2.f32 %v5090_v15  ;;  %v5091_v16 = vmul.f32 -1.442695, %v5321_v61 }
 0x2d9   : > { %v1862_v49 = vpop.f32.mrb[9].mxu1  ;;  %v2987_v63 = vpop.f32.mrb[11].mxu0  ;;  %3622 = vrot.lane.b32.xlu1 %v5683_v2, %s6168_s9 }
 0x2da   : > { %v5323_v5 = vadd.f32 %v2980_v32, %v1862_v49  ;;  %v5685_v58 = vpop.eup %5684  ;;  %5694 = vtanh.f32 %v7939_v33 }
 0x2db   : > { %v1868_v40 = vpop.f32.mrb[10].mxu1  ;;  %v3492_v14 = vadd.f32 1.0, %v5685_v58  ;;  %5696 = vpow2.f32 %v5091_v16  ;;  %v7981_v16 = vpop.permute.xlu0 %3920 }
 0x2dc   : > { %v2992_v13 = vpop.f32.mrb[12].mxu0  ;;  %v5687_v18 = vpop.eup %5686  ;;  %v7944_v9 = vadd.f32 %v2985_v4, %v1868_v40  ;;  %v5092_v23 = vmul.f32 -1.442695, %v5323_v5 }
 0x2dd   : > { %v1870_v11 = vpop.f32.mrb[11].mxu1  ;;  %v2994_v35 = vpop.f32.mrb[13].mxu0  ;;  %3624 = vrot.lane.b32.xlu0 %v5687_v18, %s6168_s9  ;;  %5698 = vrcp.f32 %v3492_v14 }
 0x2de   : > { %v5325_v46 = vadd.f32 %v2987_v63, %v1870_v11  ;;  %5700 = vtanh.f32 %v7944_v9  ;;  %v7979_v18 = vpop.permute.xlu1 %3918 }
 0x2df   : > { %v1876_v41 = vpop.f32.mrb[12].mxu1  ;;  %5702 = vpow2.f32 %v5092_v23 }
 0x2e0   : > { %v2999_v8 = vpop.f32.mrb[14].mxu0  ;;  %v5689_v59 = vpop.eup %5688  ;;  %v7948_v55 = vadd.f32 %v2992_v13, %v1876_v41  ;;  %v5093_v34 = vmul.f32 -1.442695, %v5325_v46 }
 0x2e1   : > { %v1878_v7 = vpop.f32.mrb[13].mxu1  ;;  %v3001_v30 = vpop.f32.mrb[15].mxu0  ;;  %3626 = vrot.lane.b32.xlu1 %v5689_v59, %s6168_s9 }
 0x2e2   : > { %v5691_v29 = vpop.eup %5690  ;;  %v5327_v6 = vadd.f32 %v2994_v35, %v1878_v7 }
 0x2e3   : > { %v1884_v21 = vpop.f32.mrb[14].mxu1  ;;  %v3493_v22 = vadd.f32 1.0, %v5691_v29  ;;  %v5693_v37 = vpop.eup %5692 }
 0x2e4   : > { %v3006_v48 = vpop.f32.mrb[16].mxu0  ;;  %v7956_v43 = vadd.f32 %v2999_v8, %v1884_v21  ;;  %v1886_v52 = vpop.f32.mrb[15].mxu1  ;;  %v3494_v36 = vadd.f32 1.0, %v5693_v37  ;;  %v5094_v47 = vmul.f32 -1.442695, %v5327_v6 }
 0x2e5   : > { %v3008_v17 = vpop.f32.mrb[17].mxu0  ;;  %v5329_v39 = vadd.f32 %v3001_v30, %v1886_v52  ;;  %5704 = vrcp.f32 %v3493_v22  ;;  %v5695_v57 = vpop.eup %5694 }
 0x2e6   : > { %5706 = vpow2.f32 %v5093_v34  ;;  %v5697_v53 = vpop.eup %5696  ;;  %3628 = vrot.lane.b32.xlu0 %v5695_v57, %s6168_s9 }
 0x2e7   : > { %v1892_v54 = vpop.f32.mrb[16].mxu1  ;;  %5708 = vtanh.f32 %v7948_v55  ;;  %v7968_v62 = vpop.eup %5698  ;;  %v3495_v31 = vadd.f32 1.0, %v5697_v53  ;;  %v5095_v15 = vmul.f32 -1.442695, %v5329_v39 }
 0x2e8   : > { %v3013_v24 = vpop.f32.mrb[18].mxu0  ;;  %v7958_v1 = vadd.f32 %v3006_v48, %v1892_v54  ;;  %v1894_v25 = vpop.f32.mrb[17].mxu1  ;;  %5710 = vrcp.f32 %v3494_v36 }
 0x2e9   : > { %v3015_v26 = vpop.f32.mrb[19].mxu0  ;;  %v5331_v56 = vadd.f32 %v3008_v17, %v1894_v25  ;;  %v5701_v61 = vpop.eup %5700  ;;  %5712 = vtanh.f32 %v7956_v43 }
 0x2ea   : > { %3780 = vrot.lane.b32.xlu0 %v7968_v62, %s6169_s27  ;;  %v5703_v10 = vpop.eup %5702  ;;  %5714 = vpow2.f32 %v5094_v47  ;;  %3630 = vrot.lane.b32.xlu1 %v5701_v61, %s6168_s9  ;;  %v7996_v54 = vpop.permute.xlu1 %3922 }
 0x2eb   : > { %v1900_v60 = vpop.f32.mrb[18].mxu1  ;;  %5716 = vrcp.f32 %v3495_v31  ;;  %v3496_v13 = vadd.f32 1.0, %v5703_v10  ;;  %v5096_v7 = vmul.f32 -1.442695, %v5331_v56 }
 0x2ec   : > { %v3020_v51 = vpop.f32.mrb[20].mxu0  ;;  %v7966_v28 = vadd.f32 %v3013_v24, %v1900_v60  ;;  %v1902_v20 = vpop.f32.mrb[19].mxu1  ;;  %5718 = vtanh.f32 %v7958_v1 }
 0x2ed   : > { %v3022_v45 = vpop.f32.mrb[21].mxu0  ;;  %v5333_v32 = vadd.f32 %v3015_v26, %v1902_v20  ;;  %5720 = vpow2.f32 %v5095_v15  ;;  %v7998_v24 = vpop.permute.xlu0 %3924 }
 0x2ee   : > { %5722 = vrcp.f32 %v3496_v13 }
 0x2ef   : > { %v1908_v4 = vpop.f32.mrb[20].mxu1  ;;  %v7976_v40 = vpop.eup %5704  ;;  %5724 = vtanh.f32 %v7966_v28  ;;  %v5097_v37 = vmul.f32 -1.442695, %v5333_v32 }
 0x2f0   : > { %v3027_v2 = vpop.f32.mrb[22].mxu0  ;;  %v7974_v49 = vadd.f32 %v3020_v51, %v1908_v4  ;;  %v1910_v63 = vpop.f32.mrb[21].mxu1  ;;  %3782 = vrot.lane.b32.xlu1 %v7976_v40, %s6169_s27  ;;  %5726 = vpow2.f32 %v5096_v7 }
 0x2f1   : > { %v3029_v5 = vpop.f32.mrb[23].mxu0  ;;  %v5335_v58 = vadd.f32 %v3022_v45, %v1910_v63  ;;  %v5707_v11 = vpop.eup %5706 }
 0x2f2   : > { %v5709_v14 = vpop.eup %5708  ;;  %v3497_v23 = vadd.f32 1.0, %v5707_v11  ;;  %v8020_v13 = vpop.permute.xlu0 %3928 }
 0x2f3   : > { %v1916_v35 = vpop.f32.mrb[22].mxu1  ;;  %3632 = vrot.lane.b32.xlu0 %v5709_v14, %s6168_s9  ;;  %v7988_v29 = vpop.eup %5710  ;;  %v5098_v45 = vmul.f32 -1.442695, %v5335_v58  ;;  %9371 = vst [vmem:[#allocation7_spill] sm:$0xff] %v8020_v13 }
 0x2f4   : > { %v3034_v46 = vpop.f32.mrb[24].mxu0  ;;  %v7985_v41 = vadd.f32 %v3027_v2, %v1916_v35  ;;  %v1918_v8 = vpop.f32.mrb[23].mxu1  ;;  %5728 = vrcp.f32 %v3497_v23 }
 0x2f5   : > { %v3036_v59 = vpop.f32.mrb[25].mxu0  ;;  %v5337_v30 = vadd.f32 %v3029_v5, %v1918_v8  ;;  %v5713_v48 = vpop.eup %5712  ;;  %5730 = vtanh.f32 %v7974_v49 }
 0x2f6   : > { %v5715_v34 = vpop.eup %5714  ;;  %3634 = vrot.lane.b32.xlu1 %v5713_v48, %s6168_s9  ;;  %5732 = vpow2.f32 %v5097_v37  ;;  %v8018_v58 = vpop.permute.xlu1 %3926 }
 0x2f7   : > { %v1924_v6 = vpop.f32.mrb[24].mxu1  ;;  %3784 = vrot.lane.b32.xlu0 %v7988_v29, %s6169_s27  ;;  %v8000_v25 = vpop.eup %5716  ;;  %v3498_v56 = vadd.f32 1.0, %v5715_v34  ;;  %9370 = vst [vmem:[#allocation5_spill] sm:$0xff] %v8018_v58  ;;  %v5099_v14 = vmul.f32 -1.442695, %v5337_v30 }
 0x2f8   : > { %v3041_v21 = vpop.f32.mrb[26].mxu0  ;;  %v7991_v22 = vadd.f32 %v3034_v46, %v1924_v6  ;;  %v1926_v52 = vpop.f32.mrb[25].mxu1 }
 0x2f9   : > { %v3043_v17 = vpop.f32.mrb[27].mxu0  ;;  %v5339_v39 = vadd.f32 %v3036_v59, %v1926_v52  ;;  %v5719_v36 = vpop.eup %5718  ;;  %5734 = vrcp.f32 %v3498_v56 }
 0x2fa   : > { %3786 = vrot.lane.b32.xlu1 %v8000_v25, %s6169_s27  ;;  %v5721_v20 = vpop.eup %5720  ;;  %5736 = vtanh.f32 %v7985_v41 }
 0x2fb   : > { %v1932_v26 = vpop.f32.mrb[26].mxu1  ;;  %3636 = vrot.lane.b32.xlu0 %v5719_v36, %s6168_s9  ;;  %v8008_v61 = vpop.eup %5722  ;;  %v3499_v63 = vadd.f32 1.0, %v5721_v20  ;;  %5738 = vpow2.f32 %v5098_v45 }
 0x2fc   : > { %v3048_v57 = vpop.f32.mrb[28].mxu0  ;;  %v8002_v53 = vadd.f32 %v3041_v21, %v1932_v26  ;;  %v1934_v47 = vpop.f32.mrb[27].mxu1 }
 0x2fd   : > { %v3050_v60 = vpop.f32.mrb[29].mxu0  ;;  %v5341_v51 = vadd.f32 %v3043_v17, %v1934_v47  ;;  %v5725_v15 = vpop.eup %5724  ;;  %5740 = vrcp.f32 %v3499_v63 }
 0x2fe   : > { %3638 = vrot.lane.b32.xlu1 %v5725_v15, %s6168_s9  ;;  %v5727_v11 = vpop.eup %5726  ;;  %5742 = vtanh.f32 %v7991_v22  ;;  %v8038_v47 = vpop.permute.xlu1 %3930 }
 0x2ff   : > { %v1940_v31 = vpop.f32.mrb[28].mxu1  ;;  %3788 = vrot.lane.b32.xlu0 %v8008_v61, %s6169_s27  ;;  %v8024_v23 = vpop.eup %5728  ;;  %v3500_v21 = vadd.f32 1.0, %v5727_v11  ;;  %5744 = vpow2.f32 %v5099_v14  ;;  %9372 = vst [vmem:[#allocation6_spill] sm:$0xff] %v8038_v47  ;;  %v5101_v11 = vmul.f32 -1.442695, %v5341_v51 }
 0x300   : > { %v3055_v32 = vpop.f32.mrb[30].mxu0  ;;  %v8010_v10 = vadd.f32 %v3048_v57, %v1940_v31  ;;  %v1942_v4 = vpop.f32.mrb[29].mxu1  ;;  %v5100_v57 = vmul.f32 -1.442695, %v5339_v39 }
 0x301   : > { %v3057_v2 = vpop.f32.mrb[31].mxu0  ;;  %v8015_v5 = vadd.f32 %v3050_v60, %v1942_v4  ;;  %v5731_v48 = vpop.eup %5730  ;;  %5746 = vrcp.f32 %v3500_v21 }
 0x302   : > { %3790 = vrot.lane.b32.xlu1 %v8024_v23, %s6169_s27  ;;  %v5733_v34 = vpop.eup %5732  ;;  %v8040_v60 = vpop.permute.xlu0 %3932  ;;  %5748 = vtanh.f32 %v8002_v53 }
 0x303   : > { %v1948_v35 = vpop.f32.mrb[30].mxu1  ;;  %3640 = vrot.lane.b32.xlu0 %v5731_v48, %s6168_s9  ;;  %v8036_v56 = vpop.eup %5734  ;;  %9373 = vst [vmem:[#allocation9_spill] sm:$0xff] %v8040_v60  ;;  %v3501_v45 = vadd.f32 1.0, %v5733_v34  ;;  %5750 = vpow2.f32 %v5100_v57 }
 0x304   : > { %v3062_v46 = vpop.f32.mrb[32].mxu0  ;;  %v8022_v8 = vadd.f32 %v3055_v32, %v1948_v35  ;;  %v1950_v59 = vpop.f32.mrb[31].mxu1 }
 0x305   : > { %v3064_v7 = vpop.f32.mrb[33].mxu0  ;;  %v8026_v6 = vadd.f32 %v3057_v2, %v1950_v59  ;;  %v5737_v20 = vpop.eup %5736  ;;  %5752 = vrcp.f32 %v3501_v45 }
 0x306   : > { %3642 = vrot.lane.b32.xlu1 %v5737_v20, %s6168_s9  ;;  %v5739_v15 = vpop.eup %5738  ;;  %5754 = vtanh.f32 %v8010_v10  ;;  %v8060_v34 = vpop.permute.xlu1 %3934 }
 0x307   : > { %v1956_v52 = vpop.f32.mrb[32].mxu1  ;;  %3792 = vrot.lane.b32.xlu0 %v8036_v56, %s6169_s27  ;;  %v8050_v35 = vpop.eup %5740  ;;  %5756 = vpow2.f32 %v5101_v11  ;;  %9376 = vst [vmem:[#allocation12_spill] sm:$0xff] %v8060_v34 }
 0x308   : > { %v3069_v17 = vpop.f32.mrb[34].mxu0  ;;  %v8032_v30 = vadd.f32 %v3062_v46, %v1956_v52  ;;  %v1958_v37 = vpop.f32.mrb[33].mxu1 }
 0x309   : > { %v3071_v26 = vpop.f32.mrb[35].mxu0  ;;  %v8034_v36 = vadd.f32 %v3064_v7, %v1958_v37  ;;  %v5743_v59 = vpop.eup %5742  ;;  %v3502_v7 = vadd.f32 1.0, %v5739_v15 }
 0x30a   : > { %3794 = vrot.lane.b32.xlu1 %v8050_v35, %s6169_s27  ;;  %v5745_v51 = vpop.eup %5744  ;;  %v8062_v37 = vpop.permute.xlu0 %3936 }
 0x30b   : > { %v1964_v31 = vpop.f32.mrb[34].mxu1  ;;  %3644 = vrot.lane.b32.xlu0 %v5743_v59, %s6168_s9  ;;  %9377 = vst [vmem:[#allocation13_spill] sm:$0xff] %v8062_v37  ;;  %v8065_v45 = vpop.eup %5746  ;;  %5758 = vrcp.f32 %v3502_v7 }
 0x30c   : > { %v3076_v32 = vpop.f32.mrb[36].mxu0  ;;  %v8046_v39 = vadd.f32 %v3069_v17, %v1964_v31  ;;  %v1966_v4 = vpop.f32.mrb[35].mxu1  ;;  %9378 = vst [vmem:[#allocation11_spill] sm:$0xff] %v8065_v45  ;;  %5760 = vtanh.f32 %v8022_v8 }
 0x30d   : > { %v3078_v2 = vpop.f32.mrb[37].mxu0  ;;  %v8048_v63 = vadd.f32 %v3071_v26, %v1966_v4  ;;  %v5102_v26 = vmul.f32 -1.442695, %v8015_v5  ;;  %v5749_v15 = vpop.eup %5748 }
 0x30e   : > { %9374 = vst [vmem:[#allocation10_spill] sm:$0xff] %v8046_v39  ;;  %3646 = vrot.lane.b32.xlu1 %v5749_v15, %s6168_s9  ;;  %v5751_v5 = vpop.eup %5750 }
 0x30f   : > { %v1972_v46 = vpop.f32.mrb[36].mxu1  ;;  %3796 = vrot.lane.b32.xlu0 %v8065_v45, %s6169_s27  ;;  %5762 = vpow2.f32 %v5102_v26  ;;  %v8085_v26 = vpop.permute.xlu1 %3938 }
 0x310   : > { %v3083_v14 = vpop.f32.mrb[38].mxu0  ;;  %v8055_v21 = vadd.f32 %v3076_v32, %v1972_v46  ;;  %v1974_v48 = vpop.f32.mrb[37].mxu1  ;;  %9382 = vst [vmem:[#allocation17_spill] sm:$0xff] %v8085_v26 }
 0x311   : > { %v3085_v52 = vpop.f32.mrb[39].mxu0  ;;  %v8058_v17 = vadd.f32 %v3078_v2, %v1974_v48  ;;  %v3503_v2 = vadd.f32 1.0, %v5745_v51  ;;  %v8078_v51 = vpop.eup %5752 }
 0x312   : > { %9375 = vst [vmem:[#allocation8_spill] sm:$0xff] %v8055_v21  ;;  %9381 = vst [vmem:[#allocation14_spill] sm:$0xff] %v8078_v51  ;;  %v5755_v34 = vpop.eup %5754  ;;  %3798 = vrot.lane.b32.xlu1 %v8078_v51, %s6169_s27 }
 0x313   : > { %v1980_v57 = vpop.f32.mrb[38].mxu1  ;;  %5764 = vrcp.f32 %v3503_v2  ;;  %3648 = vrot.lane.b32.xlu0 %v5755_v34, %s6168_s9  ;;  %v5757_v15 = vpop.eup %5756 }
 0x314   : > { %v3090_v20 = vpop.f32.mrb[40].mxu0  ;;  %v8067_v31 = vadd.f32 %v3083_v14, %v1980_v57  ;;  %v1982_v32 = vpop.f32.mrb[39].mxu1  ;;  %v5103_v14 = vmul.f32 -1.442695, %v8026_v6  ;;  %5766 = vtanh.f32 %v8032_v30  ;;  %v3505_v47 = vadd.f32 1.0, %v5757_v15 }
 0x315   : > { %v3092_v4 = vpop.f32.mrb[41].mxu0  ;;  %v8072_v11 = vadd.f32 %v3085_v52, %v1982_v32  ;;  %v3504_v52 = vadd.f32 1.0, %v5751_v5  ;;  %v8087_v32 = vpop.permute.xlu0 %3940  ;;  %v5104_v5 = vmul.f32 -1.442695, %v8034_v36 }
 0x316   : > { %9379 = vst [vmem:[#allocation15_spill] sm:$0xff] %v8067_v31  ;;  %9383 = vst [vmem:[#allocation19_spill] sm:$0xff] %v8087_v32  ;;  %5768 = vpow2.f32 %v5103_v14  ;;  %v8095_v60 = vpop.eup %5758  ;;  %v8106_v15 = vpop.permute.xlu1 %3942 }
 0x317   : > { %v1988_v46 = vpop.f32.mrb[40].mxu1  ;;  %9385 = vst [vmem:[#allocation20_spill] sm:$0xff] %v8095_v60  ;;  %5770 = vrcp.f32 %v3504_v52  ;;  %v5761_v26 = vpop.eup %5760  ;;  %3800 = vrot.lane.b32.xlu0 %v8095_v60, %s6169_s27  ;;  %v5105_v52 = vmul.f32 -1.442695, %v8048_v63  ;;  %9387 = vst [vmem:[#allocation22_spill] sm:$0xff] %v8106_v15 }
 0x318   : > { %v3097_v59 = vpop.f32.mrb[42].mxu0  ;;  %v8076_v7 = vadd.f32 %v3090_v20, %v1988_v46  ;;  %v1990_v48 = vpop.f32.mrb[41].mxu1  ;;  %5772 = vtanh.f32 %v8046_v39  ;;  %3650 = vrot.lane.b32.xlu1 %v5761_v26, %s6168_s9 }
 0x319   : > { %v3099_v57 = vpop.f32.mrb[43].mxu0  ;;  %v8080_v37 = vadd.f32 %v3092_v4, %v1990_v48  ;;  %5774 = vpow2.f32 %v5104_v5  ;;  %v8108_v32 = vpop.permute.xlu0 %3944 }
 0x31a   : > { %9380 = vst [vmem:[#allocation16_spill] sm:$0xff] %v8076_v7  ;;  %9388 = vst [vmem:[#allocation23_spill] sm:$0xff] %v8108_v32  ;;  %5776 = vrcp.f32 %v3505_v47  ;;  %v5106_v47 = vmul.f32 -1.442695, %v8058_v17  ;;  %v8131_v17 = vpop.permute.xlu1 %3946 }
 0x31b   : > { %v1996_v6 = vpop.f32.mrb[42].mxu1  ;;  %5778 = vtanh.f32 %v8055_v21  ;;  %9392 = vst [vmem:[#allocation25_spill] sm:$0xff] %v8131_v17 }
 0x31c   : > { %v3104_v20 = vpop.f32.mrb[44].mxu0  ;;  %v8090_v2 = vadd.f32 %v3097_v59, %v1996_v6  ;;  %v1998_v4 = vpop.f32.mrb[43].mxu1  ;;  %5780 = vpow2.f32 %v5105_v52 }
 0x31d   : > { %v3106_v46 = vpop.f32.mrb[45].mxu0  ;;  %v8093_v48 = vadd.f32 %v3099_v57, %v1998_v4  ;;  %v5763_v57 = vpop.eup %5762 }
 0x31e   : > { %9384 = vst [vmem:[#allocation18_spill] sm:$0xff] %v8090_v2  ;;  %v8110_v13 = vpop.eup %5764  ;;  %v8133_v52 = vpop.permute.xlu0 %3948 }
 0x31f   : > { %v2004_v34 = vpop.f32.mrb[44].mxu1  ;;  %9389 = vst [vmem:[#allocation24_spill] sm:$0xff] %v8110_v13  ;;  %v5767_v26 = vpop.eup %5766  ;;  %3802 = vrot.lane.b32.xlu1 %v8110_v13, %s6169_s27  ;;  %9393 = vst [vmem:[#allocation28_spill] sm:$0xff] %v8133_v52 }
 0x320   : > { %v3111_v14 = vpop.f32.mrb[46].mxu0  ;;  %v8101_v59 = vadd.f32 %v3104_v20, %v2004_v34  ;;  %v2006_v6 = vpop.f32.mrb[45].mxu1  ;;  %v3506_v20 = vadd.f32 1.0, %v5763_v57  ;;  %3652 = vrot.lane.b32.xlu0 %v5767_v26, %s6168_s9 }
 0x321   : > { %v3113_v36 = vpop.f32.mrb[47].mxu0  ;;  %v8103_v4 = vadd.f32 %v3106_v46, %v2006_v6  ;;  %v5769_v6 = vpop.eup %5768 }
 0x322   : > { %9386 = vst [vmem:[#allocation21_spill] sm:$0xff] %v8101_v59  ;;  %v8121_v57 = vpop.eup %5770  ;;  %5782 = vrcp.f32 %v3506_v20  ;;  %v3507_v21 = vadd.f32 1.0, %v5769_v6  ;;  %v5107_v20 = vmul.f32 -1.442695, %v8072_v11 }
 0x323   : > { %v2012_v60 = vpop.f32.mrb[46].mxu1  ;;  %9391 = vst [vmem:[#allocation27_spill] sm:$0xff] %v8121_v57  ;;  %5784 = vtanh.f32 %v8067_v31 }
 0x324   : > { %v3118_v51 = vpop.f32.mrb[48].mxu0  ;;  %v8115_v46 = vadd.f32 %v3111_v14, %v2012_v60  ;;  %v2014_v5 = vpop.f32.mrb[47].mxu1  ;;  %3804 = vrot.lane.b32.xlu0 %v8121_v57, %s6169_s27  ;;  %5786 = vpow2.f32 %v5106_v47 }
 0x325   : > { %v3120_v63 = vpop.f32.mrb[49].mxu0  ;;  %v8118_v34 = vadd.f32 %v3113_v36, %v2014_v5  ;;  %v5773_v14 = vpop.eup %5772  ;;  %5788 = vrcp.f32 %v3507_v21  ;;  %v5108_v21 = vmul.f32 -1.442695, %v8080_v37 }
 0x326   : > { %9390 = vst [vmem:[#allocation26_spill] sm:$0xff] %v8115_v46  ;;  %3654 = vrot.lane.b32.xlu1 %v5773_v14, %s6168_s9  ;;  %v5775_v26 = vpop.eup %5774  ;;  %5790 = vtanh.f32 %v8076_v7 }
 0x327   : > { %v2020_v32 = vpop.f32.mrb[48].mxu1  ;;  %v8138_v39 = vpop.eup %5776  ;;  %v3508_v14 = vadd.f32 1.0, %v5775_v26  ;;  %5792 = vpow2.f32 %v5107_v20 }
 0x328   : > { %v3125_v15 = vpop.f32.mrb[50].mxu0  ;;  %v8123_v58 = vadd.f32 %v3118_v51, %v2020_v32  ;;  %v2022_v13 = vpop.f32.mrb[49].mxu1  ;;  %9394 = vst [vmem:[#allocation29_spill] sm:$0xff] %v8138_v39 }
 0x329   : > { %v3127_v60 = vpop.f32.mrb[51].mxu0  ;;  %v8128_v36 = vadd.f32 %v3120_v63, %v2022_v13  ;;  %v5779_v63 = vpop.eup %5778  ;;  %5794 = vrcp.f32 %v3508_v14 }
 0x32a   : > { %3806 = vrot.lane.b32.xlu1 %v8138_v39, %s6169_s27  ;;  %3656 = vrot.lane.b32.xlu0 %v5779_v63, %s6168_s9  ;;  %v8155_v39 = vpop.permute.xlu0 %3952  ;;  %5796 = vtanh.f32 %v8090_v2 }
 0x32b   : > { %v2028_v51 = vpop.f32.mrb[50].mxu1  ;;  %9397 = vst [vmem:[#allocation32_spill] sm:$0xff] %v8155_v39  ;;  %5798 = vpow2.f32 %v5108_v21  ;;  %v5109_v39 = vmul.f32 -1.442695, %v8093_v48 }
 0x32c   : > { %v3132_v32 = vpop.f32.mrb[52].mxu0  ;;  %v8136_v5 = vadd.f32 %v3125_v15, %v2028_v51  ;;  %v2030_v6 = vpop.f32.mrb[51].mxu1 }
 0x32d   : > { %v3134_v31 = vpop.f32.mrb[53].mxu0  ;;  %v8140_v13 = vadd.f32 %v3127_v60, %v2030_v6  ;;  %v5781_v15 = vpop.eup %5780 }
 0x32e   : > { %v8151_v26 = vpop.eup %5782  ;;  %v8153_v6 = vpop.permute.xlu1 %3950  ;;  %v3509_v57 = vadd.f32 1.0, %v5781_v15 }
 0x32f   : > { %v2036_v47 = vpop.f32.mrb[52].mxu1  ;;  %9395 = vst [vmem:[#allocation30_spill] sm:$0xff] %v8151_v26  ;;  %9396 = vst [vmem:[#allocation31_spill] sm:$0xff] %v8153_v6  ;;  %v5785_v63 = vpop.eup %5784  ;;  %3808 = vrot.lane.b32.xlu0 %v8151_v26, %s6169_s27 }
 0x330   : > { %v3139_v11 = vpop.f32.mrb[54].mxu0  ;;  %v8146_v51 = vadd.f32 %v3132_v32, %v2036_v47  ;;  %v2038_v52 = vpop.f32.mrb[53].mxu1  ;;  %3658 = vrot.lane.b32.xlu1 %v5785_v63, %s6168_s9  ;;  %5800 = vrcp.f32 %v3509_v57 }
 0x331   : > { %v3141_v17 = vpop.f32.mrb[55].mxu0  ;;  %v8149_v60 = vadd.f32 %v3134_v31, %v2038_v52  ;;  %v5787_v14 = vpop.eup %5786  ;;  %5802 = vtanh.f32 %v8101_v59 }
 0x332   : > { %v8166_v15 = vpop.eup %5788  ;;  %v3510_v7 = vadd.f32 1.0, %v5787_v14  ;;  %5804 = vpow2.f32 %v5109_v39  ;;  %v8176_v57 = vpop.permute.xlu1 %3954 }
 0x333   : > { %v2044_v32 = vpop.f32.mrb[54].mxu1  ;;  %9398 = vst [vmem:[#allocation33_spill] sm:$0xff] %v8166_v15  ;;  %v5791_v26 = vpop.eup %5790  ;;  %9399 = vst [vmem:[#allocation35_spill] sm:$0xff] %v8176_v57 }
 0x334   : > { %v3146_v20 = vpop.f32.mrb[56].mxu0  ;;  %v8161_v37 = vadd.f32 %v3139_v11, %v2044_v32  ;;  %v2046_v31 = vpop.f32.mrb[55].mxu1  ;;  %3810 = vrot.lane.b32.xlu1 %v8166_v15, %s6169_s27  ;;  %3660 = vrot.lane.b32.xlu0 %v5791_v26, %s6168_s9  ;;  %5806 = vrcp.f32 %v3510_v7  ;;  %v5111_v7 = vmul.f32 -1.442695, %v8118_v34 }
 0x335   : > { %v3148_v52 = vpop.f32.mrb[57].mxu0  ;;  %v8163_v47 = vadd.f32 %v3141_v17, %v2046_v31  ;;  %v5793_v48 = vpop.eup %5792  ;;  %v5110_v31 = vmul.f32 -1.442695, %v8103_v4  ;;  %5808 = vtanh.f32 %v8115_v46 }
 0x336   : > { %v8178_v32 = vpop.permute.xlu0 %3956  ;;  %v8181_v45 = vpop.eup %5794 }
 0x337   : > { %v2052_v6 = vpop.f32.mrb[56].mxu1  ;;  %9400 = vst [vmem:[#allocation48_spill] sm:$0xff] %v8178_v32  ;;  %9401 = vst [vmem:[#allocation47_spill] sm:$0xff] %v8181_v45  ;;  %v5797_v26 = vpop.eup %5796  ;;  %5810 = vpow2.f32 %v5110_v31 }
 0x338   : > { %v3153_v2 = vpop.f32.mrb[58].mxu0  ;;  %v8171_v11 = vadd.f32 %v3146_v20, %v2052_v6  ;;  %v2054_v63 = vpop.f32.mrb[57].mxu1  ;;  %3812 = vrot.lane.b32.xlu0 %v8181_v45, %s6169_s27  ;;  %3662 = vrot.lane.b32.xlu1 %v5797_v26, %s6168_s9 }
 0x339   : > { %v3155_v21 = vpop.f32.mrb[59].mxu0  ;;  %v8174_v17 = vadd.f32 %v3148_v52, %v2054_v63  ;;  %v3511_v52 = vadd.f32 1.0, %v5793_v48  ;;  %v5799_v4 = vpop.eup %5798 }
 0x33a   : > { %v8194_v48 = vpop.eup %5800  ;;  %v8196_v46 = vpop.permute.xlu1 %3958 }
 0x33b   : > { %v2060_v14 = vpop.f32.mrb[58].mxu1  ;;  %5812 = vrcp.f32 %v3511_v52  ;;  %9402 = vst [vmem:[#allocation49_spill] sm:$0xff] %v8196_v46  ;;  %v8203_v31 = vpop.permute.xlu0 %3960 }
 0x33c   : > { %v3160_v59 = vpop.f32.mrb[60].mxu0  ;;  %v8183_v6 = vadd.f32 %v3153_v2, %v2060_v14  ;;  %v2062_v20 = vpop.f32.mrb[59].mxu1  ;;  %5814 = vtanh.f32 %v8123_v58  ;;  %3814 = vrot.lane.b32.xlu1 %v8194_v48, %s6169_s27  ;;  %9403 = vst [vmem:[#allocation50_spill] sm:$0xff] %v8203_v31 }
 0x33d   : > { %v3162_v15 = vpop.f32.mrb[61].mxu0  ;;  %v8188_v39 = vadd.f32 %v3155_v21, %v2062_v20  ;;  %v5803_v21 = vpop.eup %5802  ;;  %v3512_v20 = vadd.f32 1.0, %v5799_v4  ;;  %5816 = vpow2.f32 %v5111_v7 }
 0x33e   : > { %3664 = vrot.lane.b32.xlu0 %v5803_v21, %s6168_s9  ;;  %v5805_v34 = vpop.eup %5804  ;;  %v8216_v21 = vpop.permute.xlu1 %3962 }
 0x33f   : > { %v2068_v63 = vpop.f32.mrb[60].mxu1  ;;  %v8211_v4 = vpop.eup %5806  ;;  %5818 = vrcp.f32 %v3512_v20  ;;  %v3513_v46 = vadd.f32 1.0, %v5805_v34  ;;  %9404 = vst [vmem:[#allocation51_spill] sm:$0xff] %v8216_v21  ;;  %v5056_v20 = vmul.f32 -1.442695, %v7926_v42 }
 0x340   : > { %v3167_v32 = vpop.f32.mrb[62].mxu0  ;;  %v8192_v2 = vadd.f32 %v3160_v59, %v2068_v63  ;;  %v2070_v14 = vpop.f32.mrb[61].mxu1  ;;  %5820 = vtanh.f32 %v8136_v5 }
 0x341   : > { %v3169_v57 = vpop.f32.mrb[63].mxu0  ;;  %v8198_v45 = vadd.f32 %v3162_v15, %v2070_v14  ;;  %v5112_v15 = vmul.f32 -1.442695, %v8128_v36  ;;  %v5809_v14 = vpop.eup %5808  ;;  %v5113_v36 = vmul.f32 -1.442695, %v8140_v13 }
 0x342   : > { %3816 = vrot.lane.b32.xlu0 %v8211_v4, %s6169_s27  ;;  %3666 = vrot.lane.b32.xlu1 %v5809_v14, %s6168_s9  ;;  %v5811_v7 = vpop.eup %5810  ;;  %v5114_v13 = vmul.f32 -1.442695, %v8149_v60  ;;  %v5115_v60 = vmul.f32 -1.442695, %v8163_v47 }
 0x343   : > { %v2076_v59 = vpop.f32.mrb[62].mxu1  ;;  %5822 = vpow2.f32 %v5112_v15  ;;  %v3514_v34 = vadd.f32 1.0, %v5811_v7 }
 0x344   : > { %v8206_v26 = vadd.f32 %v3167_v32, %v2076_v59  ;;  %v2078_v52 = vpop.f32.mrb[63].mxu1  ;;  %v8219_v32 = vpop.permute.xlu0 %3964  ;;  %5824 = vrcp.f32 %v3513_v46  ;;  %v5057_v46 = vmul.f32 -1.442695, %v7929_v19 }
 0x345   : > { %v8209_v63 = vadd.f32 %v3169_v57, %v2078_v52  ;;  %9405 = vst [vmem:[#allocation52_spill] sm:$0xff] %v8219_v32  ;;  %v8222_v57 = vpop.eup %5812  ;;  %5826 = vtanh.f32 %v8146_v51  ;;  %v8229_v52 = vpop.permute.xlu1 %3966 }
 0x346   : > { %v5815_v59 = vpop.eup %5814  ;;  %3818 = vrot.lane.b32.xlu1 %v8222_v57, %s6169_s27  ;;  %9406 = vst [vmem:[#allocation53_spill] sm:$0xff] %v8229_v52  ;;  %5828 = vpow2.f32 %v5113_v36 }
 0x347   : > { %3668 = vrot.lane.b32.xlu0 %v5815_v59, %s6168_s9  ;;  %v5817_v14 = vpop.eup %5816  ;;  %5830 = vpow2.f32 %v5056_v20 }
 0x348   : > { %v8231_v15 = vpop.permute.xlu0 %3968  ;;  %5832 = vrcp.f32 %v3514_v34  ;;  %v3515_v32 = vadd.f32 1.0, %v5817_v14  ;;  %v5116_v34 = vmul.f32 -1.442695, %v8174_v17 }
 0x349   : > { %9407 = vst [vmem:[#allocation54_spill] sm:$0xff] %v8231_v15  ;;  %v8234_v42 = vpop.eup %5818  ;;  %5834 = vtanh.f32 %v8161_v37  ;;  %v8241_v59 = vpop.permute.xlu1 %3970 }
 0x34a   : > { %v5821_v7 = vpop.eup %5820  ;;  %5836 = vpow2.f32 %v5114_v13  ;;  %9408 = vst [vmem:[#allocation55_spill] sm:$0xff] %v8241_v59  ;;  %v5117_v59 = vmul.f32 -1.442695, %v8188_v39  ;;  %v5060_v39 = vmul.f32 -1.442695, %v7939_v33 }
 0x34b   : > { %3820 = vrot.lane.b32.xlu0 %v8234_v42, %s6169_s27  ;;  %3670 = vrot.lane.b32.xlu1 %v5821_v7, %s6168_s9  ;;  %5838 = vpow2.f32 %v5057_v46  ;;  %v5058_v46 = vmul.f32 -1.442695, %v7932_v12 }
 0x34c   : > { %v8244_v20 = vpop.permute.xlu0 %3620  ;;  %5840 = vrcp.f32 %v3515_v32  ;;  %v5059_v32 = vmul.f32 -1.442695, %v7935_v27 }
 0x34d   : > { %v5823_v36 = vpop.eup %5822  ;;  %9409 = vst [vmem:[#allocation56_spill] sm:$0xff] %v8244_v20  ;;  %5842 = vtanh.f32 %v8171_v11  ;;  %v8257_v17 = vpop.permute.xlu1 %3622 }
 0x34e   : > { %v8246_v19 = vpop.eup %5824  ;;  %v3516_v15 = vadd.f32 1.0, %v5823_v36  ;;  %5844 = vpow2.f32 %v5115_v60  ;;  %9411 = vst [vmem:[#allocation58_spill] sm:$0xff] %v8257_v17 }
 0x34f   : > { %v5827_v14 = vpop.eup %5826  ;;  %3822 = vrot.lane.b32.xlu1 %v8246_v19, %s6169_s27  ;;  %5846 = vpow2.f32 %v5116_v34 }
 0x350   : > { %3672 = vrot.lane.b32.xlu0 %v5827_v14, %s6168_s9  ;;  %v5829_v13 = vpop.eup %5828  ;;  %v8254_v47 = vpop.permute.xlu0 %3624  ;;  %5848 = vrcp.f32 %v3516_v15 }
 0x351   : > { %9410 = vst [vmem:[#allocation57_spill] sm:$0xff] %v8254_v47  ;;  %v5831_v7 = vpop.eup %5830  ;;  %v3517_v20 = vadd.f32 1.0, %v5829_v13  ;;  %5850 = vtanh.f32 %v8183_v6  ;;  %v5118_v13 = vmul.f32 -1.442695, %v8198_v45 }
 0x352   : > { %v8259_v36 = vpop.eup %5832  ;;  %5852 = vpow2.f32 %v5058_v46  ;;  %v3268_v60 = vadd.f32 1.0, %v5831_v7 }
 0x353   : > { %v5835_v52 = vpop.eup %5834  ;;  %5854 = vpow2.f32 %v5059_v32  ;;  %v8268_v34 = vpop.permute.xlu1 %3626 }
 0x354   : > { %3824 = vrot.lane.b32.xlu0 %v8259_v36, %s6169_s27  ;;  %3674 = vrot.lane.b32.xlu1 %v5835_v52, %s6168_s9  ;;  %v5837_v27 = vpop.eup %5836  ;;  %9413 = vst [vmem:[#allocation34_spill] sm:$0xff] %v8268_v34  ;;  %5856 = vpow2.f32 %v5117_v59 }
 0x355   : > { %v5839_v15 = vpop.eup %5838  ;;  %5858 = vrcp.f32 %v3517_v20  ;;  %v3518_v46 = vadd.f32 1.0, %v5837_v27  ;;  %v5119_v27 = vmul.f32 -1.442695, %v8209_v63 }
 0x356   : > { %v8271_v14 = vpop.eup %5840  ;;  %5860 = vtanh.f32 %v8192_v2  ;;  %v3269_v20 = vadd.f32 1.0, %v5839_v15 }
 0x357   : > { %v5843_v47 = vpop.eup %5842  ;;  %5862 = vrcp.f32 %v3268_v60 }
 0x358   : > { %v8266_v12 = vpop.permute.xlu0 %3628  ;;  %3826 = vrot.lane.b32.xlu1 %v8271_v14, %s6169_s27  ;;  %3676 = vrot.lane.b32.xlu0 %v5843_v47, %s6168_s9  ;;  %v5845_v33 = vpop.eup %5844  ;;  %5864 = vpow2.f32 %v5060_v39 }
 0x359   : > { %9412 = vst [vmem:[#allocation59_spill] sm:$0xff] %v8266_v12  ;;  %v5847_v59 = vpop.eup %5846  ;;  %5866 = vpow2.f32 %v5118_v13  ;;  %v3519_v34 = vadd.f32 1.0, %v5845_v33 }
 0x35a   : > { %v8282_v45 = vpop.eup %5848  ;;  %5868 = vrcp.f32 %v3518_v46  ;;  %v3520_v32 = vadd.f32 1.0, %v5847_v59  ;;  %v5061_v59 = vmul.f32 -1.442695, %v7944_v9 }
 0x35b   : > { %v5851_v12 = vpop.eup %5850  ;;  %5870 = vtanh.f32 %v8206_v26 }
 0x35c   : > { %v8278_v52 = vpop.permute.xlu1 %3630  ;;  %v8280_v7 = vpop.permute.xlu0 %3780  ;;  %3828 = vrot.lane.b32.xlu0 %v8282_v45, %s6169_s27  ;;  %5872 = vrcp.f32 %v3520_v32  ;;  %3678 = vrot.lane.b32.xlu1 %v5851_v12, %s6168_s9 }
 0x35d   : > { %9414 = vst [vmem:[#allocation36_spill] sm:$0xff] %v8278_v52  ;;  %v5853_v60 = vpop.eup %5852  ;;  %5874 = vrcp.f32 %v3269_v20 }
 0x35e   : > { %v5855_v15 = vpop.eup %5854  ;;  %5876 = vpow2.f32 %v5119_v27 }
 0x35f   : > { %v5857_v13 = vpop.eup %5856  ;;  %5878 = vrcp.f32 %v3519_v34  ;;  %v5062_v34 = vmul.f32 -1.442695, %v7948_v55  ;;  %v3271_v31 = vadd.f32 1.0, %v5855_v15 }
 0x360   : > { %v8293_v63 = vpop.eup %5858  ;;  %v3521_v46 = vadd.f32 1.0, %v5857_v13 }
 0x361   : > { %v5861_v33 = vpop.eup %5860  ;;  %3830 = vrot.lane.b32.xlu1 %v8293_v63, %s6169_s27 }
 0x362   : > { %v8288_v47 = vpop.permute.xlu1 %3782  ;;  %v8298_v52 = vpop.eup %5862  ;;  %5880 = vrcp.f32 %v3521_v46  ;;  %3680 = vrot.lane.b32.xlu0 %v5861_v33, %s6168_s9 }
 0x363   : > { %9416 = vst [vmem:[#allocation38_spill] sm:$0xff] %v8298_v52  ;;  %v5865_v32 = vpop.eup %5864  ;;  %5882 = vpow2.f32 %v5061_v59  ;;  %v3876_v46 = vadd.f32 %v8298_v52, %v8280_v7  ;;  %v5063_v59 = vmul.f32 -1.442695, %v7956_v43  ;;  %v5064_v52 = vmul.f32 -1.442695, %v7958_v1 }
 0x364   : > { %v5867_v27 = vpop.eup %5866  ;;  %5884 = vpow2.f32 %v5062_v34 }
 0x365   : > { %v8291_v39 = vpop.permute.xlu0 %3632  ;;  %v8306_v13 = vpop.eup %5868  ;;  %v3522_v21 = vadd.f32 1.0, %v5867_v27 }
 0x366   : > { %9415 = vst [vmem:[#allocation37_spill] sm:$0xff] %v8291_v39  ;;  %9418 = vst [vmem:[#allocation40_spill] sm:$0xff] %v8306_v13  ;;  %v3270_v39 = vadd.f32 1.0, %v5853_v60  ;;  %v5871_v9 = vpop.eup %5870  ;;  %3832 = vrot.lane.b32.xlu0 %v8306_v13, %s6169_s27 }
 0x367   : > { %v8316_v17 = vpop.eup %5872  ;;  %3682 = vrot.lane.b32.xlu1 %v5871_v9, %s6168_s9  ;;  %v3272_v9 = vadd.f32 1.0, %v5865_v32 }
 0x368   : > { %v8301_v12 = vpop.permute.xlu1 %3634  ;;  %v8319_v55 = vpop.eup %5874  ;;  %5886 = vrcp.f32 %v3270_v39 }
 0x369   : > { %9417 = vst [vmem:[#allocation39_spill] sm:$0xff] %v8301_v12  ;;  %v8303_v20 = vpop.permute.xlu0 %3784  ;;  %v5877_v60 = vpop.eup %5876  ;;  %5888 = vrcp.f32 %v3522_v21  ;;  %v3877_v27 = vadd.f32 %v8319_v55, %v8288_v47 }
 0x36a   : > { %v8322_v13 = vpop.eup %5878  ;;  %3836 = vrot.lane.b32.xlu0 %v8316_v17, %s6169_s27  ;;  %v3523_v34 = vadd.f32 1.0, %v5877_v60  ;;  %5890 = vpow2.f32 %v5063_v59 }
 0x36b   : > { %3834 = vrot.lane.b32.xlu1 %v8322_v13, %s6169_s27  ;;  %5892 = vrcp.f32 %v3271_v31  ;;  %v4005_v21 = vmul.f32 %v7951_v50, %v3877_v27  ;;  %v4197_v31 = vadd.f32 %v7976_v40, %v8288_v47  ;;  %v5066_v50 = vmul.f32 -1.442695, %v7974_v49  ;;  %v6079_v40 = vld [vmem:[%s6633_s18 + $0x8] sm:$0xff] }
 0x36c   : > { %v8312_v33 = vpop.permute.xlu1 %3786  ;;  %v8336_v15 = vpop.eup %5880  ;;  %5894 = vpow2.f32 %v5064_v52 }
 0x36d   : > { %v8314_v12 = vpop.permute.xlu0 %3636  ;;  %v5883_v1 = vpop.eup %5882  ;;  %5896 = vrcp.f32 %v3523_v34  ;;  %v4229_v47 = vmul.f32 %v6079_v40, %v4197_v31 }
 0x36e   : > { %9419 = vst [vmem:[#allocation41_spill] sm:$0xff] %v8314_v12  ;;  %v4004_v12 = vmul.f32 %v7942_v0, %v3876_v46  ;;  %v4196_v0 = vadd.f32 %v7968_v62, %v8280_v7  ;;  %5898 = vrcp.f32 %v3272_v9  ;;  %v5065_v62 = vmul.f32 -1.442695, %v7966_v28  ;;  %v5885_v52 = vpop.eup %5884 }
 0x36f   : > { %3838 = vrot.lane.b32.xlu1 %v8336_v15, %s6169_s27  ;;  %v3274_v28 = vadd.f32 1.0, %v5885_v52 }
 0x370   : > { %v8332_v39 = vpop.permute.xlu1 %3638  ;;  %4068 = vrot.lane.b32.xlu0 %v4004_v12, %s6166_s7  ;;  %v3273_v12 = vadd.f32 1.0, %v5883_v1  ;;  %5900 = vpow2.f32 %v5065_v62  ;;  %v4198_v1 = vadd.f32 %v7988_v29, %v8303_v20  ;;  %v5068_v29 = vmul.f32 -1.442695, %v7991_v22 }
 0x371   : > { %9420 = vst [vmem:[#allocation42_spill] sm:$0xff] %v8332_v39  ;;  %v8334_v43 = vpop.permute.xlu0 %3788  ;;  %v6078_v39 = vld [vmem:[%s6633_s18] sm:$0xff] }
 0x372   : > { %v4228_v60 = vmul.f32 %v6078_v39, %v4196_v0  ;;  %v8353_v32 = vpop.eup %5886  ;;  %5902 = vrcp.f32 %v3273_v12 }
 0x373   : > { %4070 = vrot.lane.b32.xlu1 %v4005_v21, %s6166_s7  ;;  %v3878_v59 = vadd.f32 %v8353_v32, %v8303_v20  ;;  %v8359_v27 = vpop.eup %5888  ;;  %5904 = vpow2.f32 %v5066_v50 }
 0x374   : > { %v8344_v46 = vpop.permute.xlu1 %3790  ;;  %4292 = vrot.lane.b32.xlu0 %v4228_v60, %s6169_s27  ;;  %v5891_v0 = vpop.eup %5890  ;;  %5906 = vrcp.f32 %v3274_v28  ;;  %v5067_v60 = vmul.f32 -1.442695, %v7985_v41  ;;  %v6080_v41 = vld [vmem:[%s6633_s18 + $0x10] sm:$0xff] }
 0x375   : > { %v8350_v7 = vpop.permute.xlu0 %3640  ;;  %v8369_v49 = vpop.eup %5892  ;;  %v4006_v9 = vmul.f32 %v7953_v3, %v3878_v59  ;;  %v3275_v12 = vadd.f32 1.0, %v5891_v0  ;;  %v4230_v20 = vmul.f32 %v6080_v41, %v4198_v1 }
 0x376   : > { %v5895_v21 = vpop.eup %5894  ;;  %v3879_v62 = vadd.f32 %v8369_v49, %v8312_v33  ;;  %5908 = vpow2.f32 %v5067_v60 }
 0x377   : > { %4294 = vrot.lane.b32.xlu1 %v4229_v47, %s6169_s27  ;;  %v8379_v52 = vpop.eup %5896  ;;  %v3276_v28 = vadd.f32 1.0, %v5895_v21  ;;  %v4199_v47 = vadd.f32 %v8000_v25, %v8312_v33  ;;  %5910 = vrcp.f32 %v3275_v12  ;;  %v5069_v25 = vmul.f32 -1.442695, %v8002_v53  ;;  %v6081_v33 = vld [vmem:[%s6633_s18 + $0x18] sm:$0xff] }
 0x378   : > { %v8362_v39 = vpop.permute.xlu1 %3642  ;;  %3840 = vrot.lane.b32.xlu0 %v8359_v27, %s6169_s27  ;;  %v8384_v3 = vpop.eup %5898  ;;  %v4007_v40 = vmul.f32 %v7962_v38, %v3879_v62  ;;  %5912 = vpow2.f32 %v5068_v29  ;;  %v4200_v38 = vadd.f32 %v8008_v61, %v8334_v43  ;;  %v5070_v61 = vmul.f32 -1.442695, %v8010_v10 }
 0x379   : > { %v8364_v34 = vpop.permute.xlu0 %3792  ;;  %v3880_v59 = vadd.f32 %v8384_v3, %v8334_v43  ;;  %5914 = vrcp.f32 %v3276_v28  ;;  %v4231_v60 = vmul.f32 %v6081_v33, %v4199_v47  ;;  %v6082_v43 = vld [vmem:[%s6633_s18 + $0x20] sm:$0xff]  ;;  %v4201_v47 = vadd.f32 %v8024_v23, %v8344_v46  ;;  %v6083_v23 = vld [vmem:[%s6633_s18 + $0x28] sm:$0xff] }
 0x37a   : > { %v4232_v29 = vmul.f32 %v6082_v43, %v4200_v38  ;;  %5916 = vpow2.f32 %v5069_v25  ;;  %v4202_v38 = vadd.f32 %v8036_v56, %v8364_v34  ;;  %v6084_v56 = vld [vmem:[%s6633_s18 + $0x30] sm:$0xff] }
 0x37b   : > { %3842 = vrot.lane.b32.xlu1 %v8379_v52, %s6169_s27  ;;  %v4008_v21 = vmul.f32 %v7964_v44, %v3880_v59 }
 0x37c   : > { %v8377_v31 = vpop.permute.xlu1 %3794  ;;  %4072 = vrot.lane.b32.xlu0 %v4006_v9, %s6166_s7  ;;  %v5901_v9 = vpop.eup %5900 }
 0x37d   : > { %v8382_v50 = vpop.permute.xlu0 %3644  ;;  %v8401_v1 = vpop.eup %5902  ;;  %v3277_v41 = vadd.f32 1.0, %v5901_v9 }
 0x37e   : > { %v3881_v62 = vadd.f32 %v8401_v1, %v8344_v46  ;;  %v5905_v12 = vpop.eup %5904  ;;  %v4233_v46 = vmul.f32 %v6083_v23, %v4201_v47 }
 0x37f   : > { %4074 = vrot.lane.b32.xlu1 %v4007_v40, %s6166_s7  ;;  %v3278_v28 = vadd.f32 1.0, %v5905_v12  ;;  %5918 = vrcp.f32 %v3277_v41 }
 0x380   : > { %4296 = vrot.lane.b32.xlu0 %v4230_v20, %s6169_s27  ;;  %v8399_v22 = vpop.permute.xlu1 %3646  ;;  %v8411_v20 = vpop.eup %5906  ;;  %v4009_v40 = vmul.f32 %v7979_v18, %v3881_v62  ;;  %5920 = vpow2.f32 %v5070_v61  ;;  %v5071_v18 = vmul.f32 -1.442695, %v8022_v8 }
 0x381   : > { %v8396_v0 = vpop.permute.xlu0 %3796  ;;  %v3882_v53 = vadd.f32 %v8411_v20, %v8364_v34  ;;  %v5909_v9 = vpop.eup %5908  ;;  %5922 = vrcp.f32 %v3278_v28  ;;  %v4234_v34 = vmul.f32 %v6084_v56, %v4202_v38 }
 0x382   : > { %v8427_v10 = vpop.eup %5910  ;;  %v3279_v12 = vadd.f32 1.0, %v5909_v9  ;;  %5924 = vpow2.f32 %v5071_v18 }
 0x383   : > { %4298 = vrot.lane.b32.xlu1 %v4231_v60, %s6169_s27  ;;  %v3883_v33 = vadd.f32 %v8427_v10, %v8377_v31  ;;  %v5913_v62 = vpop.eup %5912 }
 0x384   : > { %4076 = vrot.lane.b32.xlu0 %v4008_v21, %s6166_s7  ;;  %v8414_v44 = vpop.permute.xlu1 %3798  ;;  %v4010_v21 = vmul.f32 %v7981_v16, %v3882_v53  ;;  %v8439_v41 = vpop.eup %5914  ;;  %v5072_v16 = vmul.f32 -1.442695, %v8032_v30  ;;  %v3280_v61 = vadd.f32 1.0, %v5913_v62  ;;  %5926 = vrcp.f32 %v3279_v12  ;;  %v9424_v12 = vld [vmem:[#allocation8_spill] sm:$0xff] }
 0x385   : > { %v8420_v59 = vpop.permute.xlu0 %3648  ;;  %v3884_v8 = vadd.f32 %v8439_v41, %v8396_v0  ;;  %v4011_v43 = vmul.f32 %v7996_v54, %v3883_v33  ;;  %v5917_v30 = vpop.eup %5916  ;;  %v9422_v54 = vld [vmem:[#allocation11_spill] sm:$0xff] }
 0x386   : > { %5928 = vpow2.f32 %v5072_v16  ;;  %v4204_v9 = vadd.f32 %v9422_v54, %v8396_v0  ;;  %v6086_v16 = vld [vmem:[%s6633_s18 + $0x40] sm:$0xff] }
 0x387   : > { %4078 = vrot.lane.b32.xlu1 %v4009_v40, %s6166_s7  ;;  %v4012_v47 = vmul.f32 %v7998_v24, %v3884_v8  ;;  %5930 = vrcp.f32 %v3280_v61  ;;  %v5074_v24 = vmul.f32 -1.442695, %v9424_v12  ;;  %v9426_v61 = vld [vmem:[#allocation5_spill] sm:$0xff] }
 0x388   : > { %4300 = vrot.lane.b32.xlu0 %v4232_v29, %s6169_s27  ;;  %v4203_v29 = vadd.f32 %v8050_v35, %v8377_v31  ;;  %v9423_v35 = vld [vmem:[#allocation10_spill] sm:$0xff]  ;;  %v4236_v56 = vmul.f32 %v6086_v16, %v4204_v9  ;;  %v9428_v9 = vld [vmem:[#allocation15_spill] sm:$0xff] }
 0x389   : > { %v3801_v25 = vpop.permute.xlu0 %3800  ;;  %v8453_v40 = vpop.eup %5918  ;;  %v5073_v31 = vmul.f32 -1.442695, %v9423_v35 }
 0x38a   : > { %v8436_v60 = vpop.permute.xlu1 %3650  ;;  %v3885_v18 = vadd.f32 %v8453_v40, %v8414_v44  ;;  %v5921_v23 = vpop.eup %5920 }
 0x38b   : > { %4302 = vrot.lane.b32.xlu1 %v4233_v46, %s6169_s27  ;;  %v3281_v46 = vadd.f32 1.0, %v5917_v30  ;;  %v8463_v62 = vpop.eup %5922  ;;  %v3282_v8 = vadd.f32 1.0, %v5921_v23  ;;  %5932 = vpow2.f32 %v5073_v31  ;;  %v9430_v23 = vld [vmem:[#allocation20_spill] sm:$0xff] }
 0x38c   : > { %4080 = vrot.lane.b32.xlu0 %v4010_v21, %s6166_s7  ;;  %v6085_v21 = vld [vmem:[%s6633_s18 + $0x38] sm:$0xff] }
 0x38d   : > { %v4235_v38 = vmul.f32 %v6085_v21, %v4203_v29  ;;  %v9427_v29 = vld [vmem:[#allocation14_spill] sm:$0xff]  ;;  %5934 = vrcp.f32 %v3281_v46  ;;  %v5075_v21 = vmul.f32 -1.442695, %v9428_v9 }
 0x38e   : > { %v4205_v30 = vadd.f32 %v9427_v29, %v8414_v44  ;;  %5936 = vpow2.f32 %v5074_v24  ;;  %v6087_v44 = vld [vmem:[%s6633_s18 + $0x48] sm:$0xff]  ;;  %v6088_v29 = vld [vmem:[%s6633_s18 + $0x50] sm:$0xff] }
 0x38f   : > { %4082 = vrot.lane.b32.xlu1 %v4011_v43, %s6166_s7  ;;  %v4013_v43 = vmul.f32 %v9426_v61, %v3885_v18  ;;  %v4206_v18 = vadd.f32 %v9430_v23, %v3801_v25  ;;  %5938 = vrcp.f32 %v3282_v8 }
 0x390   : > { %4304 = vrot.lane.b32.xlu0 %v4234_v34, %s6169_s27  ;;  %v3886_v34 = vadd.f32 %v8463_v62, %v3801_v25  ;;  %v4237_v46 = vmul.f32 %v6087_v44, %v4205_v30  ;;  %5940 = vpow2.f32 %v5075_v21  ;;  %v9434_v44 = vld [vmem:[#allocation24_spill] sm:$0xff] }
 0x391   : > { %v3803_v53 = vpop.permute.xlu1 %3802  ;;  %v4238_v25 = vmul.f32 %v6088_v29, %v4206_v18  ;;  %v9436_v18 = vld [vmem:[#allocation9_spill] sm:$0xff] }
 0x392   : > { %v8450_v28 = vpop.permute.xlu0 %3652 }
 0x393   : > { %9421 = vst [vmem:[#allocation43_spill] sm:$0xff] %v8450_v28  ;;  %4306 = vrot.lane.b32.xlu1 %v4235_v38, %s6169_s27  ;;  %v9429_v38 = vld [vmem:[#allocation7_spill] sm:$0xff] }
 0x394   : > { %4084 = vrot.lane.b32.xlu0 %v4012_v47, %s6166_s7  ;;  %v5925_v47 = vpop.eup %5924  ;;  %v4014_v31 = vmul.f32 %v9429_v38, %v3886_v34  ;;  %v9433_v38 = vld [vmem:[#allocation6_spill] sm:$0xff] }
 0x395   : > { %v8476_v35 = vpop.eup %5926 }
 0x396   : > { %v3805_v33 = vpop.permute.xlu0 %3804  ;;  %v3887_v16 = vadd.f32 %v8476_v35, %v3803_v53  ;;  %v5929_v24 = vpop.eup %5928 }
 0x397   : > { %4086 = vrot.lane.b32.xlu1 %v4013_v43, %s6166_s7  ;;  %v8486_v61 = vpop.eup %5930  ;;  %v9432_v43 = vld [vmem:[#allocation16_spill] sm:$0xff]  ;;  %v3284_v30 = vadd.f32 1.0, %v5929_v24 }
 0x398   : > { %v8467_v0 = vpop.permute.xlu1 %3654  ;;  %4308 = vrot.lane.b32.xlu0 %v4236_v56, %s6169_s27  ;;  %v3283_v56 = vadd.f32 1.0, %v5925_v47  ;;  %v5076_v34 = vmul.f32 -1.442695, %v9432_v43  ;;  %v3888_v9 = vadd.f32 %v8486_v61, %v3805_v33  ;;  %v4015_v23 = vmul.f32 %v9433_v38, %v3887_v16  ;;  %v9437_v43 = vld [vmem:[#allocation27_spill] sm:$0xff]  ;;  %v9438_v16 = vld [vmem:[#allocation18_spill] sm:$0xff]  ;;  %v6089_v38 = vld [vmem:[%s6633_s18 + $0x58] sm:$0xff] }
 0x399   : > { %9425 = vst [vmem:[#allocation44_spill] sm:$0xff] %v8467_v0  ;;  %v4207_v47 = vadd.f32 %v9434_v44, %v3803_v53  ;;  %v4208_v24 = vadd.f32 %v9437_v43, %v3805_v33  ;;  %v5077_v53 = vmul.f32 -1.442695, %v9438_v16  ;;  %v6090_v33 = vld [vmem:[%s6633_s18 + $0x60] sm:$0xff]  ;;  %v9441_v16 = vld [vmem:[#allocation12_spill] sm:$0xff] }
 0x39a   : > { %5942 = vrcp.f32 %v3283_v56  ;;  %v9440_v43 = vld [vmem:[#allocation21_spill] sm:$0xff] }
 0x39b   : > { %4310 = vrot.lane.b32.xlu1 %v4237_v46, %s6169_s27  ;;  %5944 = vpow2.f32 %v5076_v34  ;;  %v4016_v46 = vmul.f32 %v9436_v18, %v3888_v9  ;;  %v4239_v44 = vmul.f32 %v6089_v38, %v4207_v47  ;;  %v4240_v18 = vmul.f32 %v6090_v33, %v4208_v24  ;;  %v9445_v33 = vld [vmem:[#allocation30_spill] sm:$0xff] }
 0x39c   : > { %v3807_v54 = vpop.permute.xlu1 %3806  ;;  %v8481_v12 = vpop.permute.xlu0 %3656  ;;  %4088 = vrot.lane.b32.xlu0 %v4014_v31, %s6166_s7  ;;  %5946 = vrcp.f32 %v3284_v30  ;;  %v5078_v47 = vmul.f32 -1.442695, %v9440_v43 }
 0x39d   : > { %9431 = vst [vmem:[#allocation45_spill] sm:$0xff] %v8481_v12  ;;  %v5933_v31 = vpop.eup %5932  ;;  %5948 = vpow2.f32 %v5077_v53  ;;  %v9444_v53 = vld [vmem:[#allocation13_spill] sm:$0xff] }
 0x39e   : > { %v8498_v21 = vpop.eup %5934 }
 0x39f   : > { %4090 = vrot.lane.b32.xlu1 %v4015_v23, %s6166_s7  ;;  %v5937_v29 = vpop.eup %5936  ;;  %v3889_v56 = vadd.f32 %v8498_v21, %v3807_v54 }
 0x3a0   : > { %4312 = vrot.lane.b32.xlu0 %v4238_v25, %s6169_s27  ;;  %v8508_v34 = vpop.eup %5938  ;;  %v3286_v9 = vadd.f32 1.0, %v5937_v29 }
 0x3a1   : > { %v3809_v8 = vpop.permute.xlu0 %3808  ;;  %v4017_v38 = vmul.f32 %v9441_v16, %v3889_v56 }
 0x3a2   : > { %v8494_v12 = vpop.permute.xlu1 %3658  ;;  %v3890_v30 = vadd.f32 %v8508_v34, %v3809_v8  ;;  %v4210_v43 = vadd.f32 %v9445_v33, %v3809_v8  ;;  %v9449_v33 = vld [vmem:[#allocation33_spill] sm:$0xff] }
 0x3a3   : > { %9435 = vst [vmem:[#allocation46_spill] sm:$0xff] %v8494_v12  ;;  %v3285_v12 = vadd.f32 1.0, %v5933_v31  ;;  %4314 = vrot.lane.b32.xlu1 %v4239_v44, %s6169_s27  ;;  %v9442_v31 = vld [vmem:[#allocation29_spill] sm:$0xff] }
 0x3a4   : > { %4092 = vrot.lane.b32.xlu0 %v4016_v46, %s6166_s7  ;;  %v4209_v0 = vadd.f32 %v9442_v31, %v3807_v54  ;;  %v5941_v46 = vpop.eup %5940  ;;  %v4018_v44 = vmul.f32 %v9444_v53, %v3890_v30  ;;  %v6091_v54 = vld [vmem:[%s6633_s18 + $0x68] sm:$0xff] }
 0x3a5   : > { %5950 = vrcp.f32 %v3285_v12  ;;  %v8520_v24 = vpop.eup %5942  ;;  %v3287_v56 = vadd.f32 1.0, %v5941_v46  ;;  %v9446_v31 = vld [vmem:[#allocation26_spill] sm:$0xff]  ;;  %v9448_v46 = vld [vmem:[#allocation17_spill] sm:$0xff] }
 0x3a6   : > { %v3811_v25 = vpop.permute.xlu1 %3810  ;;  %v8506_v23 = vpop.permute.xlu0 %3660  ;;  %5952 = vrcp.f32 %v3286_v9  ;;  %v4241_v16 = vmul.f32 %v6091_v54, %v4209_v0  ;;  %v5079_v28 = vmul.f32 -1.442695, %v9446_v31 }
 0x3a7   : > { %9439 = vst [vmem:[#allocation60_spill] sm:$0xff] %v8506_v23  ;;  %4094 = vrot.lane.b32.xlu1 %v4017_v38, %s6166_s7  ;;  %5954 = vpow2.f32 %v5078_v47  ;;  %v3891_v12 = vadd.f32 %v8520_v24, %v3811_v25  ;;  %v4211_v54 = vadd.f32 %v9449_v33, %v3811_v25  ;;  %v9453_v33 = vld [vmem:[#allocation22_spill] sm:$0xff] }
 0x3a8   : > { %4316 = vrot.lane.b32.xlu0 %v4240_v18, %s6169_s27  ;;  %v5945_v18 = vpop.eup %5944  ;;  %5956 = vrcp.f32 %v3287_v56 }
 0x3a9   : > { %v8528_v38 = vpop.eup %5946  ;;  %v3288_v0 = vadd.f32 1.0, %v5945_v18  ;;  %v4019_v53 = vmul.f32 %v9448_v46, %v3891_v12  ;;  %5958 = vpow2.f32 %v5079_v28  ;;  %v6093_v12 = vld [vmem:[%s6633_s18 + $0x78] sm:$0xff] }
 0x3aa   : > { %v3813_v23 = vpop.permute.xlu0 %3812  ;;  %v8518_v29 = vpop.permute.xlu1 %3662  ;;  %v4243_v46 = vmul.f32 %v6093_v12, %v4211_v54 }
 0x3ab   : > { %9443 = vst [vmem:[#allocation61_spill] sm:$0xff] %v8518_v29  ;;  %4318 = vrot.lane.b32.xlu1 %v4241_v16, %s6169_s27  ;;  %v6092_v29 = vld [vmem:[%s6633_s18 + $0x70] sm:$0xff]  ;;  %v3892_v8 = vadd.f32 %v8528_v38, %v3813_v23  ;;  %v5080_v16 = vmul.f32 -1.442695, %v8123_v58  ;;  %5960 = vrcp.f32 %v3288_v0 }
 0x3ac   : > { %4096 = vrot.lane.b32.xlu0 %v4018_v44, %s6166_s7  ;;  %v4242_v30 = vmul.f32 %v6092_v29, %v4210_v43  ;;  %v5949_v44 = vpop.eup %5948  ;;  %v9450_v43 = vld [vmem:[#allocation19_spill] sm:$0xff] }
 0x3ad   : > { %v4020_v31 = vmul.f32 %v9450_v43, %v3892_v8  ;;  %v3289_v58 = vadd.f32 1.0, %v5949_v44  ;;  %5962 = vpow2.f32 %v5080_v16  ;;  %v5081_v8 = vmul.f32 -1.442695, %v8136_v5 }
 0x3ae   : > { %v3815_v9 = vpop.permute.xlu1 %3814 }
 0x3af   : > { %4098 = vrot.lane.b32.xlu1 %v4019_v53, %s6166_s7  ;;  %v8540_v29 = vpop.eup %5950  ;;  %v4213_v43 = vadd.f32 %v8194_v48, %v3815_v9  ;;  %5964 = vrcp.f32 %v3289_v58  ;;  %v5082_v48 = vmul.f32 -1.442695, %v8146_v51 }
 0x3b0   : > { %v8533_v47 = vpop.permute.xlu0 %3664  ;;  %4320 = vrot.lane.b32.xlu0 %v4242_v30, %s6169_s27  ;;  %v3893_v28 = vadd.f32 %v8540_v29, %v3815_v9  ;;  %v8548_v30 = vpop.eup %5952  ;;  %5966 = vpow2.f32 %v5081_v8  ;;  %v6095_v9 = vld [vmem:[%s6633_s18 + $0x88] sm:$0xff]  ;;  %v6096_v8 = vld [vmem:[%s6633_s18 + $0x90] sm:$0xff] }
 0x3b1   : > { %9447 = vst [vmem:[#allocation62_spill] sm:$0xff] %v8533_v47  ;;  %v9451_v47 = vld [vmem:[#allocation47_spill] sm:$0xff]  ;;  %v5955_v53 = vpop.eup %5954 }
 0x3b2   : > { %v4212_v56 = vadd.f32 %v9451_v47, %v3813_v23  ;;  %v6094_v23 = vld [vmem:[%s6633_s18 + $0x80] sm:$0xff]  ;;  %v4021_v54 = vmul.f32 %v9453_v33, %v3893_v28  ;;  %v3290_v44 = vadd.f32 1.0, %v5955_v53  ;;  %v8560_v16 = vpop.eup %5956  ;;  %v4245_v28 = vmul.f32 %v6095_v9, %v4213_v43  ;;  %v9456_v9 = vld [vmem:[#allocation28_spill] sm:$0xff] }
 0x3b3   : > { %4322 = vrot.lane.b32.xlu1 %v4243_v46, %s6169_s27  ;;  %v5959_v5 = vpop.eup %5958 }
 0x3b4   : > { %v3817_v18 = vpop.permute.xlu0 %3816  ;;  %v8546_v25 = vpop.permute.xlu1 %3666  ;;  %4100 = vrot.lane.b32.xlu0 %v4020_v31, %s6166_s7  ;;  %v4244_v47 = vmul.f32 %v6094_v23, %v4212_v56  ;;  %v9454_v31 = vld [vmem:[#allocation23_spill] sm:$0xff]  ;;  %5968 = vrcp.f32 %v3290_v44  ;;  %v5083_v44 = vmul.f32 -1.442695, %v8161_v37 }
 0x3b5   : > { %9452 = vst [vmem:[#allocation11_spill] sm:$0xff] %v8546_v25  ;;  %v3894_v0 = vadd.f32 %v8548_v30, %v3817_v18  ;;  %v4214_v46 = vadd.f32 %v8211_v4, %v3817_v18  ;;  %v8569_v23 = vpop.eup %5960  ;;  %5970 = vpow2.f32 %v5082_v48  ;;  %v9455_v18 = vld [vmem:[#allocation25_spill] sm:$0xff] }
 0x3b7   : > { %4102 = vrot.lane.b32.xlu1 %v4021_v54, %s6166_s7  ;;  %v4022_v56 = vmul.f32 %v9454_v31, %v3894_v0  ;;  %v4246_v0 = vmul.f32 %v6096_v8, %v4214_v46  ;;  %v5963_v51 = vpop.eup %5962  ;;  %v5085_v8 = vmul.f32 -1.442695, %v8183_v6  ;;  %v9458_v6 = vld [vmem:[#allocation32_spill] sm:$0xff] }
 0x3b8   : > { %v3819_v12 = vpop.permute.xlu1 %3818  ;;  %4324 = vrot.lane.b32.xlu0 %v4244_v47, %s6169_s27  ;;  %v3291_v47 = vadd.f32 1.0, %v5959_v5  ;;  %v5084_v5 = vmul.f32 -1.442695, %v8171_v11  ;;  %v3292_v46 = vadd.f32 1.0, %v5963_v51  ;;  %v9457_v51 = vld [vmem:[#allocation31_spill] sm:$0xff] }
 0x3b9   : > { %v8557_v25 = vpop.permute.xlu0 %3668  ;;  %v3895_v58 = vadd.f32 %v8560_v16, %v3819_v12  ;;  %v4215_v43 = vadd.f32 %v8222_v57, %v3819_v12  ;;  %v6097_v57 = vld [vmem:[%s6633_s18 + $0x98] sm:$0xff] }
 0x3ba   : > { %5972 = vrcp.f32 %v3291_v47 }
 0x3bb   : > { %4326 = vrot.lane.b32.xlu1 %v4245_v28, %s6169_s27  ;;  %v4023_v54 = vmul.f32 %v9455_v18, %v3895_v58  ;;  %v4247_v37 = vmul.f32 %v6097_v57, %v4215_v43  ;;  %5974 = vpow2.f32 %v5083_v44 }
 0x3bc   : > { %4104 = vrot.lane.b32.xlu0 %v4022_v56, %s6166_s7  ;;  %v8582_v56 = vpop.eup %5964  ;;  %5976 = vpow2.f32 %v5084_v5 }
 0x3bd   : > { %v3821_v53 = vpop.permute.xlu0 %3820  ;;  %v8571_v33 = vpop.permute.xlu1 %3670  ;;  %5978 = vrcp.f32 %v3292_v46 }
 0x3be   : > { %v3896_v4 = vadd.f32 %v8569_v23, %v3821_v53  ;;  %v4216_v28 = vadd.f32 %v8234_v42, %v3821_v53  ;;  %v5967_v47 = vpop.eup %5966  ;;  %5980 = vpow2.f32 %v5085_v8 }
 0x3bf   : > { %4106 = vrot.lane.b32.xlu1 %v4023_v54, %s6166_s7  ;;  %v8592_v11 = vpop.eup %5968 }
 0x3c0   : > { %4328 = vrot.lane.b32.xlu0 %v4246_v0, %s6169_s27  ;;  %v4024_v48 = vmul.f32 %v9456_v9, %v3896_v4  ;;  %v6098_v0 = vld [vmem:[%s6633_s18 + $0xa0] sm:$0xff]  ;;  %v3293_v4 = vadd.f32 1.0, %v5967_v47  ;;  %v5971_v5 = vpop.eup %5970 }
 0x3c1   : > { %v3823_v31 = vpop.permute.xlu1 %3822  ;;  %v4248_v42 = vmul.f32 %v6098_v0, %v4216_v28  ;;  %v6100_v0 = vld [vmem:[%s6633_s18 + $0xb0] sm:$0xff] }
 0x3c2   : > { %v8586_v58 = vpop.permute.xlu0 %3672  ;;  %v3897_v12 = vadd.f32 %v8582_v56, %v3823_v31  ;;  %v4217_v54 = vadd.f32 %v8246_v19, %v3823_v31  ;;  %5982 = vrcp.f32 %v3293_v4  ;;  %v5086_v19 = vmul.f32 -1.442695, %v8192_v2  ;;  %v6099_v31 = vld [vmem:[%s6633_s18 + $0xa8] sm:$0xff] }
 0x3c3   : > { %4330 = vrot.lane.b32.xlu1 %v4247_v37, %s6169_s27  ;;  %v3294_v37 = vadd.f32 1.0, %v5971_v5 }
 0x3c4   : > { %4108 = vrot.lane.b32.xlu0 %v4024_v48, %s6166_s7  ;;  %v4025_v18 = vmul.f32 %v9457_v51, %v3897_v12  ;;  %v8605_v48 = vpop.eup %5972  ;;  %v4249_v28 = vmul.f32 %v6099_v31, %v4217_v54  ;;  %5984 = vpow2.f32 %v5086_v19 }
 0x3c5   : > { %v5975_v8 = vpop.eup %5974  ;;  %5986 = vrcp.f32 %v3294_v37 }
 0x3c6   : > { %v3825_v53 = vpop.permute.xlu0 %3824  ;;  %v8598_v43 = vpop.permute.xlu1 %3674 }
 0x3c7   : > { %v3898_v44 = vadd.f32 %v8592_v11, %v3825_v53  ;;  %4110 = vrot.lane.b32.xlu1 %v4025_v18, %s6166_s7  ;;  %v4218_v9 = vadd.f32 %v8259_v36, %v3825_v53  ;;  %v9459_v53 = vld [vmem:[#allocation35_spill] sm:$0xff]  ;;  %v5087_v18 = vmul.f32 -1.442695, %v8206_v26 }
 0x3c8   : > { %4332 = vrot.lane.b32.xlu0 %v4248_v42, %s6169_s27  ;;  %v5977_v42 = vpop.eup %5976 }
 0x3c9   : > { %v4026_v46 = vmul.f32 %v9458_v6, %v3898_v44  ;;  %v4250_v36 = vmul.f32 %v6100_v0, %v4218_v9  ;;  %v8617_v51 = vpop.eup %5978  ;;  %v3295_v44 = vadd.f32 1.0, %v5975_v8  ;;  %v6101_v9 = vld [vmem:[%s6633_s18 + $0xb8] sm:$0xff]  ;;  %5988 = vpow2.f32 %v5087_v18 }
 0x3ca   : > { %v3827_v57 = vpop.permute.xlu1 %3826  ;;  %v8610_v47 = vpop.permute.xlu0 %3676 }
 0x3cb   : > { %v3899_v12 = vadd.f32 %v8605_v48, %v3827_v57  ;;  %4334 = vrot.lane.b32.xlu1 %v4249_v28, %s6169_s27  ;;  %v4219_v4 = vadd.f32 %v8271_v14, %v3827_v57  ;;  %v9461_v14 = vld [vmem:[#allocation48_spill] sm:$0xff]  ;;  %v5981_v57 = vpop.eup %5980  ;;  %5990 = vrcp.f32 %v3295_v44 }
 0x3cc   : > { %4112 = vrot.lane.b32.xlu0 %v4026_v46, %s6166_s7  ;;  %v3296_v46 = vadd.f32 1.0, %v5977_v42  ;;  %v8628_v26 = vpop.eup %5982  ;;  %v3297_v0 = vadd.f32 1.0, %v5981_v57 }
 0x3cd   : > { %v4027_v2 = vmul.f32 %v9459_v53, %v3899_v12  ;;  %v4251_v19 = vmul.f32 %v6101_v9, %v4219_v4  ;;  %v6103_v9 = vld [vmem:[%s6633_s18 + $0xc8] sm:$0xff] }
 0x3ce   : > { %v3829_v54 = vpop.permute.xlu0 %3828  ;;  %v8621_v5 = vpop.permute.xlu1 %3678  ;;  %5992 = vrcp.f32 %v3296_v46 }
 0x3cf   : > { %9460 = vst [vmem:[#allocation10_spill] sm:$0xff] %v8621_v5  ;;  %v3900_v6 = vadd.f32 %v8617_v51, %v3829_v54  ;;  %4114 = vrot.lane.b32.xlu1 %v4027_v2, %s6166_s7  ;;  %v4220_v28 = vadd.f32 %v8282_v45, %v3829_v54  ;;  %v9463_v45 = vld [vmem:[#allocation49_spill] sm:$0xff]  ;;  %v5985_v4 = vpop.eup %5984  ;;  %5994 = vrcp.f32 %v3297_v0 }
 0x3d0   : > { %4336 = vrot.lane.b32.xlu0 %v4250_v36, %s6169_s27  ;;  %v6102_v36 = vld [vmem:[%s6633_s18 + $0xc0] sm:$0xff]  ;;  %v8639_v18 = vpop.eup %5986  ;;  %v3298_v46 = vadd.f32 1.0, %v5985_v4 }
 0x3d1   : > { %v4028_v31 = vmul.f32 %v9461_v14, %v3900_v6  ;;  %v4252_v42 = vmul.f32 %v6102_v36, %v4220_v28  ;;  %v9465_v14 = vld [vmem:[#allocation50_spill] sm:$0xff] }
 0x3d2   : > { %5996 = vrcp.f32 %v3298_v46 }
 0x3d3   : > { %v3831_v37 = vpop.permute.xlu1 %3830  ;;  %4338 = vrot.lane.b32.xlu1 %v4251_v19, %s6169_s27  ;;  %v5989_v57 = vpop.eup %5988 }
 0x3d4   : > { %4116 = vrot.lane.b32.xlu0 %v4028_v31, %s6166_s7  ;;  %v3901_v12 = vadd.f32 %v8628_v26, %v3831_v37  ;;  %v8633_v8 = vpop.permute.xlu0 %3680  ;;  %v4221_v2 = vadd.f32 %v8293_v63, %v3831_v37  ;;  %v9466_v63 = vld [vmem:[#allocation40_spill] sm:$0xff] }
 0x3d5   : > { %9462 = vst [vmem:[#allocation8_spill] sm:$0xff] %v8633_v8 }
 0x3d6   : > { %v4029_v53 = vmul.f32 %v9463_v45, %v3901_v12  ;;  %v4253_v19 = vmul.f32 %v6103_v9, %v4221_v2  ;;  %v8649_v12 = vpop.eup %5990  ;;  %v3299_v45 = vadd.f32 1.0, %v5989_v57  ;;  %v6105_v57 = vld [vmem:[%s6633_s18 + $0xd8] sm:$0xff] }
 0x3d8   : > { %4340 = vrot.lane.b32.xlu0 %v4252_v42, %s6169_s27  ;;  %v3833_v54 = vpop.permute.xlu0 %3832  ;;  %4118 = vrot.lane.b32.xlu1 %v4029_v53, %s6166_s7  ;;  %v8652_v0 = vpop.eup %5992  ;;  %v6104_v53 = vld [vmem:[%s6633_s18 + $0xd0] sm:$0xff]  ;;  %5998 = vrcp.f32 %v3299_v45 }
 0x3d9   : > { %v8642_v44 = vpop.permute.xlu1 %3682  ;;  %v3902_v6 = vadd.f32 %v8639_v18, %v3833_v54  ;;  %v4222_v28 = vadd.f32 %v9466_v63, %v3833_v54  ;;  %v9467_v54 = vld [vmem:[#allocation51_spill] sm:$0xff]  ;;  %v8661_v46 = vpop.eup %5994 }
 0x3da   : > { %9464 = vst [vmem:[#allocation5_spill] sm:$0xff] %v8642_v44  ;;  %9468 = vst [vmem:[#allocation14_spill] sm:$0xff] %v8661_v46  ;;  %v6106_v44 = vld [vmem:[%s6633_s18 + $0xe0] sm:$0xff] }
 0x3db   : > { %v4030_v31 = vmul.f32 %v9465_v14, %v3902_v6  ;;  %v4254_v2 = vmul.f32 %v6104_v53, %v4222_v28 }
 0x3dc   : > { %v3837_v37 = vpop.permute.xlu0 %3836  ;;  %4342 = vrot.lane.b32.xlu1 %v4253_v19, %s6169_s27  ;;  %v8672_v8 = vpop.eup %5996 }
 0x3dd   : > { %v3835_v36 = vpop.permute.xlu1 %3834  ;;  %4120 = vrot.lane.b32.xlu0 %v4030_v31, %s6166_s7  ;;  %v3904_v4 = vadd.f32 %v8652_v0, %v3837_v37  ;;  %v9469_v31 = vld [vmem:[#allocation52_spill] sm:$0xff]  ;;  %v4224_v28 = vadd.f32 %v8316_v17, %v3837_v37 }
 0x3de   : > { %v3903_v42 = vadd.f32 %v8649_v12, %v3835_v36  ;;  %v4223_v9 = vadd.f32 %v8322_v13, %v3835_v36  ;;  %v9470_v36 = vld [vmem:[#allocation56_spill] sm:$0xff] }
 0x3df   : > { %v4032_v63 = vmul.f32 %v9469_v31, %v3904_v4  ;;  %v4256_v45 = vmul.f32 %v6106_v44, %v4224_v28  ;;  %v9472_v4 = vld [vmem:[#allocation53_spill] sm:$0xff]  ;;  %v6107_v44 = vld [vmem:[%s6633_s18 + $0xe8] sm:$0xff] }
 0x3e0   : > { %v4031_v6 = vmul.f32 %v9467_v54, %v3903_v42  ;;  %v4255_v53 = vmul.f32 %v6105_v57, %v4223_v9 }
 0x3e1   : > { %v3839_v14 = vpop.permute.xlu1 %3838  ;;  %4344 = vrot.lane.b32.xlu0 %v4254_v2, %s6169_s27  ;;  %v9471_v2 = vld [vmem:[#allocation38_spill] sm:$0xff] }
 0x3e2   : > { %v4069_v19 = vpop.permute.xlu0 %4068  ;;  %4122 = vrot.lane.b32.xlu1 %v4031_v6, %s6166_s7  ;;  %v3905_v42 = vadd.f32 %v8661_v46, %v3839_v14  ;;  %v3716_v6 = vmul.f32 %v9471_v2, %v9470_v36  ;;  %v4225_v37 = vadd.f32 %v8336_v15, %v3839_v14  ;;  %v9473_v46 = vld [vmem:[#allocation58_spill] sm:$0xff]  ;;  %v8682_v5 = vpop.eup %5998 }
 0x3e3   : > { %v3717_v36 = vmul.f32 %v8319_v55, %v9473_v46 }
 0x3e4   : > { %v4033_v17 = vmul.f32 %v9472_v4, %v3905_v42  ;;  %v4164_v31 = vadd.f32 %v4069_v19, %v3716_v6  ;;  %v4257_v28 = vmul.f32 %v6107_v44, %v4225_v37  ;;  %v9474_v42 = vld [vmem:[#allocation54_spill] sm:$0xff] }
 0x3e5   : > { %4124 = vrot.lane.b32.xlu0 %v4032_v63, %s6166_s7  ;;  %v4071_v13 = vpop.permute.xlu1 %4070 }
 0x3e6   : > { %v4293_v54 = vpop.permute.xlu0 %4292  ;;  %4346 = vrot.lane.b32.xlu1 %v4255_v53, %s6169_s27  ;;  %v4165_v14 = vadd.f32 %v4071_v13, %v3717_v36  ;;  %v6108_v13 = vld [vmem:[%s6633_s18 + $0xf0] sm:$0xff] }
 0x3e7   : > { %v4388_v53 = vadd.f32 %v4293_v54, %v4164_v31  ;;  %v9476_v31 = vld [vmem:[#allocation55_spill] sm:$0xff] }
 0x3e9   : > { %4348 = vrot.lane.b32.xlu0 %v4256_v45, %s6169_s27  ;;  %v4295_v63 = vpop.permute.xlu1 %4294  ;;  %6000 = vtanh.f32 %v4388_v53 }
 0x3ea   : > { %v3841_v9 = vpop.permute.xlu0 %3840  ;;  %4126 = vrot.lane.b32.xlu1 %v4033_v17, %s6166_s7  ;;  %v4389_v45 = vadd.f32 %v4295_v63, %v4165_v14  ;;  %v9475_v17 = vld [vmem:[#allocation57_spill] sm:$0xff] }
 0x3eb   : > { %v3906_v57 = vadd.f32 %v8672_v8, %v3841_v9  ;;  %v4226_v54 = vadd.f32 %v8359_v27, %v3841_v9  ;;  %v3718_v37 = vmul.f32 %v8353_v32, %v9475_v17 }
 0x3ec   : > { %6002 = vtanh.f32 %v4389_v45 }
 0x3ed   : > { %v4034_v15 = vmul.f32 %v9474_v42, %v3906_v57  ;;  %4772 = vrot.lane.b32.xlu0 %v4388_v53, %s6166_s7  ;;  %v3843_v19 = vpop.permute.xlu1 %3842  ;;  %v4258_v36 = vmul.f32 %v6108_v13, %v4226_v54  ;;  %v9477_v42 = vld [vmem:[#allocation34_spill] sm:$0xff]  ;;  %v6109_v53 = vld [vmem:[%s6633_s18 + $0xf8] sm:$0xff] }
 0x3ee   : > { %v4073_v2 = vpop.permute.xlu0 %4072  ;;  %4350 = vrot.lane.b32.xlu1 %v4257_v28, %s6169_s27  ;;  %v3907_v6 = vadd.f32 %v8682_v5, %v3843_v19  ;;  %v4227_v44 = vadd.f32 %v8379_v52, %v3843_v19  ;;  %v9478_v52 = vld [vmem:[#allocation59_spill] sm:$0xff] }
 0x3ef   : > { %v4166_v28 = vadd.f32 %v4073_v2, %v3718_v37  ;;  %v3720_v2 = vmul.f32 %v8384_v3, %v9478_v52 }
 0x3f0   : > { %v4035_v57 = vmul.f32 %v9476_v31, %v3907_v6  ;;  %v4259_v14 = vmul.f32 %v6109_v53, %v4227_v44 }
 0x3f1   : > { %4128 = vrot.lane.b32.xlu0 %v4034_v15, %s6166_s7  ;;  %v4075_v4 = vpop.permute.xlu1 %4074  ;;  %v3719_v15 = vmul.f32 %v8369_v49, %v9477_v42 }
 0x3f2   : > { %v4297_v46 = vpop.permute.xlu0 %4296  ;;  %4774 = vrot.lane.b32.xlu1 %v4389_v45, %s6166_s7 }
 0x3f3   : > { %v4390_v63 = vadd.f32 %v4297_v46, %v4166_v28  ;;  %v4167_v17 = vadd.f32 %v4075_v4, %v3719_v15  ;;  %v6001_v46 = vpop.eup %6000  ;;  %v9479_v4 = vld [vmem:[#allocation36_spill] sm:$0xff] }
 0x3f4   : > { %v3721_v13 = vmul.f32 %v8401_v1, %v9479_v4 }
 0x3f5   : > { %4352 = vrot.lane.b32.xlu0 %v4258_v36, %s6169_s27  ;;  %v4299_v9 = vpop.permute.xlu1 %4298  ;;  %6004 = vtanh.f32 %v4390_v63 }
 0x3f6   : > { %v4077_v27 = vpop.permute.xlu0 %4076  ;;  %4130 = vrot.lane.b32.xlu1 %v4035_v57, %s6166_s7  ;;  %v4391_v19 = vadd.f32 %v4299_v9, %v4167_v17  ;;  %v6003_v44 = vpop.eup %6002  ;;  %v9480_v9 = vld [vmem:[#allocation37_spill] sm:$0xff] }
 0x3f7   : > { %v4168_v37 = vadd.f32 %v4077_v27, %v3720_v2  ;;  %v3722_v27 = vmul.f32 %v8411_v20, %v9480_v9 }
 0x3f8   : > { %6006 = vtanh.f32 %v4391_v19 }
 0x3f9   : > { %4776 = vrot.lane.b32.xlu0 %v4390_v63, %s6166_s7  ;;  %v4079_v54 = vpop.permute.xlu1 %4078 }
 0x3fa   : > { %v4301_v6 = vpop.permute.xlu0 %4300  ;;  %4354 = vrot.lane.b32.xlu1 %v4259_v14, %s6169_s27  ;;  %v4169_v28 = vadd.f32 %v4079_v54, %v3721_v13  ;;  %v9481_v54 = vld [vmem:[#allocation39_spill] sm:$0xff] }
 0x3fb   : > { %v4392_v57 = vadd.f32 %v4301_v6, %v4168_v37  ;;  %v3723_v52 = vmul.f32 %v8427_v10, %v9481_v54 }
 0x3fd   : > { %4484 = vrot.lane.b32.xlu0 %v6001_v46, %s6166_s7  ;;  %v4303_v45 = vpop.permute.xlu1 %4302  ;;  %6008 = vtanh.f32 %v4392_v57 }
 0x3fe   : > { %v4081_v31 = vpop.permute.xlu0 %4080  ;;  %4778 = vrot.lane.b32.xlu1 %v4391_v19, %s6166_s7  ;;  %v4393_v42 = vadd.f32 %v4303_v45, %v4169_v28  ;;  %v9482_v45 = vld [vmem:[#allocation41_spill] sm:$0xff] }
 0x3ff   : > { %v6005_v15 = vpop.eup %6004  ;;  %v4170_v53 = vadd.f32 %v4081_v31, %v3722_v27  ;;  %v3724_v31 = vmul.f32 %v8439_v41, %v9482_v45 }
 0x400   : > { %6010 = vtanh.f32 %v4393_v42 }
 0x401   : > { %4780 = vrot.lane.b32.xlu0 %v4392_v57, %s6166_s7  ;;  %v4083_v63 = vpop.permute.xlu1 %4082 }
 0x402   : > { %v4305_v36 = vpop.permute.xlu0 %4304  ;;  %4486 = vrot.lane.b32.xlu1 %v6003_v44, %s6166_s7  ;;  %v6007_v19 = vpop.eup %6006  ;;  %v4171_v46 = vadd.f32 %v4083_v63, %v3723_v52  ;;  %v9483_v63 = vld [vmem:[#allocation42_spill] sm:$0xff] }
 0x403   : > { %v4394_v17 = vadd.f32 %v4305_v36, %v4170_v53  ;;  %v3725_v9 = vmul.f32 %v8453_v40, %v9483_v63  ;;  %v3729_v63 = vmul.f32 %v8498_v21, %v8399_v22 }
 0x405   : > { %4488 = vrot.lane.b32.xlu0 %v6005_v15, %s6166_s7  ;;  %v4307_v6 = vpop.permute.xlu1 %4306  ;;  %6012 = vtanh.f32 %v4394_v17 }
 0x406   : > { %v4085_v14 = vpop.permute.xlu0 %4084  ;;  %4782 = vrot.lane.b32.xlu1 %v4393_v42, %s6166_s7  ;;  %v4395_v57 = vadd.f32 %v4307_v6, %v4171_v46  ;;  %v3727_v46 = vmul.f32 %v8476_v35, %v8362_v39 }
 0x407   : > { %v6009_v4 = vpop.eup %6008  ;;  %v4172_v13 = vadd.f32 %v4085_v14, %v3724_v31  ;;  %v3726_v14 = vmul.f32 %v8463_v62, %v8350_v7 }
 0x408   : > { %6014 = vtanh.f32 %v4395_v57 }
 0x409   : > { %4784 = vrot.lane.b32.xlu0 %v4394_v17, %s6166_s7  ;;  %v4087_v37 = vpop.permute.xlu1 %4086 }
 0x40a   : > { %v4309_v2 = vpop.permute.xlu0 %4308  ;;  %4490 = vrot.lane.b32.xlu1 %v6007_v19, %s6166_s7  ;;  %v6011_v42 = vpop.eup %6010  ;;  %v4173_v15 = vadd.f32 %v4087_v37, %v3725_v9 }
 0x40b   : > { %v4396_v28 = vadd.f32 %v4309_v2, %v4172_v13 }
 0x40d   : > { %4492 = vrot.lane.b32.xlu0 %v6009_v4, %s6166_s7  ;;  %v4311_v44 = vpop.permute.xlu1 %4310  ;;  %6016 = vtanh.f32 %v4396_v28 }
 0x40e   : > { %v4089_v36 = vpop.permute.xlu0 %4088  ;;  %4786 = vrot.lane.b32.xlu1 %v4395_v57, %s6166_s7  ;;  %v4397_v6 = vadd.f32 %v4311_v44, %v4173_v15  ;;  %v3728_v57 = vmul.f32 %v8486_v61, %v8382_v50  ;;  %v3730_v15 = vmul.f32 %v8508_v34, %v8420_v59 }
 0x40f   : > { %v6013_v17 = vpop.eup %6012  ;;  %v4174_v54 = vadd.f32 %v4089_v36, %v3726_v14 }
 0x410   : > { %6018 = vtanh.f32 %v4397_v6 }
 0x411   : > { %4788 = vrot.lane.b32.xlu0 %v4396_v28, %s6166_s7  ;;  %v4091_v53 = vpop.permute.xlu1 %4090 }
 0x412   : > { %v4313_v27 = vpop.permute.xlu0 %4312  ;;  %4494 = vrot.lane.b32.xlu1 %v6011_v42, %s6166_s7  ;;  %v6015_v45 = vpop.eup %6014  ;;  %v4175_v7 = vadd.f32 %v4091_v53, %v3727_v46 }
 0x413   : > { %v4398_v19 = vadd.f32 %v4313_v27, %v4174_v54 }
 0x415   : > { %4496 = vrot.lane.b32.xlu0 %v6013_v17, %s6166_s7  ;;  %v4315_v2 = vpop.permute.xlu1 %4314  ;;  %6020 = vtanh.f32 %v4398_v19 }
 0x416   : > { %v4093_v52 = vpop.permute.xlu0 %4092  ;;  %4790 = vrot.lane.b32.xlu1 %v4397_v6, %s6166_s7  ;;  %v4399_v4 = vadd.f32 %v4315_v2, %v4175_v7 }
 0x417   : > { %v6017_v13 = vpop.eup %6016  ;;  %v4176_v36 = vadd.f32 %v4093_v52, %v3728_v57  ;;  %v3731_v52 = vmul.f32 %v8520_v24, %v8436_v60 }
 0x418   : > { %6022 = vtanh.f32 %v4399_v4 }
 0x419   : > { %4792 = vrot.lane.b32.xlu0 %v4398_v19, %s6166_s7  ;;  %v4095_v31 = vpop.permute.xlu1 %4094 }
 0x41a   : > { %v4317_v37 = vpop.permute.xlu0 %4316  ;;  %4498 = vrot.lane.b32.xlu1 %v6015_v45, %s6166_s7  ;;  %v6019_v27 = vpop.eup %6018  ;;  %v4177_v50 = vadd.f32 %v4095_v31, %v3729_v63 }
 0x41b   : > { %v4400_v28 = vadd.f32 %v4317_v37, %v4176_v36  ;;  %v9484_v37 = vld [vmem:[#allocation43_spill] sm:$0xff]  ;;  %v9485_v36 = vld [vmem:[#allocation44_spill] sm:$0xff] }
 0x41c   : > { %v3732_v45 = vmul.f32 %v8528_v38, %v9484_v37 }
 0x41d   : > { %4500 = vrot.lane.b32.xlu0 %v6017_v13, %s6166_s7  ;;  %v4319_v39 = vpop.permute.xlu1 %4318  ;;  %6024 = vtanh.f32 %v4400_v28 }
 0x41e   : > { %v4097_v44 = vpop.permute.xlu0 %4096  ;;  %4794 = vrot.lane.b32.xlu1 %v4399_v4, %s6166_s7  ;;  %v4401_v53 = vadd.f32 %v4319_v39, %v4177_v50 }
 0x41f   : > { %v6021_v14 = vpop.eup %6020  ;;  %v4178_v6 = vadd.f32 %v4097_v44, %v3730_v15  ;;  %v3733_v44 = vmul.f32 %v8540_v29, %v9485_v36 }
 0x420   : > { %6026 = vtanh.f32 %v4401_v53 }
 0x421   : > { %4796 = vrot.lane.b32.xlu0 %v4400_v28, %s6166_s7  ;;  %v4099_v42 = vpop.permute.xlu1 %4098 }
 0x422   : > { %v4321_v9 = vpop.permute.xlu0 %4320  ;;  %4502 = vrot.lane.b32.xlu1 %v6019_v27, %s6166_s7  ;;  %v6023_v19 = vpop.eup %6022  ;;  %v4179_v59 = vadd.f32 %v4099_v42, %v3731_v52  ;;  %v9486_v27 = vld [vmem:[#allocation45_spill] sm:$0xff] }
 0x423   : > { %v4402_v54 = vadd.f32 %v4321_v9, %v4178_v6  ;;  %v3734_v50 = vmul.f32 %v8548_v30, %v9486_v27 }
 0x425   : > { %4504 = vrot.lane.b32.xlu0 %v6021_v14, %s6166_s7  ;;  %v4323_v22 = vpop.permute.xlu1 %4322  ;;  %6028 = vtanh.f32 %v4402_v54 }
 0x426   : > { %v4101_v17 = vpop.permute.xlu0 %4100  ;;  %4798 = vrot.lane.b32.xlu1 %v4401_v53, %s6166_s7  ;;  %v4403_v7 = vadd.f32 %v4323_v22, %v4179_v59  ;;  %v9487_v22 = vld [vmem:[#allocation46_spill] sm:$0xff] }
 0x427   : > { %v6025_v31 = vpop.eup %6024  ;;  %v4180_v57 = vadd.f32 %v4101_v17, %v3732_v45 }
 0x428   : > { %6030 = vtanh.f32 %v4403_v7 }
 0x429   : > { %4800 = vrot.lane.b32.xlu0 %v4402_v54, %s6166_s7  ;;  %v4103_v46 = vpop.permute.xlu1 %4102  ;;  %v3735_v54 = vmul.f32 %v8560_v16, %v9487_v22 }
 0x42a   : > { %v4325_v2 = vpop.permute.xlu0 %4324  ;;  %4506 = vrot.lane.b32.xlu1 %v6023_v19, %s6166_s7  ;;  %v6027_v28 = vpop.eup %6026  ;;  %v4181_v63 = vadd.f32 %v4103_v46, %v3733_v44  ;;  %v9488_v46 = vld [vmem:[#allocation60_spill] sm:$0xff] }
 0x42b   : > { %v4404_v13 = vadd.f32 %v4325_v2, %v4180_v57  ;;  %v3736_v37 = vmul.f32 %v8569_v23, %v9488_v46 }
 0x42d   : > { %4508 = vrot.lane.b32.xlu0 %v6025_v31, %s6166_s7  ;;  %v4327_v60 = vpop.permute.xlu1 %4326  ;;  %6032 = vtanh.f32 %v4404_v13 }
 0x42e   : > { %v4105_v4 = vpop.permute.xlu0 %4104  ;;  %4802 = vrot.lane.b32.xlu1 %v4403_v7, %s6166_s7  ;;  %v4405_v42 = vadd.f32 %v4327_v60, %v4181_v63 }
 0x42f   : > { %v6029_v15 = vpop.eup %6028  ;;  %v4182_v53 = vadd.f32 %v4105_v4, %v3734_v50 }
 0x430   : > { %6034 = vtanh.f32 %v4405_v42 }
 0x431   : > { %4804 = vrot.lane.b32.xlu0 %v4404_v13, %s6166_s7  ;;  %v4107_v9 = vpop.permute.xlu1 %4106  ;;  %v9489_v13 = vld [vmem:[#allocation61_spill] sm:$0xff] }
 0x432   : > { %v4329_v39 = vpop.permute.xlu0 %4328  ;;  %4510 = vrot.lane.b32.xlu1 %v6027_v28, %s6166_s7  ;;  %v6031_v2 = vpop.eup %6030  ;;  %v4183_v19 = vadd.f32 %v4107_v9, %v3735_v54  ;;  %v3737_v36 = vmul.f32 %v8582_v56, %v9489_v13  ;;  %v9490_v9 = vld [vmem:[#allocation62_spill] sm:$0xff]  ;;  %v3742_v13 = vmul.f32 %v8639_v18, %v8586_v58  ;;  %v3744_v58 = vmul.f32 %v8652_v0, %v8610_v47 }
 0x433   : > { %v4406_v17 = vadd.f32 %v4329_v39, %v4182_v53  ;;  %v3738_v27 = vmul.f32 %v8592_v11, %v9490_v9  ;;  %v3743_v9 = vmul.f32 %v8649_v12, %v8598_v43  ;;  %v9492_v43 = vld [vmem:[#allocation10_spill] sm:$0xff] }
 0x435   : > { %4512 = vrot.lane.b32.xlu0 %v6029_v15, %s6166_s7  ;;  %v4331_v6 = vpop.permute.xlu1 %4330  ;;  %6036 = vtanh.f32 %v4406_v17 }
 0x436   : > { %v4109_v14 = vpop.permute.xlu0 %4108  ;;  %4806 = vrot.lane.b32.xlu1 %v4405_v42, %s6166_s7  ;;  %v4407_v45 = vadd.f32 %v4331_v6, %v4183_v19  ;;  %v3740_v19 = vmul.f32 %v8617_v51, %v8557_v25 }
 0x437   : > { %v6033_v7 = vpop.eup %6032  ;;  %v4184_v31 = vadd.f32 %v4109_v14, %v3736_v37 }
 0x438   : > { %6038 = vtanh.f32 %v4407_v45 }
 0x439   : > { %4808 = vrot.lane.b32.xlu0 %v4406_v17, %s6166_s7  ;;  %v4111_v59 = vpop.permute.xlu1 %4110  ;;  %v9491_v17 = vld [vmem:[#allocation11_spill] sm:$0xff] }
 0x43a   : > { %v4333_v52 = vpop.permute.xlu0 %4332  ;;  %4514 = vrot.lane.b32.xlu1 %v6031_v2, %s6166_s7  ;;  %v6035_v39 = vpop.eup %6034  ;;  %v4185_v28 = vadd.f32 %v4111_v59, %v3737_v36  ;;  %v3739_v22 = vmul.f32 %v8605_v48, %v9491_v17 }
 0x43b   : > { %v4408_v60 = vadd.f32 %v4333_v52, %v4184_v31 }
 0x43d   : > { %4516 = vrot.lane.b32.xlu0 %v6033_v7, %s6166_s7  ;;  %v4335_v4 = vpop.permute.xlu1 %4334  ;;  %6040 = vtanh.f32 %v4408_v60 }
 0x43e   : > { %v4113_v57 = vpop.permute.xlu0 %4112  ;;  %4810 = vrot.lane.b32.xlu1 %v4407_v45, %s6166_s7  ;;  %v4409_v50 = vadd.f32 %v4335_v4, %v4185_v28 }
 0x43f   : > { %v6037_v42 = vpop.eup %6036  ;;  %v4186_v15 = vadd.f32 %v4113_v57, %v3738_v27  ;;  %v3741_v57 = vmul.f32 %v8628_v26, %v8571_v33 }
 0x440   : > { %6042 = vtanh.f32 %v4409_v50 }
 0x441   : > { %4812 = vrot.lane.b32.xlu0 %v4408_v60, %s6166_s7  ;;  %v4115_v63 = vpop.permute.xlu1 %4114 }
 0x442   : > { %v4337_v44 = vpop.permute.xlu0 %4336  ;;  %4518 = vrot.lane.b32.xlu1 %v6035_v39, %s6166_s7  ;;  %v6039_v54 = vpop.eup %6038  ;;  %v4187_v52 = vadd.f32 %v4115_v63, %v3739_v22 }
 0x443   : > { %v4410_v6 = vadd.f32 %v4337_v44, %v4186_v15 }
 0x445   : > { %4520 = vrot.lane.b32.xlu0 %v6037_v42, %s6166_s7  ;;  %v4339_v53 = vpop.permute.xlu1 %4338  ;;  %6044 = vtanh.f32 %v4410_v6 }
 0x446   : > { %v4117_v14 = vpop.permute.xlu0 %4116  ;;  %4814 = vrot.lane.b32.xlu1 %v4409_v50, %s6166_s7  ;;  %v4411_v46 = vadd.f32 %v4339_v53, %v4187_v52  ;;  %v9493_v52 = vld [vmem:[#allocation14_spill] sm:$0xff] }
 0x447   : > { %v6041_v37 = vpop.eup %6040  ;;  %v4188_v45 = vadd.f32 %v4117_v14, %v3740_v19 }
 0x448   : > { %6046 = vtanh.f32 %v4411_v46 }
 0x449   : > { %4816 = vrot.lane.b32.xlu0 %v4410_v6, %s6166_s7 }
 0x44a   : > { %v4341_v2 = vpop.permute.xlu0 %4340  ;;  %4522 = vrot.lane.b32.xlu1 %v6039_v54, %s6166_s7  ;;  %v4119_v59 = vpop.permute.xlu1 %4118 }
 0x44b   : > { %v4412_v7 = vadd.f32 %v4341_v2, %v4188_v45  ;;  %v6043_v60 = vpop.eup %6042  ;;  %v4189_v25 = vadd.f32 %v4119_v59, %v3741_v57  ;;  %v3745_v2 = vmul.f32 %v9493_v52, %v9492_v43 }
 0x44d   : > { %4524 = vrot.lane.b32.xlu0 %v6041_v37, %s6166_s7  ;;  %6048 = vtanh.f32 %v4412_v7 }
 0x44e   : > { %4818 = vrot.lane.b32.xlu1 %v4411_v46, %s6166_s7  ;;  %v4343_v31 = vpop.permute.xlu1 %4342 }
 0x44f   : > { %v4121_v4 = vpop.permute.xlu0 %4120  ;;  %v4413_v36 = vadd.f32 %v4343_v31, %v4189_v25  ;;  %v6045_v39 = vpop.eup %6044  ;;  %v9494_v31 = vld [vmem:[#allocation8_spill] sm:$0xff] }
 0x450   : > { %v4190_v28 = vadd.f32 %v4121_v4, %v3742_v13  ;;  %v3746_v57 = vmul.f32 %v8672_v8, %v9494_v31 }
 0x451   : > { %4820 = vrot.lane.b32.xlu0 %v4412_v7, %s6166_s7  ;;  %6050 = vtanh.f32 %v4413_v36 }
 0x452   : > { %4526 = vrot.lane.b32.xlu1 %v6043_v60, %s6166_s7  ;;  %v6047_v42 = vpop.eup %6046 }
 0x453   : > { %v4345_v44 = vpop.permute.xlu0 %4344 }
 0x454   : > { %v4123_v63 = vpop.permute.xlu1 %4122  ;;  %v4414_v33 = vadd.f32 %v4345_v44, %v4190_v28  ;;  %v9495_v28 = vld [vmem:[#allocation5_spill] sm:$0xff] }
 0x455   : > { %4528 = vrot.lane.b32.xlu0 %v6045_v39, %s6166_s7  ;;  %v4191_v15 = vadd.f32 %v4123_v63, %v3743_v9  ;;  %v3747_v63 = vmul.f32 %v8682_v5, %v9495_v28 }
 0x456   : > { %4822 = vrot.lane.b32.xlu1 %v4413_v36, %s6166_s7  ;;  %6052 = vtanh.f32 %v4414_v33 }
 0x457   : > { %v4125_v27 = vpop.permute.xlu0 %4124  ;;  %v6049_v17 = vpop.eup %6048 }
 0x458   : > { %v4347_v50 = vpop.permute.xlu1 %4346  ;;  %v4192_v53 = vadd.f32 %v4125_v27, %v3744_v58 }
 0x459   : > { %4824 = vrot.lane.b32.xlu0 %v4414_v33, %s6166_s7  ;;  %v4415_v14 = vadd.f32 %v4347_v50, %v4191_v15 }
 0x45a   : > { %4530 = vrot.lane.b32.xlu1 %v6047_v42, %s6166_s7 }
 0x45b   : > { %v4349_v6 = vpop.permute.xlu0 %4348  ;;  %v6051_v46 = vpop.eup %6050 }
 0x45c   : > { %v4127_v22 = vpop.permute.xlu1 %4126  ;;  %v4416_v54 = vadd.f32 %v4349_v6, %v4192_v53  ;;  %v9496_v53 = vld [vmem:[#allocation38_spill] sm:$0xff] }
 0x45d   : > { %4532 = vrot.lane.b32.xlu0 %v6049_v17, %s6166_s7  ;;  %v4193_v47 = vadd.f32 %v4127_v22, %v3745_v2 }
 0x45e   : > { %6054 = vtanh.f32 %v4416_v54  ;;  %4826 = vrot.lane.b32.xlu1 %v4415_v14, %s6166_s7 }
 0x45f   : > { %6056 = vtanh.f32 %v4415_v14  ;;  %v8805_v19 = vpop.permute.xlu0 %4772 }
 0x460   : > { %v4351_v59 = vpop.permute.xlu1 %4350  ;;  %v6053_v7 = vpop.eup %6052 }
 0x461   : > { %v4417_v37 = vadd.f32 %v4351_v59, %v4193_v47  ;;  %4828 = vrot.lane.b32.xlu0 %v4416_v54, %s6166_s7 }
 0x462   : > { %4534 = vrot.lane.b32.xlu1 %v6051_v46, %s6166_s7 }
 0x463   : > { %6058 = vtanh.f32 %v4417_v37  ;;  %v4129_v45 = vpop.permute.xlu0 %4128 }
 0x464   : > { %v8811_v4 = vpop.permute.xlu1 %4774  ;;  %v4194_v60 = vadd.f32 %v4129_v45, %v3746_v57 }
 0x465   : > { %4536 = vrot.lane.b32.xlu0 %v6053_v7, %s6166_s7 }
 0x466   : > { %4830 = vrot.lane.b32.xlu1 %v4417_v37, %s6166_s7 }
 0x467   : > { %v4353_v25 = vpop.permute.xlu0 %4352 }
 0x468   : > { %v6055_v13 = vpop.eup %6054  ;;  %v4131_v36 = vpop.permute.xlu1 %4130  ;;  %v8815_v44 = vadd.f32 %v4353_v25, %v4194_v60 }
 0x469   : > { %v6057_v39 = vpop.eup %6056  ;;  %4540 = vrot.lane.b32.xlu0 %v6055_v13, %s6166_s7  ;;  %v4195_v33 = vadd.f32 %v4131_v36, %v3747_v63 }
 0x46a   : > { %6060 = vtanh.f32 %v8815_v44  ;;  %4538 = vrot.lane.b32.xlu1 %v6057_v39, %s6166_s7 }
 0x46b   : > { %v8822_v9 = vpop.permute.xlu0 %4776 }
 0x46c   : > { %v4355_v27 = vpop.permute.xlu1 %4354 }
 0x46d   : > { %v6059_v58 = vpop.eup %6058  ;;  %v8824_v50 = vadd.f32 %v4355_v27, %v4195_v33 }
 0x46e   : > { %4542 = vrot.lane.b32.xlu1 %v6059_v58, %s6166_s7 }
 0x46f   : > { %6062 = vtanh.f32 %v8824_v50  ;;  %v4485_v42 = vpop.permute.xlu0 %4484 }
 0x470   : > { %v8828_v15 = vpop.permute.xlu1 %4778  ;;  %v4580_v14 = vmul.f32 %v9496_v53, %v4485_v42 }
 0x472   : > { %4644 = vrot.lane.b32.xlu0 %v4580_v14, %s6169_s27 }
 0x473   : > { %v8832_v6 = vpop.permute.xlu0 %4780 }
 0x474   : > { %v6061_v17 = vpop.eup %6060  ;;  %v4487_v22 = vpop.permute.xlu1 %4486 }
 0x475   : > { %v4581_v54 = vmul.f32 %v8319_v55, %v4487_v22 }
 0x476   : > { %4544 = vrot.lane.b32.xlu0 %v6061_v17, %s6166_s7 }
 0x477   : > { %4646 = vrot.lane.b32.xlu1 %v4581_v54, %s6169_s27  ;;  %v4489_v43 = vpop.permute.xlu0 %4488 }
 0x478   : > { %v8837_v2 = vpop.permute.xlu1 %4782  ;;  %v4582_v47 = vmul.f32 %v8353_v32, %v4489_v43 }
 0x479   : > { %v6063_v59 = vpop.eup %6062 }
 0x47a   : > { %4648 = vrot.lane.b32.xlu0 %v4582_v47, %s6169_s27 }
 0x47b   : > { %4546 = vrot.lane.b32.xlu1 %v6063_v59, %s6166_s7  ;;  %v8842_v46 = vpop.permute.xlu0 %4784 }
 0x47c   : > { %v4491_v37 = vpop.permute.xlu1 %4490 }
 0x47d   : > { %v4583_v45 = vmul.f32 %v8369_v49, %v4491_v37 }
 0x47f   : > { %4650 = vrot.lane.b32.xlu1 %v4583_v45, %s6169_s27  ;;  %v4493_v55 = vpop.permute.xlu0 %4492 }
 0x480   : > { %v8846_v7 = vpop.permute.xlu1 %4786  ;;  %v4584_v31 = vmul.f32 %v8384_v3, %v4493_v55 }
 0x482   : > { %4652 = vrot.lane.b32.xlu0 %v4584_v31, %s6169_s27 }
 0x483   : > { %v8850_v32 = vpop.permute.xlu0 %4788 }
 0x484   : > { %v4495_v57 = vpop.permute.xlu1 %4494 }
 0x485   : > { %v4585_v60 = vmul.f32 %v8401_v1, %v4495_v57 }
 0x487   : > { %4654 = vrot.lane.b32.xlu1 %v4585_v60, %s6169_s27  ;;  %v4497_v25 = vpop.permute.xlu0 %4496 }
 0x488   : > { %v8854_v13 = vpop.permute.xlu1 %4790  ;;  %v4586_v49 = vmul.f32 %v8411_v20, %v4497_v25 }
 0x48a   : > { %4656 = vrot.lane.b32.xlu0 %v4586_v49, %s6169_s27 }
 0x48b   : > { %v8858_v36 = vpop.permute.xlu0 %4792 }
 0x48c   : > { %v4499_v39 = vpop.permute.xlu1 %4498 }
 0x48d   : > { %v4587_v3 = vmul.f32 %v8427_v10, %v4499_v39 }
 0x48f   : > { %4658 = vrot.lane.b32.xlu1 %v4587_v3, %s6169_s27  ;;  %v4501_v28 = vpop.permute.xlu0 %4500 }
 0x490   : > { %v8862_v63 = vpop.permute.xlu1 %4794  ;;  %v4588_v1 = vmul.f32 %v8439_v41, %v4501_v28 }
 0x492   : > { %4660 = vrot.lane.b32.xlu0 %v4588_v1, %s6169_s27 }
 0x493   : > { %v8866_v33 = vpop.permute.xlu0 %4796 }
 0x494   : > { %v4503_v27 = vpop.permute.xlu1 %4502 }
 0x495   : > { %v4589_v20 = vmul.f32 %v8453_v40, %v4503_v27 }
 0x497   : > { %4662 = vrot.lane.b32.xlu1 %v4589_v20, %s6169_s27  ;;  %v4505_v58 = vpop.permute.xlu0 %4504 }
 0x498   : > { %v8870_v42 = vpop.permute.xlu1 %4798  ;;  %v4590_v10 = vmul.f32 %v8463_v62, %v4505_v58 }
 0x49a   : > { %4664 = vrot.lane.b32.xlu0 %v4590_v10, %s6169_s27 }
 0x49b   : > { %v8874_v53 = vpop.permute.xlu0 %4800 }
 0x49c   : > { %v4507_v14 = vpop.permute.xlu1 %4506 }
 0x49d   : > { %v4591_v41 = vmul.f32 %v8476_v35, %v4507_v14 }
 0x49f   : > { %4666 = vrot.lane.b32.xlu1 %v4591_v41, %s6169_s27  ;;  %v4509_v17 = vpop.permute.xlu0 %4508 }
 0x4a0   : > { %v8878_v22 = vpop.permute.xlu1 %4802  ;;  %v4592_v40 = vmul.f32 %v8486_v61, %v4509_v17 }
 0x4a2   : > { %4668 = vrot.lane.b32.xlu0 %v4592_v40, %s6169_s27 }
 0x4a3   : > { %v8882_v54 = vpop.permute.xlu0 %4804 }
 0x4a4   : > { %v4511_v43 = vpop.permute.xlu1 %4510 }
 0x4a5   : > { %v4593_v62 = vmul.f32 %v8498_v21, %v4511_v43 }
 0x4a7   : > { %4670 = vrot.lane.b32.xlu1 %v4593_v62, %s6169_s27  ;;  %v4513_v47 = vpop.permute.xlu0 %4512 }
 0x4a8   : > { %v8886_v59 = vpop.permute.xlu1 %4806  ;;  %v4594_v35 = vmul.f32 %v8508_v34, %v4513_v47 }
 0x4aa   : > { %4672 = vrot.lane.b32.xlu0 %v4594_v35, %s6169_s27 }
 0x4ab   : > { %v8890_v37 = vpop.permute.xlu0 %4808 }
 0x4ac   : > { %v4515_v45 = vpop.permute.xlu1 %4514 }
 0x4ad   : > { %v4595_v61 = vmul.f32 %v8520_v24, %v4515_v45 }
 0x4af   : > { %4674 = vrot.lane.b32.xlu1 %v4595_v61, %s6169_s27  ;;  %v4517_v55 = vpop.permute.xlu0 %4516 }
 0x4b0   : > { %v8894_v31 = vpop.permute.xlu1 %4810  ;;  %v4596_v21 = vmul.f32 %v8528_v38, %v4517_v55 }
 0x4b2   : > { %4676 = vrot.lane.b32.xlu0 %v4596_v21, %s6169_s27 }
 0x4b3   : > { %v8898_v57 = vpop.permute.xlu0 %4812 }
 0x4b4   : > { %v4519_v60 = vpop.permute.xlu1 %4518 }
 0x4b5   : > { %v4597_v34 = vmul.f32 %v8540_v29, %v4519_v60 }
 0x4b7   : > { %4678 = vrot.lane.b32.xlu1 %v4597_v34, %s6169_s27  ;;  %v4521_v25 = vpop.permute.xlu0 %4520 }
 0x4b8   : > { %v8902_v49 = vpop.permute.xlu1 %4814  ;;  %v4598_v24 = vmul.f32 %v8548_v30, %v4521_v25 }
 0x4ba   : > { %4680 = vrot.lane.b32.xlu0 %v4598_v24, %s6169_s27 }
 0x4bb   : > { %v8906_v39 = vpop.permute.xlu0 %4816 }
 0x4bc   : > { %v4523_v3 = vpop.permute.xlu1 %4522 }
 0x4bd   : > { %v4599_v38 = vmul.f32 %v8560_v16, %v4523_v3 }
 0x4bf   : > { %4682 = vrot.lane.b32.xlu1 %v4599_v38, %s6169_s27  ;;  %v4525_v28 = vpop.permute.xlu0 %4524 }
 0x4c0   : > { %v8910_v1 = vpop.permute.xlu1 %4818  ;;  %v4600_v29 = vmul.f32 %v8569_v23, %v4525_v28 }
 0x4c2   : > { %4684 = vrot.lane.b32.xlu0 %v4600_v29, %s6169_s27 }
 0x4c3   : > { %v8914_v27 = vpop.permute.xlu0 %4820 }
 0x4c4   : > { %v4527_v20 = vpop.permute.xlu1 %4526 }
 0x4c5   : > { %v4601_v30 = vmul.f32 %v8582_v56, %v4527_v20 }
 0x4c7   : > { %4686 = vrot.lane.b32.xlu1 %v4601_v30, %s6169_s27  ;;  %v4529_v58 = vpop.permute.xlu0 %4528 }
 0x4c8   : > { %v8918_v10 = vpop.permute.xlu1 %4822  ;;  %v4602_v16 = vmul.f32 %v8592_v11, %v4529_v58 }
 0x4ca   : > { %4688 = vrot.lane.b32.xlu0 %v4602_v16, %s6169_s27 }
 0x4cb   : > { %v8922_v14 = vpop.permute.xlu0 %4824 }
 0x4cc   : > { %v4531_v41 = vpop.permute.xlu1 %4530 }
 0x4cd   : > { %v4603_v23 = vmul.f32 %v8605_v48, %v4531_v41 }
 0x4cf   : > { %4690 = vrot.lane.b32.xlu1 %v4603_v23, %s6169_s27  ;;  %v4533_v17 = vpop.permute.xlu0 %4532 }
 0x4d0   : > { %v8926_v40 = vpop.permute.xlu1 %4826  ;;  %v4604_v56 = vmul.f32 %v8617_v51, %v4533_v17 }
 0x4d2   : > { %4692 = vrot.lane.b32.xlu0 %v4604_v56, %s6169_s27 }
 0x4d3   : > { %v8930_v43 = vpop.permute.xlu0 %4828 }
 0x4d4   : > { %v4535_v62 = vpop.permute.xlu1 %4534 }
 0x4d5   : > { %v4605_v11 = vmul.f32 %v8628_v26, %v4535_v62 }
 0x4d7   : > { %4694 = vrot.lane.b32.xlu1 %v4605_v11, %s6169_s27  ;;  %v4537_v47 = vpop.permute.xlu0 %4536 }
 0x4d8   : > { %v8934_v48 = vpop.permute.xlu1 %4830  ;;  %v4606_v35 = vmul.f32 %v8639_v18, %v4537_v47 }
 0x4da   : > { %4696 = vrot.lane.b32.xlu0 %v4606_v35, %s6169_s27 }
 0x4db   : > { %v4541_v45 = vpop.permute.xlu0 %4540 }
 0x4dc   : > { %v4539_v51 = vpop.permute.xlu1 %4538  ;;  %v4608_v61 = vmul.f32 %v8652_v0, %v4541_v45 }
 0x4dd   : > { %v4607_v55 = vmul.f32 %v8649_v12, %v4539_v51 }
 0x4de   : > { %4700 = vrot.lane.b32.xlu0 %v4608_v61, %s6169_s27 }
 0x4df   : > { %4698 = vrot.lane.b32.xlu1 %v4607_v55, %s6169_s27 }
 0x4e0   : > { %v4543_v26 = vpop.permute.xlu1 %4542 }
 0x4e1   : > { %v4609_v21 = vmul.f32 %v9493_v52, %v4543_v26 }
 0x4e3   : > { %4702 = vrot.lane.b32.xlu1 %v4609_v21, %s6169_s27 }
 0x4e4   : > { %v4645_v18 = vpop.permute.xlu0 %4644 }
 0x4e5   : > { %v4868_v0 = vsel %vm667_vm0, %v4645_v18, %v8805_v19 }
 0x4e6   : > { %v4900_v12 = vsel %vm700_vm1, %v4868_v0, 0.0 }
 0x4e7   : > { %4933 = vst [vmem:[%s8947_s23] sm:$0xff] %v4900_v12 }
 0x4e8   : > { %v4545_v60 = vpop.permute.xlu0 %4544 }
 0x4e9   : > { %v4647_v34 = vpop.permute.xlu1 %4646  ;;  %v4610_v25 = vmul.f32 %v8672_v8, %v4545_v60 }
 0x4ea   : > { %v4869_v52 = vsel %vm667_vm0, %v4647_v34, %v8811_v4 }
 0x4eb   : > { %v4901_v24 = vsel %vm700_vm1, %v4869_v52, 0.0  ;;  %4704 = vrot.lane.b32.xlu0 %v4610_v25, %s6169_s27 }
 0x4ec   : > { %4934 = vst [vmem:[%s8947_s23 + $0x8] sm:$0xff] %v4901_v24  ;;  %v4649_v3 = vpop.permute.xlu0 %4648 }
 0x4ed   : > { %v4547_v38 = vpop.permute.xlu1 %4546  ;;  %v4870_v19 = vsel %vm667_vm0, %v4649_v3, %v8822_v9 }
 0x4ee   : > { %v4611_v28 = vmul.f32 %v8682_v5, %v4547_v38  ;;  %v4902_v29 = vsel %vm700_vm1, %v4870_v19, 0.0 }
 0x4ef   : > { %4935 = vst [vmem:[%s8947_s23 + $0x10] sm:$0xff] %v4902_v29  ;;  %4832 = vrot.lane.b32.xlu0 %v8815_v44, %s6166_s7 }
 0x4f0   : > { %4706 = vrot.lane.b32.xlu1 %v4611_v28, %s6169_s27 }
 0x4f1   : > { %v4651_v8 = vpop.permute.xlu1 %4650 }
 0x4f2   : > { %v4871_v4 = vsel %vm667_vm0, %v4651_v8, %v8828_v15 }
 0x4f3   : > { %v4903_v20 = vsel %vm700_vm1, %v4871_v4, 0.0 }
 0x4f4   : > { %4936 = vst [vmem:[%s8947_s23 + $0x18] sm:$0xff] %v4903_v20  ;;  %4834 = vrot.lane.b32.xlu1 %v8824_v50, %s6166_s7  ;;  %v4653_v5 = vpop.permute.xlu0 %4652 }
 0x4f5   : > { %v4872_v9 = vsel %vm667_vm0, %v4653_v5, %v8832_v6 }
 0x4f6   : > { %v4904_v44 = vsel %vm700_vm1, %v4872_v9, 0.0 }
 0x4f7   : > { %4937 = vst [vmem:[%s8947_s23 + $0x20] sm:$0xff] %v4904_v44 }
 0x4f9   : > { %v4655_v30 = vpop.permute.xlu1 %4654 }
 0x4fa   : > { %v4873_v58 = vsel %vm667_vm0, %v4655_v30, %v8837_v2 }
 0x4fb   : > { %v4905_v15 = vsel %vm700_vm1, %v4873_v58, 0.0 }
 0x4fc   : > { %4938 = vst [vmem:[%s8947_s23 + $0x28] sm:$0xff] %v4905_v15  ;;  %v4657_v16 = vpop.permute.xlu0 %4656 }
 0x4fd   : > { %v4874_v50 = vsel %vm667_vm0, %v4657_v16, %v8842_v46 }
 0x4fe   : > { %v4906_v41 = vsel %vm700_vm1, %v4874_v50, 0.0 }
 0x4ff   : > { %4939 = vst [vmem:[%s8947_s23 + $0x30] sm:$0xff] %v4906_v41 }
 0x501   : > { %v4659_v6 = vpop.permute.xlu1 %4658 }
 0x502   : > { %v4875_v23 = vsel %vm667_vm0, %v4659_v6, %v8846_v7 }
 0x503   : > { %v4907_v17 = vsel %vm700_vm1, %v4875_v23, 0.0 }
 0x504   : > { %4940 = vst [vmem:[%s8947_s23 + $0x38] sm:$0xff] %v4907_v17  ;;  %v4661_v2 = vpop.permute.xlu0 %4660 }
 0x505   : > { %v4876_v56 = vsel %vm667_vm0, %v4661_v2, %v8850_v32 }
 0x506   : > { %v4908_v62 = vsel %vm700_vm1, %v4876_v56, 0.0 }
 0x507   : > { %4941 = vst [vmem:[%s8947_s23 + $0x40] sm:$0xff] %v4908_v62 }
 0x509   : > { %v4663_v46 = vpop.permute.xlu1 %4662 }
 0x50a   : > { %v4877_v11 = vsel %vm667_vm0, %v4663_v46, %v8854_v13 }
 0x50b   : > { %v4909_v47 = vsel %vm700_vm1, %v4877_v11, 0.0 }
 0x50c   : > { %4942 = vst [vmem:[%s8947_s23 + $0x48] sm:$0xff] %v4909_v47  ;;  %v4665_v7 = vpop.permute.xlu0 %4664 }
 0x50d   : > { %v4878_v35 = vsel %vm667_vm0, %v4665_v7, %v8858_v36 }
 0x50e   : > { %v4910_v45 = vsel %vm700_vm1, %v4878_v35, 0.0 }
 0x50f   : > { %4943 = vst [vmem:[%s8947_s23 + $0x50] sm:$0xff] %v4910_v45 }
 0x511   : > { %v4667_v32 = vpop.permute.xlu1 %4666 }
 0x512   : > { %v4879_v51 = vsel %vm667_vm0, %v4667_v32, %v8862_v63 }
 0x513   : > { %v4911_v61 = vsel %vm700_vm1, %v4879_v51, 0.0 }
 0x514   : > { %4944 = vst [vmem:[%s8947_s23 + $0x58] sm:$0xff] %v4911_v61  ;;  %v4669_v13 = vpop.permute.xlu0 %4668 }
 0x515   : > { %v4880_v55 = vsel %vm667_vm0, %v4669_v13, %v8866_v33 }
 0x516   : > { %v4912_v26 = vsel %vm700_vm1, %v4880_v55, 0.0 }
 0x517   : > { %4945 = vst [vmem:[%s8947_s23 + $0x60] sm:$0xff] %v4912_v26 }
 0x519   : > { %v4671_v36 = vpop.permute.xlu1 %4670 }
 0x51a   : > { %v4881_v21 = vsel %vm667_vm0, %v4671_v36, %v8870_v42 }
 0x51b   : > { %v4913_v18 = vsel %vm700_vm1, %v4881_v21, 0.0 }
 0x51c   : > { %4946 = vst [vmem:[%s8947_s23 + $0x68] sm:$0xff] %v4913_v18  ;;  %v4673_v63 = vpop.permute.xlu0 %4672 }
 0x51d   : > { %v4882_v0 = vsel %vm667_vm0, %v4673_v63, %v8874_v53 }
 0x51e   : > { %v4914_v12 = vsel %vm700_vm1, %v4882_v0, 0.0 }
 0x51f   : > { %4947 = vst [vmem:[%s8947_s23 + $0x70] sm:$0xff] %v4914_v12 }
 0x521   : > { %v4675_v33 = vpop.permute.xlu1 %4674 }
 0x522   : > { %v4883_v60 = vsel %vm667_vm0, %v4675_v33, %v8878_v22 }
 0x523   : > { %v4915_v34 = vsel %vm700_vm1, %v4883_v60, 0.0 }
 0x524   : > { %4948 = vst [vmem:[%s8947_s23 + $0x78] sm:$0xff] %v4915_v34  ;;  %v4677_v42 = vpop.permute.xlu0 %4676 }
 0x525   : > { %v4884_v25 = vsel %vm667_vm0, %v4677_v42, %v8882_v54 }
 0x526   : > { %v4916_v52 = vsel %vm700_vm1, %v4884_v25, 0.0 }
 0x527   : > { %4949 = vst [vmem:[%s8947_s23 + $0x80] sm:$0xff] %v4916_v52 }
 0x529   : > { %v4679_v53 = vpop.permute.xlu1 %4678 }
 0x52a   : > { %v4885_v24 = vsel %vm667_vm0, %v4679_v53, %v8886_v59 }
 0x52b   : > { %v4917_v3 = vsel %vm700_vm1, %v4885_v24, 0.0 }
 0x52c   : > { %4950 = vst [vmem:[%s8947_s23 + $0x88] sm:$0xff] %v4917_v3  ;;  %v4681_v22 = vpop.permute.xlu0 %4680 }
 0x52d   : > { %v4886_v38 = vsel %vm667_vm0, %v4681_v22, %v8890_v37 }
 0x52e   : > { %v4918_v19 = vsel %vm700_vm1, %v4886_v38, 0.0 }
 0x52f   : > { %4951 = vst [vmem:[%s8947_s23 + $0x90] sm:$0xff] %v4918_v19 }
 0x531   : > { %v4683_v54 = vpop.permute.xlu1 %4682 }
 0x532   : > { %v4887_v28 = vsel %vm667_vm0, %v4683_v54, %v8894_v31 }
 0x533   : > { %v4919_v29 = vsel %vm700_vm1, %v4887_v28, 0.0 }
 0x534   : > { %4952 = vst [vmem:[%s8947_s23 + $0x98] sm:$0xff] %v4919_v29  ;;  %v4685_v59 = vpop.permute.xlu0 %4684 }
 0x535   : > { %v4888_v8 = vsel %vm667_vm0, %v4685_v59, %v8898_v57 }
 0x536   : > { %v4920_v4 = vsel %vm700_vm1, %v4888_v8, 0.0 }
 0x537   : > { %4953 = vst [vmem:[%s8947_s23 + $0xa0] sm:$0xff] %v4920_v4 }
 0x539   : > { %v4687_v37 = vpop.permute.xlu1 %4686 }
 0x53a   : > { %v4889_v20 = vsel %vm667_vm0, %v4687_v37, %v8902_v49 }
 0x53b   : > { %v4921_v5 = vsel %vm700_vm1, %v4889_v20, 0.0 }
 0x53c   : > { %4954 = vst [vmem:[%s8947_s23 + $0xa8] sm:$0xff] %v4921_v5  ;;  %v4689_v31 = vpop.permute.xlu0 %4688 }
 0x53d   : > { %v4890_v9 = vsel %vm667_vm0, %v4689_v31, %v8906_v39 }
 0x53e   : > { %v4922_v44 = vsel %vm700_vm1, %v4890_v9, 0.0 }
 0x53f   : > { %4955 = vst [vmem:[%s8947_s23 + $0xb0] sm:$0xff] %v4922_v44 }
 0x541   : > { %v4691_v57 = vpop.permute.xlu1 %4690 }
 0x542   : > { %v4891_v30 = vsel %vm667_vm0, %v4691_v57, %v8910_v1 }
 0x543   : > { %v4923_v58 = vsel %vm700_vm1, %v4891_v30, 0.0 }
 0x544   : > { %4956 = vst [vmem:[%s8947_s23 + $0xb8] sm:$0xff] %v4923_v58  ;;  %v4693_v49 = vpop.permute.xlu0 %4692 }
 0x545   : > { %v4892_v15 = vsel %vm667_vm0, %v4693_v49, %v8914_v27 }
 0x546   : > { %v4924_v16 = vsel %vm700_vm1, %v4892_v15, 0.0 }
 0x547   : > { %4957 = vst [vmem:[%s8947_s23 + $0xc0] sm:$0xff] %v4924_v16 }
 0x549   : > { %v4695_v39 = vpop.permute.xlu1 %4694 }
 0x54a   : > { %v4893_v50 = vsel %vm667_vm0, %v4695_v39, %v8918_v10 }
 0x54b   : > { %v4925_v41 = vsel %vm700_vm1, %v4893_v50, 0.0 }
 0x54c   : > { %4958 = vst [vmem:[%s8947_s23 + $0xc8] sm:$0xff] %v4925_v41  ;;  %v4697_v1 = vpop.permute.xlu0 %4696 }
 0x54d   : > { %v4894_v6 = vsel %vm667_vm0, %v4697_v1, %v8922_v14 }
 0x54e   : > { %v4926_v23 = vsel %vm700_vm1, %v4894_v6, 0.0 }
 0x54f   : > { %4959 = vst [vmem:[%s8947_s23 + $0xd0] sm:$0xff] %v4926_v23 }
 0x550   : > { %v4701_v27 = vpop.permute.xlu0 %4700 }
 0x551   : > { %v4699_v17 = vpop.permute.xlu1 %4698  ;;  %v4896_v2 = vsel %vm667_vm0, %v4701_v27, %v8930_v43 }
 0x552   : > { %v4895_v10 = vsel %vm667_vm0, %v4699_v17, %v8926_v40  ;;  %v4928_v56 = vsel %vm700_vm1, %v4896_v2, 0.0 }
 0x553   : > { %v4927_v62 = vsel %vm700_vm1, %v4895_v10, 0.0  ;;  %4961 = vst [vmem:[%s8947_s23 + $0xe0] sm:$0xff] %v4928_v56 }
 0x554   : > { %4960 = vst [vmem:[%s8947_s23 + $0xd8] sm:$0xff] %v4927_v62 }
 0x555   : > { %v4703_v14 = vpop.permute.xlu1 %4702 }
 0x556   : > { %v4897_v46 = vsel %vm667_vm0, %v4703_v14, %v8934_v48 }
 0x557   : > { %v4929_v11 = vsel %vm700_vm1, %v4897_v46, 0.0 }
 0x558   : > { %4962 = vst [vmem:[%s8947_s23 + $0xe8] sm:$0xff] %v4929_v11 }
 0x55d   : > { %v4705_v47 = vpop.permute.xlu0 %4704 }
 0x561   : > { %v4833_v7 = vpop.permute.xlu0 %4832 }
 0x562   : > { %v4707_v43 = vpop.permute.xlu1 %4706  ;;  %v4898_v35 = vsel %vm667_vm0, %v4705_v47, %v4833_v7 }
 0x563   : > { %v4930_v40 = vsel %vm700_vm1, %v4898_v35, 0.0 }
 0x564   : > { %4963 = vst [vmem:[%s8947_s23 + $0xf0] sm:$0xff] %v4930_v40 }
 0x566   : > { %v4835_v45 = vpop.permute.xlu1 %4834 }
 0x567   : > { %v4899_v32 = vsel %vm667_vm0, %v4707_v43, %v4835_v45 }
 0x568   : > { %v4931_v51 = vsel %vm700_vm1, %v4899_v32, 0.0 }
 0x569   : > { %4964 = vst [vmem:[%s8947_s23 + $0xf8] sm:$0xff] %v4931_v51 }
 0x56a PF: > { %s19_s20 = sadd.s32 1, %s6162_s20   ;;  %s9497_s17 = smov %s6154_s19 }
 0x56b   : > { %p16_p13 = scmp.ge.s32.totalorder %s19_s20, 10   ;;  %s9498_s18 = smov %s6158_s0 }
 0x56c   : > { %s9499_s19 = smov %s9502_s21  ;;  %s9500_s0 = smov %s9506_s22 }
 0x56d   :  { %18 = sbr.rel (!%p16_p13) target bundleno = 18 (0x12), region = 66 }

</bundles_post_ra>
